<compile_context>
chip_gen: v7x
topology: tpu7x:2x2x1
jax: 0.10.0
libtpu: 0.0.40
codegen_flags: <defaults>
</compile_context>

<pallas_src>
import functools

import jax
import jax.numpy as jnp
from jax.experimental import pallas as pl
from jax.experimental.pallas import tpu as pltpu


def _round_up(x, m):
    return (x + m - 1) // m * m


# ---------------------------------------------------------------------------
# Fused kernel: conv1 -> BN+ReLU -> PAM -> conv2 -> BN+ReLU
# Activations are (C, B*N) with B*N = batch-fused H*W on the lane axis.
# ---------------------------------------------------------------------------
def _conv_block_kernel(x_ref, w1_ref, b1_ref, g1_ref, bb1_ref,
                       wqk_ref, bqk_ref, wv_ref, bv_ref, pg_ref,
                       w2_ref, b2_ref, g2_ref, bb2_ref, o_ref,
                       *, H, W, cq):
    B, _, N = x_ref.shape
    BN = B * N
    f32 = jnp.float32
    bf16 = jnp.bfloat16

    # ---- batch fused onto the lane axis (cheap 128-aligned lane concat) ----
    x = jnp.concatenate([x_ref[b] for b in range(B)], axis=1)    # (Cin, BN)

    # ---- 3x3 tap offsets + per-image boundary masks (computed once) --------
    p_idx = jax.lax.broadcasted_iota(jnp.int32, (1, BN), 1)
    # position inside its own image: keeps masks correct across the batch seam
    n_idx = (jnp.bitwise_and(p_idx, N - 1) if (N & (N - 1)) == 0 else p_idx % N)
    ww = (jnp.bitwise_and(n_idx, W - 1) if (W & (W - 1)) == 0 else n_idx % W)
    taps = []
    for dy in (-1, 0, 1):
        for dx in (-1, 0, 1):
            conds = []
            if dy < 0:
                conds.append(n_idx >= (-dy) * W)          # h >= |dy|
            if dy > 0:
                conds.append(n_idx < (H - dy) * W)        # h <  H - dy
            if dx < 0:
                conds.append(ww >= -dx)                   # w >= |dx|
            if dx > 0:
                conds.append(ww < W - dx)                 # w <  W - dx
            mask = None
            for c in conds:
                mask = c if mask is None else jnp.logical_and(mask, c)
            taps.append((dy * W + dx, mask))

    def conv3x3(x_cn, w_ref_, b_ref_):
        # x_cn: (Ci, BN) f32; w_ref_: (Cout, 9*Ci) bf16; b_ref_: (Cout, 1) f32
        ci = x_cn.shape[0]
        per_tap_bf16 = (ci % 16) == 0        # whole bf16 sublane group per tap
        cols = []
        for off, mask in taps:
            sh = x_cn if off == 0 else pltpu.roll(x_cn, shift=(-off) % BN, axis=1)
            if mask is not None:
                sh = jnp.where(mask, sh, 0.0)             # f32 select (v5e-safe)
            cols.append(sh.astype(bf16) if per_tap_bf16 else sh)
        patches = jnp.concatenate(cols, axis=0)           # (9*Ci, BN) im2col
        if not per_tap_bf16:
            patches = patches.astype(bf16)
        acc = jnp.dot(w_ref_[...], patches, preferred_element_type=f32)
        return acc + b_ref_[...]                          # (Cout, BN)

    def bn_relu(h, g_ref_, b_ref_):
        # PyTorch BatchNorm2d training mode: batch stats over batch+spatial,
        # biased variance, eps=1e-5.  Single pass: var = E[h^2] - mean^2.
        inv = f32(1.0 / BN)
        mean = jnp.sum(h, axis=1, keepdims=True) * inv
        ex2 = jnp.sum(h * h, axis=1, keepdims=True) * inv
        var = jnp.maximum(ex2 - mean * mean, f32(0.0))
        scale = jax.lax.rsqrt(var + f32(1e-5)) * g_ref_[...]
        shift = b_ref_[...] - mean * scale
        return jnp.maximum(h * scale + shift, f32(0.0))

    gamma = pg_ref[...]                   # (1, 1) broadcasts over (Cout, BN)
    eps = f32(1e-6)

    def pam(x_cn):
        # Linear-attention PAM in (C, BN) layout.  Projections are fused over
        # the whole batch; the per-image aggregation runs on 128-aligned lane
        # slices (N = H*W is a multiple of 128).
        xb = x_cn.astype(bf16)
        qk = jnp.dot(wqk_ref[...], xb, preferred_element_type=f32) + bqk_ref[...]
        v = jnp.dot(wv_ref[...], xb, preferred_element_type=f32) + bv_ref[...]
        q = qk[:cq]                                       # (cq, BN)
        k = qk[cq:]                                       # (cq, BN)
        # l2_norm over channel axis (reference uses 1/||.||_2, no eps clamp)
        qn = q * jax.lax.rsqrt(jnp.sum(q * q, axis=0, keepdims=True))
        kn = k * jax.lax.rsqrt(jnp.sum(k * k, axis=0, keepdims=True))
        outs = []
        for b in range(B):
            lo, hi = b * N, (b + 1) * N
            qn_b, kn_b, v_b = qn[:, lo:hi], kn[:, lo:hi], v[:, lo:hi]
            sum_k = jnp.sum(kn_b, axis=1, keepdims=True)                  # (cq, 1)
            denom = f32(N) + jnp.sum(qn_b * (sum_k + eps), axis=0,
                                     keepdims=True)                       # (1, N)
            tailor = pl.reciprocal(denom, approx=True)                    # EUP
            value_sum = jnp.sum(v_b, axis=1, keepdims=True)               # (Cout,1)
            # attn[c,n] = sum_m (sum_p v[c,p]*kn[m,p]) * qn[m,n]
            # cq is tiny -> lane-dense VPU FMAs instead of K=cq MXU matmuls.
            attn = jnp.zeros_like(v_b)
            for m in range(cq):
                col = jnp.sum(v_b * kn_b[m:m + 1, :], axis=1, keepdims=True)
                attn = attn + col * qn_b[m:m + 1, :]
            outs.append((value_sum + attn) * tailor)
        wvl = jnp.concatenate(outs, axis=1)                               # (Cout, BN)
        return x_cn + gamma * wvl

    # ---- fused forward pass, whole batch resident in VMEM ------------------
    h = conv3x3(x, w1_ref, b1_ref)
    h = bn_relu(h, g1_ref, bb1_ref)
    h = pam(h)
    h = conv3x3(h, w2_ref, b2_ref)
    h = bn_relu(h, g2_ref, bb2_ref)
    for b in range(B):
        o_ref[b] = h[:, b * N:(b + 1) * N].astype(o_ref.dtype)


def conv_block_forward(x_nchw, params):
    """x_nchw: (B, Cin, H, W) f32; params: packed params (see pack_params)."""
    B, Cin, H, W = x_nchw.shape
    N = H * W
    Cout = params["w1"].shape[0]
    cq = params["wqk"].shape[0] // 2
    cin_pad = params["w1"].shape[1] // 9
    x_flat = x_nchw.reshape(B, Cin, N)            # free view of the NCHW buffer
    if cin_pad != Cin:                            # pad to an f32 sublane group
        x_flat = jnp.pad(x_flat, ((0, 0), (0, cin_pad - Cin), (0, 0)))
    out = pl.pallas_call(
        functools.partial(_conv_block_kernel, H=H, W=W, cq=cq),
        out_shape=jax.ShapeDtypeStruct((B, Cout, N), jnp.float32),
        compiler_params=pltpu.CompilerParams(
            # Whole problem fits trivially at this size on v5e/v6e/v7x; for
            # larger images re-budget per generation (v7x VMEM is 64 MiB).
            vmem_limit_bytes=32 * 1024 * 1024),
    )(x_flat,
      params["w1"], params["b1"], params["bn1_g"], params["bn1_b"],
      params["wqk"], params["bqk"], params["wv"], params["bv"],
      params["pam_gamma"],
      params["w2"], params["b2"], params["bn2_g"], params["bn2_b"])
    return out.reshape(B, Cout, H, W)             # free view back to NCHW


# ---------------------------------------------------------------------------
# Parameters: "natural" PyTorch-like shapes + packing into kernel layout.
# ---------------------------------------------------------------------------
def init_params(key, in_ch, out_ch, scale=8):
    ks = jax.random.split(key, 10)
    cq = out_ch // scale

    def f(k, shp, fan_in):
        return jax.random.normal(k, shp, jnp.float32) / jnp.sqrt(jnp.float32(fan_in))

    return {
        "w1": f(ks[0], (out_ch, in_ch, 3, 3), 9 * in_ch),     # OIHW
        "b1": f(ks[1], (out_ch,), 9 * in_ch),
        "bn1_g": jnp.ones((out_ch,), jnp.float32),
        "bn1_b": jnp.zeros((out_ch,), jnp.float32),
        "wq": f(ks[2], (cq, out_ch), out_ch),                 # 1x1 conv (O, I)
        "bq": f(ks[3], (cq,), out_ch),
        "wk": f(ks[4], (cq, out_ch), out_ch),
        "bk": f(ks[5], (cq,), out_ch),
        "wv": f(ks[6], (out_ch, out_ch), out_ch),
        "bv": f(ks[7], (out_ch,), out_ch),
        "pam_gamma": jnp.zeros((), jnp.float32),              # zero-init (as PyTorch)
        "w2": f(ks[8], (out_ch, out_ch, 3, 3), 9 * out_ch),
        "b2": f(ks[9], (out_ch,), 9 * out_ch),
        "bn2_g": jnp.ones((out_ch,), jnp.float32),
        "bn2_b": jnp.zeros((out_ch,), jnp.float32),
    }


def pack_params(p):
    def pack_conv(w_oihw):
        # (O, I, 3, 3) -> (O, 9*Ipad): column index = (ky*3+kx)*Ipad + ci
        # (tap-major); input channels zero-padded to a multiple of 8 so each
        # im2col tap is a whole f32 sublane group.
        O, I = w_oihw.shape[0], w_oihw.shape[1]
        i_pad = _round_up(I, 8)
        w = jnp.transpose(w_oihw, (0, 2, 3, 1))               # (O, 3, 3, I)
        if i_pad != I:
            w = jnp.pad(w, ((0, 0), (0, 0), (0, 0), (0, i_pad - I)))
        return w.reshape(O, 9 * i_pad).astype(jnp.bfloat16)

    def col(v):
        return v.reshape(-1, 1).astype(jnp.float32)

    return {
        "w1": pack_conv(p["w1"]), "b1": col(p["b1"]),
        "bn1_g": col(p["bn1_g"]), "bn1_b": col(p["bn1_b"]),
        "wqk": jnp.concatenate([p["wq"], p["wk"]], axis=0).astype(jnp.bfloat16),
        "bqk": jnp.concatenate([col(p["bq"]), col(p["bk"])], axis=0),
        "wv": p["wv"].astype(jnp.bfloat16), "bv": col(p["bv"]),
        "pam_gamma": p["pam_gamma"].reshape(1, 1).astype(jnp.float32),
        "w2": pack_conv(p["w2"]), "b2": col(p["b2"]),
        "bn2_g": col(p["bn2_g"]), "bn2_b": col(p["bn2_b"]),
    }


# ---------------------------------------------------------------------------
# Pure-JAX reference (f32) for the numerical sanity check.
# ---------------------------------------------------------------------------
def _reference_forward(x, p):
    def conv(x, w, b):
        y = jax.lax.conv_general_dilated(
            x, w, (1, 1), "SAME", dimension_numbers=("NCHW", "OIHW", "NCHW"))
        return y + b[None, :, None, None]

    def bn_relu(x, g, bta):
        m = jnp.mean(x, axis=(0, 2, 3), keepdims=True)
        v = jnp.mean((x - m) ** 2, axis=(0, 2, 3), keepdims=True)
        y = (x - m) * jax.lax.rsqrt(v + 1e-5) * g[None, :, None, None] \
            + bta[None, :, None, None]
        return jnp.maximum(y, 0.0)

    def pam(x):
        B, C, H, W = x.shape
        N = H * W
        xf = x.reshape(B, C, N)
        q = jnp.einsum("oc,bcn->bon", p["wq"], xf) + p["bq"][None, :, None]
        k = jnp.einsum("oc,bcn->bon", p["wk"], xf) + p["bk"][None, :, None]
        v = jnp.einsum("oc,bcn->bon", p["wv"], xf) + p["bv"][None, :, None]
        qn = q / jnp.linalg.norm(q, axis=1, keepdims=True)
        kn = k / jnp.linalg.norm(k, axis=1, keepdims=True)
        tailor = 1.0 / (N + jnp.einsum("bmn,bm->bn", qn,
                                       jnp.sum(kn, axis=-1) + 1e-6))
        value_sum = jnp.sum(v, axis=-1, keepdims=True)
        matrix = jnp.einsum("bmn,bcn->bmc", kn, v)
        attn = jnp.einsum("bmn,bmc->bcn", qn, matrix)
        wvl = (value_sum + attn) * tailor[:, None, :]
        return x + p["pam_gamma"] * wvl.reshape(B, C, H, W)

    h = bn_relu(conv(x, p["w1"], p["b1"]), p["bn1_g"], p["bn1_b"])
    h = pam(h)
    h = bn_relu(conv(h, p["w2"], p["b2"]), p["bn2_g"], p["bn2_b"])
    return h


if __name__ == "__main__":
    B, in_ch, out_ch, H, W = 2, 4, 32, 16, 16      # out_ch divisible by scale=8
    key = jax.random.PRNGKey(0)
    kx, kp = jax.random.split(key)
    x = jax.random.normal(kx, (B, in_ch, H, W), jnp.float32)   # NCHW input
    nat_params = init_params(kp, in_ch, out_ch)
    # Nonzero gamma so the PAM attention path is actually exercised by the
    # numerical check (PyTorch zero-inits it, which would hide PAM entirely).
    nat_params["pam_gamma"] = jnp.float32(0.5)
    params = pack_params(nat_params)

    fwd = jax.jit(conv_block_forward)
    y = jax.block_until_ready(fwd(x, params))

    assert y.shape == (B, out_ch, H, W)
    assert bool(jnp.all(jnp.isfinite(y)))

    # Check vs pure-JAX f32 reference (kernel uses bf16 MXU operands).
    y_ref = _reference_forward(x, nat_params)
    max_err = float(jnp.max(jnp.abs(y - y_ref)))
    mean_err = float(jnp.mean(jnp.abs(y - y_ref)))
    assert max_err < 1e-1, f"mismatch vs reference: max abs err = {max_err}"
    assert mean_err < 3e-2, f"mismatch vs reference: mean abs err = {mean_err}"

    print("KERNEL_OK")
</pallas_src>

<mosaic_0001>
module attributes {stable_mosaic.version = 11 : i64} {
  func.func @_conv_block_kernel(%arg0: memref<2x8x256xf32, #tpu.memory_space<vmem>>, %arg1: memref<32x72xbf16, #tpu.memory_space<vmem>>, %arg2: memref<32x1xf32, #tpu.memory_space<vmem>>, %arg3: memref<32x1xf32, #tpu.memory_space<vmem>>, %arg4: memref<32x1xf32, #tpu.memory_space<vmem>>, %arg5: memref<8x32xbf16, #tpu.memory_space<vmem>>, %arg6: memref<8x1xf32, #tpu.memory_space<vmem>>, %arg7: memref<32x32xbf16, #tpu.memory_space<vmem>>, %arg8: memref<32x1xf32, #tpu.memory_space<vmem>>, %arg9: memref<1x1xf32, #tpu.memory_space<vmem>>, %arg10: memref<32x288xbf16, #tpu.memory_space<vmem>>, %arg11: memref<32x1xf32, #tpu.memory_space<vmem>>, %arg12: memref<32x1xf32, #tpu.memory_space<vmem>>, %arg13: memref<32x1xf32, #tpu.memory_space<vmem>>, %arg14: memref<2x32x256xf32, #tpu.memory_space<vmem>>) attributes {dimension_semantics = [], scalar_prefetch = 0 : i64, scratch_operands = 0 : i64, tpu.core_type = #tpu.core_type<tc>} {
    %c0 = arith.constant 0 : index
    %c0_0 = arith.constant 0 : index
    %c0_1 = arith.constant 0 : index
    %0 = vector.load %arg0[%c0, %c0_0, %c0_1] : memref<2x8x256xf32, #tpu.memory_space<vmem>>, vector<1x8x256xf32>
    %1 = vector.shape_cast %0 : vector<1x8x256xf32> to vector<8x256xf32>
    %c1 = arith.constant 1 : index
    %c0_2 = arith.constant 0 : index
    %c0_3 = arith.constant 0 : index
    %2 = vector.load %arg0[%c1, %c0_2, %c0_3] : memref<2x8x256xf32, #tpu.memory_space<vmem>>, vector<1x8x256xf32>
    %3 = vector.shape_cast %2 : vector<1x8x256xf32> to vector<8x256xf32>
    %4 = tpu.concatenate %1, %3 in 1 : vector<8x256xf32>, vector<8x256xf32> -> vector<8x512xf32>
    %5 = tpu.iota {dimensions = array<i32: 1>} : vector<1x512xi32>
    %c255_i32 = arith.constant 255 : i32
    %6 = vector.broadcast %c255_i32 : i32 to vector<1x512xi32>
    %7 = arith.andi %5, %6 : vector<1x512xi32>
    %c15_i32 = arith.constant 15 : i32
    %8 = vector.broadcast %c15_i32 : i32 to vector<1x512xi32>
    %9 = arith.andi %7, %8 : vector<1x512xi32>
    %c16_i32 = arith.constant 16 : i32
    %10 = vector.broadcast %c16_i32 : i32 to vector<1x512xi32>
    %11 = arith.cmpi sge, %7, %10 : vector<1x512xi32>
    %c1_i32 = arith.constant 1 : i32
    %12 = vector.broadcast %c1_i32 : i32 to vector<1x512xi32>
    %13 = arith.cmpi sge, %9, %12 : vector<1x512xi32>
    %14 = arith.andi %11, %13 : vector<1x512xi1>
    %c16_i32_4 = arith.constant 16 : i32
    %15 = vector.broadcast %c16_i32_4 : i32 to vector<1x512xi32>
    %16 = arith.cmpi sge, %7, %15 : vector<1x512xi32>
    %c16_i32_5 = arith.constant 16 : i32
    %17 = vector.broadcast %c16_i32_5 : i32 to vector<1x512xi32>
    %18 = arith.cmpi sge, %7, %17 : vector<1x512xi32>
    %c15_i32_6 = arith.constant 15 : i32
    %19 = vector.broadcast %c15_i32_6 : i32 to vector<1x512xi32>
    %20 = arith.cmpi slt, %9, %19 : vector<1x512xi32>
    %21 = arith.andi %18, %20 : vector<1x512xi1>
    %c1_i32_7 = arith.constant 1 : i32
    %22 = vector.broadcast %c1_i32_7 : i32 to vector<1x512xi32>
    %23 = arith.cmpi sge, %9, %22 : vector<1x512xi32>
    %c15_i32_8 = arith.constant 15 : i32
    %24 = vector.broadcast %c15_i32_8 : i32 to vector<1x512xi32>
    %25 = arith.cmpi slt, %9, %24 : vector<1x512xi32>
    %c240_i32 = arith.constant 240 : i32
    %26 = vector.broadcast %c240_i32 : i32 to vector<1x512xi32>
    %27 = arith.cmpi slt, %7, %26 : vector<1x512xi32>
    %c1_i32_9 = arith.constant 1 : i32
    %28 = vector.broadcast %c1_i32_9 : i32 to vector<1x512xi32>
    %29 = arith.cmpi sge, %9, %28 : vector<1x512xi32>
    %30 = arith.andi %27, %29 : vector<1x512xi1>
    %c240_i32_10 = arith.constant 240 : i32
    %31 = vector.broadcast %c240_i32_10 : i32 to vector<1x512xi32>
    %32 = arith.cmpi slt, %7, %31 : vector<1x512xi32>
    %c240_i32_11 = arith.constant 240 : i32
    %33 = vector.broadcast %c240_i32_11 : i32 to vector<1x512xi32>
    %34 = arith.cmpi slt, %7, %33 : vector<1x512xi32>
    %c15_i32_12 = arith.constant 15 : i32
    %35 = vector.broadcast %c15_i32_12 : i32 to vector<1x512xi32>
    %36 = arith.cmpi slt, %9, %35 : vector<1x512xi32>
    %37 = arith.andi %34, %36 : vector<1x512xi1>
    %c0_13 = arith.constant 0 : index
    %c0_14 = arith.constant 0 : index
    %38 = vector.load %arg9[%c0_13, %c0_14] : memref<1x1xf32, #tpu.memory_space<vmem>>, vector<1x1xf32>
    %c17_i32 = arith.constant 17 : i32
    %39 = tpu.dynamic_rotate %4 by %c17_i32 dim 1 : vector<8x512xf32>, i32 -> vector<8x512xf32>
    %cst = arith.constant 0.000000e+00 : f32
    %40 = vector.shape_cast %14 : vector<1x512xi1> to vector<1x512xi1>
    %41 = vector.broadcast %40 : vector<1x512xi1> to vector<8x512xi1>
    %42 = vector.broadcast %cst : f32 to vector<8x512xf32>
    %43 = arith.select %41, %39, %42 : vector<8x512xi1>, vector<8x512xf32>
    %c16_i32_15 = arith.constant 16 : i32
    %44 = tpu.dynamic_rotate %4 by %c16_i32_15 dim 1 : vector<8x512xf32>, i32 -> vector<8x512xf32>
    %cst_16 = arith.constant 0.000000e+00 : f32
    %45 = vector.shape_cast %16 : vector<1x512xi1> to vector<1x512xi1>
    %46 = vector.broadcast %45 : vector<1x512xi1> to vector<8x512xi1>
    %47 = vector.broadcast %cst_16 : f32 to vector<8x512xf32>
    %48 = arith.select %46, %44, %47 : vector<8x512xi1>, vector<8x512xf32>
    %c15_i32_17 = arith.constant 15 : i32
    %49 = tpu.dynamic_rotate %4 by %c15_i32_17 dim 1 : vector<8x512xf32>, i32 -> vector<8x512xf32>
    %cst_18 = arith.constant 0.000000e+00 : f32
    %50 = vector.shape_cast %21 : vector<1x512xi1> to vector<1x512xi1>
    %51 = vector.broadcast %50 : vector<1x512xi1> to vector<8x512xi1>
    %52 = vector.broadcast %cst_18 : f32 to vector<8x512xf32>
    %53 = arith.select %51, %49, %52 : vector<8x512xi1>, vector<8x512xf32>
    %c1_i32_19 = arith.constant 1 : i32
    %54 = tpu.dynamic_rotate %4 by %c1_i32_19 dim 1 : vector<8x512xf32>, i32 -> vector<8x512xf32>
    %cst_20 = arith.constant 0.000000e+00 : f32
    %55 = vector.shape_cast %23 : vector<1x512xi1> to vector<1x512xi1>
    %56 = vector.broadcast %55 : vector<1x512xi1> to vector<8x512xi1>
    %57 = vector.broadcast %cst_20 : f32 to vector<8x512xf32>
    %58 = arith.select %56, %54, %57 : vector<8x512xi1>, vector<8x512xf32>
    %c511_i32 = arith.constant 511 : i32
    %59 = tpu.dynamic_rotate %4 by %c511_i32 dim 1 : vector<8x512xf32>, i32 -> vector<8x512xf32>
    %cst_21 = arith.constant 0.000000e+00 : f32
    %60 = vector.shape_cast %25 : vector<1x512xi1> to vector<1x512xi1>
    %61 = vector.broadcast %60 : vector<1x512xi1> to vector<8x512xi1>
    %62 = vector.broadcast %cst_21 : f32 to vector<8x512xf32>
    %63 = arith.select %61, %59, %62 : vector<8x512xi1>, vector<8x512xf32>
    %c497_i32 = arith.constant 497 : i32
    %64 = tpu.dynamic_rotate %4 by %c497_i32 dim 1 : vector<8x512xf32>, i32 -> vector<8x512xf32>
    %cst_22 = arith.constant 0.000000e+00 : f32
    %65 = vector.shape_cast %30 : vector<1x512xi1> to vector<1x512xi1>
    %66 = vector.broadcast %65 : vector<1x512xi1> to vector<8x512xi1>
    %67 = vector.broadcast %cst_22 : f32 to vector<8x512xf32>
    %68 = arith.select %66, %64, %67 : vector<8x512xi1>, vector<8x512xf32>
    %c496_i32 = arith.constant 496 : i32
    %69 = tpu.dynamic_rotate %4 by %c496_i32 dim 1 : vector<8x512xf32>, i32 -> vector<8x512xf32>
    %cst_23 = arith.constant 0.000000e+00 : f32
    %70 = vector.shape_cast %32 : vector<1x512xi1> to vector<1x512xi1>
    %71 = vector.broadcast %70 : vector<1x512xi1> to vector<8x512xi1>
    %72 = vector.broadcast %cst_23 : f32 to vector<8x512xf32>
    %73 = arith.select %71, %69, %72 : vector<8x512xi1>, vector<8x512xf32>
    %c495_i32 = arith.constant 495 : i32
    %74 = tpu.dynamic_rotate %4 by %c495_i32 dim 1 : vector<8x512xf32>, i32 -> vector<8x512xf32>
    %cst_24 = arith.constant 0.000000e+00 : f32
    %75 = vector.shape_cast %37 : vector<1x512xi1> to vector<1x512xi1>
    %76 = vector.broadcast %75 : vector<1x512xi1> to vector<8x512xi1>
    %77 = vector.broadcast %cst_24 : f32 to vector<8x512xf32>
    %78 = arith.select %76, %74, %77 : vector<8x512xi1>, vector<8x512xf32>
    %79 = tpu.concatenate %43, %48, %53, %58, %4, %63, %68, %73, %78 in 0 : vector<8x512xf32>, vector<8x512xf32>, vector<8x512xf32>, vector<8x512xf32>, vector<8x512xf32>, vector<8x512xf32>, vector<8x512xf32>, vector<8x512xf32>, vector<8x512xf32> -> vector<72x512xf32>
    %80 = arith.truncf %79 : vector<72x512xf32> to vector<72x512xbf16>
    %c0_25 = arith.constant 0 : index
    %c0_26 = arith.constant 0 : index
    %81 = vector.load %arg1[%c0_25, %c0_26] : memref<32x72xbf16, #tpu.memory_space<vmem>>, vector<32x72xbf16>
    %cst_27 = arith.constant dense<0.000000e+00> : vector<32x512xf32>
    %82 = tpu.matmul %81, %80, %cst_27 {dimension_numbers = #tpu.dot_dimension_numbers<[1], [0], [0], [1], [0, 0, 1, 1], [], []>} : vector<32x72xbf16>, vector<72x512xbf16>, vector<32x512xf32> -> vector<32x512xf32>
    %c0_28 = arith.constant 0 : index
    %c0_29 = arith.constant 0 : index
    %83 = vector.load %arg2[%c0_28, %c0_29] : memref<32x1xf32, #tpu.memory_space<vmem>>, vector<32x1xf32>
    %84 = vector.broadcast %83 : vector<32x1xf32> to vector<32x512xf32>
    %85 = arith.addf %82, %84 : vector<32x512xf32>
    %cst_30 = arith.constant dense<0.000000e+00> : vector<32xf32>
    %86 = vector.multi_reduction <add>, %85, %cst_30 [1] : vector<32x512xf32> to vector<32xf32>
    %87 = vector.shape_cast %86 : vector<32xf32> to vector<32x1xf32>
    %cst_31 = arith.constant 0.001953125 : f32
    %88 = vector.broadcast %cst_31 : f32 to vector<32x1xf32>
    %89 = arith.mulf %87, %88 : vector<32x1xf32>
    %90 = arith.mulf %85, %85 : vector<32x512xf32>
    %cst_32 = arith.constant dense<0.000000e+00> : vector<32xf32>
    %91 = vector.multi_reduction <add>, %90, %cst_32 [1] : vector<32x512xf32> to vector<32xf32>
    %92 = vector.shape_cast %91 : vector<32xf32> to vector<32x1xf32>
    %cst_33 = arith.constant 0.001953125 : f32
    %93 = vector.broadcast %cst_33 : f32 to vector<32x1xf32>
    %94 = arith.mulf %92, %93 : vector<32x1xf32>
    %95 = arith.mulf %89, %89 : vector<32x1xf32>
    %96 = arith.subf %94, %95 : vector<32x1xf32>
    %cst_34 = arith.constant 0.000000e+00 : f32
    %97 = vector.broadcast %cst_34 : f32 to vector<32x1xf32>
    %98 = arith.maximumf %96, %97 : vector<32x1xf32>
    %cst_35 = arith.constant 9.99999974E-6 : f32
    %99 = vector.broadcast %cst_35 : f32 to vector<32x1xf32>
    %100 = arith.addf %98, %99 : vector<32x1xf32>
    %101 = math.rsqrt %100 : vector<32x1xf32>
    %c0_36 = arith.constant 0 : index
    %c0_37 = arith.constant 0 : index
    %102 = vector.load %arg3[%c0_36, %c0_37] : memref<32x1xf32, #tpu.memory_space<vmem>>, vector<32x1xf32>
    %103 = arith.mulf %101, %102 : vector<32x1xf32>
    %c0_38 = arith.constant 0 : index
    %c0_39 = arith.constant 0 : index
    %104 = vector.load %arg4[%c0_38, %c0_39] : memref<32x1xf32, #tpu.memory_space<vmem>>, vector<32x1xf32>
    %105 = arith.mulf %89, %103 : vector<32x1xf32>
    %106 = arith.subf %104, %105 : vector<32x1xf32>
    %107 = vector.broadcast %103 : vector<32x1xf32> to vector<32x512xf32>
    %108 = arith.mulf %85, %107 : vector<32x512xf32>
    %109 = vector.broadcast %106 : vector<32x1xf32> to vector<32x512xf32>
    %110 = arith.addf %108, %109 : vector<32x512xf32>
    %cst_40 = arith.constant 0.000000e+00 : f32
    %111 = vector.broadcast %cst_40 : f32 to vector<32x512xf32>
    %112 = arith.maximumf %110, %111 : vector<32x512xf32>
    %113 = arith.truncf %112 : vector<32x512xf32> to vector<32x512xbf16>
    %c0_41 = arith.constant 0 : index
    %c0_42 = arith.constant 0 : index
    %114 = vector.load %arg5[%c0_41, %c0_42] : memref<8x32xbf16, #tpu.memory_space<vmem>>, vector<8x32xbf16>
    %cst_43 = arith.constant dense<0.000000e+00> : vector<8x512xf32>
    %115 = tpu.matmul %114, %113, %cst_43 {dimension_numbers = #tpu.dot_dimension_numbers<[1], [0], [0], [1], [0, 0, 1, 1], [], []>} : vector<8x32xbf16>, vector<32x512xbf16>, vector<8x512xf32> -> vector<8x512xf32>
    %c0_44 = arith.constant 0 : index
    %c0_45 = arith.constant 0 : index
    %116 = vector.load %arg6[%c0_44, %c0_45] : memref<8x1xf32, #tpu.memory_space<vmem>>, vector<8x1xf32>
    %117 = vector.broadcast %116 : vector<8x1xf32> to vector<8x512xf32>
    %118 = arith.addf %115, %117 : vector<8x512xf32>
    %c0_46 = arith.constant 0 : index
    %c0_47 = arith.constant 0 : index
    %119 = vector.load %arg7[%c0_46, %c0_47] : memref<32x32xbf16, #tpu.memory_space<vmem>>, vector<32x32xbf16>
    %cst_48 = arith.constant dense<0.000000e+00> : vector<32x512xf32>
    %120 = tpu.matmul %119, %113, %cst_48 {dimension_numbers = #tpu.dot_dimension_numbers<[1], [0], [0], [1], [0, 0, 1, 1], [], []>} : vector<32x32xbf16>, vector<32x512xbf16>, vector<32x512xf32> -> vector<32x512xf32>
    %c0_49 = arith.constant 0 : index
    %c0_50 = arith.constant 0 : index
    %121 = vector.load %arg8[%c0_49, %c0_50] : memref<32x1xf32, #tpu.memory_space<vmem>>, vector<32x1xf32>
    %122 = vector.broadcast %121 : vector<32x1xf32> to vector<32x512xf32>
    %123 = arith.addf %120, %122 : vector<32x512xf32>
    %124 = vector.extract_strided_slice %118 {offsets = [0, 0], sizes = [4, 512], strides = [1, 1]} : vector<8x512xf32> to vector<4x512xf32>
    %125 = vector.extract_strided_slice %118 {offsets = [4, 0], sizes = [4, 512], strides = [1, 1]} : vector<8x512xf32> to vector<4x512xf32>
    %126 = arith.mulf %124, %124 : vector<4x512xf32>
    %cst_51 = arith.constant dense<0.000000e+00> : vector<512xf32>
    %127 = vector.multi_reduction <add>, %126, %cst_51 [0] : vector<4x512xf32> to vector<512xf32>
    %128 = vector.shape_cast %127 : vector<512xf32> to vector<1x512xf32>
    %129 = math.rsqrt %128 : vector<1x512xf32>
    %130 = vector.broadcast %129 : vector<1x512xf32> to vector<4x512xf32>
    %131 = arith.mulf %124, %130 : vector<4x512xf32>
    %132 = arith.mulf %125, %125 : vector<4x512xf32>
    %cst_52 = arith.constant dense<0.000000e+00> : vector<512xf32>
    %133 = vector.multi_reduction <add>, %132, %cst_52 [0] : vector<4x512xf32> to vector<512xf32>
    %134 = vector.shape_cast %133 : vector<512xf32> to vector<1x512xf32>
    %135 = math.rsqrt %134 : vector<1x512xf32>
    %136 = vector.broadcast %135 : vector<1x512xf32> to vector<4x512xf32>
    %137 = arith.mulf %125, %136 : vector<4x512xf32>
    %138 = vector.extract_strided_slice %131 {offsets = [0, 0], sizes = [4, 256], strides = [1, 1]} : vector<4x512xf32> to vector<4x256xf32>
    %139 = vector.extract_strided_slice %137 {offsets = [0, 0], sizes = [4, 256], strides = [1, 1]} : vector<4x512xf32> to vector<4x256xf32>
    %140 = vector.extract_strided_slice %123 {offsets = [0, 0], sizes = [32, 256], strides = [1, 1]} : vector<32x512xf32> to vector<32x256xf32>
    %cst_53 = arith.constant dense<0.000000e+00> : vector<4xf32>
    %141 = vector.multi_reduction <add>, %139, %cst_53 [1] : vector<4x256xf32> to vector<4xf32>
    %142 = vector.shape_cast %141 : vector<4xf32> to vector<4x1xf32>
    %cst_54 = arith.constant 9.99999997E-7 : f32
    %143 = vector.broadcast %cst_54 : f32 to vector<4x1xf32>
    %144 = arith.addf %142, %143 : vector<4x1xf32>
    %145 = vector.broadcast %144 : vector<4x1xf32> to vector<4x256xf32>
    %146 = arith.mulf %138, %145 : vector<4x256xf32>
    %cst_55 = arith.constant dense<0.000000e+00> : vector<256xf32>
    %147 = vector.multi_reduction <add>, %146, %cst_55 [0] : vector<4x256xf32> to vector<256xf32>
    %148 = vector.shape_cast %147 : vector<256xf32> to vector<1x256xf32>
    %cst_56 = arith.constant 2.560000e+02 : f32
    %149 = vector.broadcast %cst_56 : f32 to vector<1x256xf32>
    %150 = arith.addf %149, %148 : vector<1x256xf32>
    %151 = tpu.reciprocal %150 {approx = true} : vector<1x256xf32> -> vector<1x256xf32>
    %cst_57 = arith.constant dense<0.000000e+00> : vector<32xf32>
    %152 = vector.multi_reduction <add>, %140, %cst_57 [1] : vector<32x256xf32> to vector<32xf32>
    %153 = vector.shape_cast %152 : vector<32xf32> to vector<32x1xf32>
    %cst_58 = arith.constant 0.000000e+00 : f32
    %154 = vector.broadcast %cst_58 : f32 to vector<32x256xf32>
    %155 = vector.extract_strided_slice %139 {offsets = [0, 0], sizes = [1, 256], strides = [1, 1]} : vector<4x256xf32> to vector<1x256xf32>
    %156 = vector.broadcast %155 : vector<1x256xf32> to vector<32x256xf32>
    %157 = arith.mulf %140, %156 : vector<32x256xf32>
    %cst_59 = arith.constant dense<0.000000e+00> : vector<32xf32>
    %158 = vector.multi_reduction <add>, %157, %cst_59 [1] : vector<32x256xf32> to vector<32xf32>
    %159 = vector.shape_cast %158 : vector<32xf32> to vector<32x1xf32>
    %160 = vector.extract_strided_slice %138 {offsets = [0, 0], sizes = [1, 256], strides = [1, 1]} : vector<4x256xf32> to vector<1x256xf32>
    %161 = vector.broadcast %159 : vector<32x1xf32> to vector<32x256xf32>
    %162 = vector.broadcast %160 : vector<1x256xf32> to vector<32x256xf32>
    %163 = arith.mulf %161, %162 : vector<32x256xf32>
    %164 = arith.addf %154, %163 : vector<32x256xf32>
    %165 = vector.extract_strided_slice %139 {offsets = [1, 0], sizes = [1, 256], strides = [1, 1]} : vector<4x256xf32> to vector<1x256xf32>
    %166 = vector.broadcast %165 : vector<1x256xf32> to vector<32x256xf32>
    %167 = arith.mulf %140, %166 : vector<32x256xf32>
    %cst_60 = arith.constant dense<0.000000e+00> : vector<32xf32>
    %168 = vector.multi_reduction <add>, %167, %cst_60 [1] : vector<32x256xf32> to vector<32xf32>
    %169 = vector.shape_cast %168 : vector<32xf32> to vector<32x1xf32>
    %170 = vector.extract_strided_slice %138 {offsets = [1, 0], sizes = [1, 256], strides = [1, 1]} : vector<4x256xf32> to vector<1x256xf32>
    %171 = vector.broadcast %169 : vector<32x1xf32> to vector<32x256xf32>
    %172 = vector.broadcast %170 : vector<1x256xf32> to vector<32x256xf32>
    %173 = arith.mulf %171, %172 : vector<32x256xf32>
    %174 = arith.addf %164, %173 : vector<32x256xf32>
    %175 = vector.extract_strided_slice %139 {offsets = [2, 0], sizes = [1, 256], strides = [1, 1]} : vector<4x256xf32> to vector<1x256xf32>
    %176 = vector.broadcast %175 : vector<1x256xf32> to vector<32x256xf32>
    %177 = arith.mulf %140, %176 : vector<32x256xf32>
    %cst_61 = arith.constant dense<0.000000e+00> : vector<32xf32>
    %178 = vector.multi_reduction <add>, %177, %cst_61 [1] : vector<32x256xf32> to vector<32xf32>
    %179 = vector.shape_cast %178 : vector<32xf32> to vector<32x1xf32>
    %180 = vector.extract_strided_slice %138 {offsets = [2, 0], sizes = [1, 256], strides = [1, 1]} : vector<4x256xf32> to vector<1x256xf32>
    %181 = vector.broadcast %179 : vector<32x1xf32> to vector<32x256xf32>
    %182 = vector.broadcast %180 : vector<1x256xf32> to vector<32x256xf32>
    %183 = arith.mulf %181, %182 : vector<32x256xf32>
    %184 = arith.addf %174, %183 : vector<32x256xf32>
    %185 = vector.extract_strided_slice %139 {offsets = [3, 0], sizes = [1, 256], strides = [1, 1]} : vector<4x256xf32> to vector<1x256xf32>
    %186 = vector.broadcast %185 : vector<1x256xf32> to vector<32x256xf32>
    %187 = arith.mulf %140, %186 : vector<32x256xf32>
    %cst_62 = arith.constant dense<0.000000e+00> : vector<32xf32>
    %188 = vector.multi_reduction <add>, %187, %cst_62 [1] : vector<32x256xf32> to vector<32xf32>
    %189 = vector.shape_cast %188 : vector<32xf32> to vector<32x1xf32>
    %190 = vector.extract_strided_slice %138 {offsets = [3, 0], sizes = [1, 256], strides = [1, 1]} : vector<4x256xf32> to vector<1x256xf32>
    %191 = vector.broadcast %189 : vector<32x1xf32> to vector<32x256xf32>
    %192 = vector.broadcast %190 : vector<1x256xf32> to vector<32x256xf32>
    %193 = arith.mulf %191, %192 : vector<32x256xf32>
    %194 = arith.addf %184, %193 : vector<32x256xf32>
    %195 = vector.broadcast %153 : vector<32x1xf32> to vector<32x256xf32>
    %196 = arith.addf %195, %194 : vector<32x256xf32>
    %197 = vector.broadcast %151 : vector<1x256xf32> to vector<32x256xf32>
    %198 = arith.mulf %196, %197 : vector<32x256xf32>
    %199 = vector.extract_strided_slice %131 {offsets = [0, 256], sizes = [4, 256], strides = [1, 1]} : vector<4x512xf32> to vector<4x256xf32>
    %200 = vector.extract_strided_slice %137 {offsets = [0, 256], sizes = [4, 256], strides = [1, 1]} : vector<4x512xf32> to vector<4x256xf32>
    %201 = vector.extract_strided_slice %123 {offsets = [0, 256], sizes = [32, 256], strides = [1, 1]} : vector<32x512xf32> to vector<32x256xf32>
    %cst_63 = arith.constant dense<0.000000e+00> : vector<4xf32>
    %202 = vector.multi_reduction <add>, %200, %cst_63 [1] : vector<4x256xf32> to vector<4xf32>
    %203 = vector.shape_cast %202 : vector<4xf32> to vector<4x1xf32>
    %cst_64 = arith.constant 9.99999997E-7 : f32
    %204 = vector.broadcast %cst_64 : f32 to vector<4x1xf32>
    %205 = arith.addf %203, %204 : vector<4x1xf32>
    %206 = vector.broadcast %205 : vector<4x1xf32> to vector<4x256xf32>
    %207 = arith.mulf %199, %206 : vector<4x256xf32>
    %cst_65 = arith.constant dense<0.000000e+00> : vector<256xf32>
    %208 = vector.multi_reduction <add>, %207, %cst_65 [0] : vector<4x256xf32> to vector<256xf32>
    %209 = vector.shape_cast %208 : vector<256xf32> to vector<1x256xf32>
    %cst_66 = arith.constant 2.560000e+02 : f32
    %210 = vector.broadcast %cst_66 : f32 to vector<1x256xf32>
    %211 = arith.addf %210, %209 : vector<1x256xf32>
    %212 = tpu.reciprocal %211 {approx = true} : vector<1x256xf32> -> vector<1x256xf32>
    %cst_67 = arith.constant dense<0.000000e+00> : vector<32xf32>
    %213 = vector.multi_reduction <add>, %201, %cst_67 [1] : vector<32x256xf32> to vector<32xf32>
    %214 = vector.shape_cast %213 : vector<32xf32> to vector<32x1xf32>
    %cst_68 = arith.constant 0.000000e+00 : f32
    %215 = vector.broadcast %cst_68 : f32 to vector<32x256xf32>
    %216 = vector.extract_strided_slice %200 {offsets = [0, 0], sizes = [1, 256], strides = [1, 1]} : vector<4x256xf32> to vector<1x256xf32>
    %217 = vector.broadcast %216 : vector<1x256xf32> to vector<32x256xf32>
    %218 = arith.mulf %201, %217 : vector<32x256xf32>
    %cst_69 = arith.constant dense<0.000000e+00> : vector<32xf32>
    %219 = vector.multi_reduction <add>, %218, %cst_69 [1] : vector<32x256xf32> to vector<32xf32>
    %220 = vector.shape_cast %219 : vector<32xf32> to vector<32x1xf32>
    %221 = vector.extract_strided_slice %199 {offsets = [0, 0], sizes = [1, 256], strides = [1, 1]} : vector<4x256xf32> to vector<1x256xf32>
    %222 = vector.broadcast %220 : vector<32x1xf32> to vector<32x256xf32>
    %223 = vector.broadcast %221 : vector<1x256xf32> to vector<32x256xf32>
    %224 = arith.mulf %222, %223 : vector<32x256xf32>
    %225 = arith.addf %215, %224 : vector<32x256xf32>
    %226 = vector.extract_strided_slice %200 {offsets = [1, 0], sizes = [1, 256], strides = [1, 1]} : vector<4x256xf32> to vector<1x256xf32>
    %227 = vector.broadcast %226 : vector<1x256xf32> to vector<32x256xf32>
    %228 = arith.mulf %201, %227 : vector<32x256xf32>
    %cst_70 = arith.constant dense<0.000000e+00> : vector<32xf32>
    %229 = vector.multi_reduction <add>, %228, %cst_70 [1] : vector<32x256xf32> to vector<32xf32>
    %230 = vector.shape_cast %229 : vector<32xf32> to vector<32x1xf32>
    %231 = vector.extract_strided_slice %199 {offsets = [1, 0], sizes = [1, 256], strides = [1, 1]} : vector<4x256xf32> to vector<1x256xf32>
    %232 = vector.broadcast %230 : vector<32x1xf32> to vector<32x256xf32>
    %233 = vector.broadcast %231 : vector<1x256xf32> to vector<32x256xf32>
    %234 = arith.mulf %232, %233 : vector<32x256xf32>
    %235 = arith.addf %225, %234 : vector<32x256xf32>
    %236 = vector.extract_strided_slice %200 {offsets = [2, 0], sizes = [1, 256], strides = [1, 1]} : vector<4x256xf32> to vector<1x256xf32>
    %237 = vector.broadcast %236 : vector<1x256xf32> to vector<32x256xf32>
    %238 = arith.mulf %201, %237 : vector<32x256xf32>
    %cst_71 = arith.constant dense<0.000000e+00> : vector<32xf32>
    %239 = vector.multi_reduction <add>, %238, %cst_71 [1] : vector<32x256xf32> to vector<32xf32>
    %240 = vector.shape_cast %239 : vector<32xf32> to vector<32x1xf32>
    %241 = vector.extract_strided_slice %199 {offsets = [2, 0], sizes = [1, 256], strides = [1, 1]} : vector<4x256xf32> to vector<1x256xf32>
    %242 = vector.broadcast %240 : vector<32x1xf32> to vector<32x256xf32>
    %243 = vector.broadcast %241 : vector<1x256xf32> to vector<32x256xf32>
    %244 = arith.mulf %242, %243 : vector<32x256xf32>
    %245 = arith.addf %235, %244 : vector<32x256xf32>
    %246 = vector.extract_strided_slice %200 {offsets = [3, 0], sizes = [1, 256], strides = [1, 1]} : vector<4x256xf32> to vector<1x256xf32>
    %247 = vector.broadcast %246 : vector<1x256xf32> to vector<32x256xf32>
    %248 = arith.mulf %201, %247 : vector<32x256xf32>
    %cst_72 = arith.constant dense<0.000000e+00> : vector<32xf32>
    %249 = vector.multi_reduction <add>, %248, %cst_72 [1] : vector<32x256xf32> to vector<32xf32>
    %250 = vector.shape_cast %249 : vector<32xf32> to vector<32x1xf32>
    %251 = vector.extract_strided_slice %199 {offsets = [3, 0], sizes = [1, 256], strides = [1, 1]} : vector<4x256xf32> to vector<1x256xf32>
    %252 = vector.broadcast %250 : vector<32x1xf32> to vector<32x256xf32>
    %253 = vector.broadcast %251 : vector<1x256xf32> to vector<32x256xf32>
    %254 = arith.mulf %252, %253 : vector<32x256xf32>
    %255 = arith.addf %245, %254 : vector<32x256xf32>
    %256 = vector.broadcast %214 : vector<32x1xf32> to vector<32x256xf32>
    %257 = arith.addf %256, %255 : vector<32x256xf32>
    %258 = vector.broadcast %212 : vector<1x256xf32> to vector<32x256xf32>
    %259 = arith.mulf %257, %258 : vector<32x256xf32>
    %260 = tpu.concatenate %198, %259 in 1 : vector<32x256xf32>, vector<32x256xf32> -> vector<32x512xf32>
    %261 = vector.broadcast %38 : vector<1x1xf32> to vector<32x512xf32>
    %262 = arith.mulf %261, %260 : vector<32x512xf32>
    %263 = arith.addf %112, %262 : vector<32x512xf32>
    %c17_i32_73 = arith.constant 17 : i32
    %264 = tpu.dynamic_rotate %263 by %c17_i32_73 dim 1 : vector<32x512xf32>, i32 -> vector<32x512xf32>
    %cst_74 = arith.constant 0.000000e+00 : f32
    %265 = vector.shape_cast %14 : vector<1x512xi1> to vector<1x512xi1>
    %266 = vector.broadcast %265 : vector<1x512xi1> to vector<32x512xi1>
    %267 = vector.broadcast %cst_74 : f32 to vector<32x512xf32>
    %268 = arith.select %266, %264, %267 : vector<32x512xi1>, vector<32x512xf32>
    %269 = arith.truncf %268 : vector<32x512xf32> to vector<32x512xbf16>
    %c16_i32_75 = arith.constant 16 : i32
    %270 = tpu.dynamic_rotate %263 by %c16_i32_75 dim 1 : vector<32x512xf32>, i32 -> vector<32x512xf32>
    %cst_76 = arith.constant 0.000000e+00 : f32
    %271 = vector.shape_cast %16 : vector<1x512xi1> to vector<1x512xi1>
    %272 = vector.broadcast %271 : vector<1x512xi1> to vector<32x512xi1>
    %273 = vector.broadcast %cst_76 : f32 to vector<32x512xf32>
    %274 = arith.select %272, %270, %273 : vector<32x512xi1>, vector<32x512xf32>
    %275 = arith.truncf %274 : vector<32x512xf32> to vector<32x512xbf16>
    %c15_i32_77 = arith.constant 15 : i32
    %276 = tpu.dynamic_rotate %263 by %c15_i32_77 dim 1 : vector<32x512xf32>, i32 -> vector<32x512xf32>
    %cst_78 = arith.constant 0.000000e+00 : f32
    %277 = vector.shape_cast %21 : vector<1x512xi1> to vector<1x512xi1>
    %278 = vector.broadcast %277 : vector<1x512xi1> to vector<32x512xi1>
    %279 = vector.broadcast %cst_78 : f32 to vector<32x512xf32>
    %280 = arith.select %278, %276, %279 : vector<32x512xi1>, vector<32x512xf32>
    %281 = arith.truncf %280 : vector<32x512xf32> to vector<32x512xbf16>
    %c1_i32_79 = arith.constant 1 : i32
    %282 = tpu.dynamic_rotate %263 by %c1_i32_79 dim 1 : vector<32x512xf32>, i32 -> vector<32x512xf32>
    %cst_80 = arith.constant 0.000000e+00 : f32
    %283 = vector.shape_cast %23 : vector<1x512xi1> to vector<1x512xi1>
    %284 = vector.broadcast %283 : vector<1x512xi1> to vector<32x512xi1>
    %285 = vector.broadcast %cst_80 : f32 to vector<32x512xf32>
    %286 = arith.select %284, %282, %285 : vector<32x512xi1>, vector<32x512xf32>
    %287 = arith.truncf %286 : vector<32x512xf32> to vector<32x512xbf16>
    %288 = arith.truncf %263 : vector<32x512xf32> to vector<32x512xbf16>
    %c511_i32_81 = arith.constant 511 : i32
    %289 = tpu.dynamic_rotate %263 by %c511_i32_81 dim 1 : vector<32x512xf32>, i32 -> vector<32x512xf32>
    %cst_82 = arith.constant 0.000000e+00 : f32
    %290 = vector.shape_cast %25 : vector<1x512xi1> to vector<1x512xi1>
    %291 = vector.broadcast %290 : vector<1x512xi1> to vector<32x512xi1>
    %292 = vector.broadcast %cst_82 : f32 to vector<32x512xf32>
    %293 = arith.select %291, %289, %292 : vector<32x512xi1>, vector<32x512xf32>
    %294 = arith.truncf %293 : vector<32x512xf32> to vector<32x512xbf16>
    %c497_i32_83 = arith.constant 497 : i32
    %295 = tpu.dynamic_rotate %263 by %c497_i32_83 dim 1 : vector<32x512xf32>, i32 -> vector<32x512xf32>
    %cst_84 = arith.constant 0.000000e+00 : f32
    %296 = vector.shape_cast %30 : vector<1x512xi1> to vector<1x512xi1>
    %297 = vector.broadcast %296 : vector<1x512xi1> to vector<32x512xi1>
    %298 = vector.broadcast %cst_84 : f32 to vector<32x512xf32>
    %299 = arith.select %297, %295, %298 : vector<32x512xi1>, vector<32x512xf32>
    %300 = arith.truncf %299 : vector<32x512xf32> to vector<32x512xbf16>
    %c496_i32_85 = arith.constant 496 : i32
    %301 = tpu.dynamic_rotate %263 by %c496_i32_85 dim 1 : vector<32x512xf32>, i32 -> vector<32x512xf32>
    %cst_86 = arith.constant 0.000000e+00 : f32
    %302 = vector.shape_cast %32 : vector<1x512xi1> to vector<1x512xi1>
    %303 = vector.broadcast %302 : vector<1x512xi1> to vector<32x512xi1>
    %304 = vector.broadcast %cst_86 : f32 to vector<32x512xf32>
    %305 = arith.select %303, %301, %304 : vector<32x512xi1>, vector<32x512xf32>
    %306 = arith.truncf %305 : vector<32x512xf32> to vector<32x512xbf16>
    %c495_i32_87 = arith.constant 495 : i32
    %307 = tpu.dynamic_rotate %263 by %c495_i32_87 dim 1 : vector<32x512xf32>, i32 -> vector<32x512xf32>
    %cst_88 = arith.constant 0.000000e+00 : f32
    %308 = vector.shape_cast %37 : vector<1x512xi1> to vector<1x512xi1>
    %309 = vector.broadcast %308 : vector<1x512xi1> to vector<32x512xi1>
    %310 = vector.broadcast %cst_88 : f32 to vector<32x512xf32>
    %311 = arith.select %309, %307, %310 : vector<32x512xi1>, vector<32x512xf32>
    %312 = arith.truncf %311 : vector<32x512xf32> to vector<32x512xbf16>
    %313 = tpu.concatenate %269, %275, %281, %287, %288, %294, %300, %306, %312 in 0 : vector<32x512xbf16>, vector<32x512xbf16>, vector<32x512xbf16>, vector<32x512xbf16>, vector<32x512xbf16>, vector<32x512xbf16>, vector<32x512xbf16>, vector<32x512xbf16>, vector<32x512xbf16> -> vector<288x512xbf16>
    %c0_89 = arith.constant 0 : index
    %c0_90 = arith.constant 0 : index
    %314 = vector.load %arg10[%c0_89, %c0_90] : memref<32x288xbf16, #tpu.memory_space<vmem>>, vector<32x288xbf16>
    %cst_91 = arith.constant dense<0.000000e+00> : vector<32x512xf32>
    %315 = tpu.matmul %314, %313, %cst_91 {dimension_numbers = #tpu.dot_dimension_numbers<[1], [0], [0], [1], [0, 0, 1, 1], [], []>} : vector<32x288xbf16>, vector<288x512xbf16>, vector<32x512xf32> -> vector<32x512xf32>
    %c0_92 = arith.constant 0 : index
    %c0_93 = arith.constant 0 : index
    %316 = vector.load %arg11[%c0_92, %c0_93] : memref<32x1xf32, #tpu.memory_space<vmem>>, vector<32x1xf32>
    %317 = vector.broadcast %316 : vector<32x1xf32> to vector<32x512xf32>
    %318 = arith.addf %315, %317 : vector<32x512xf32>
    %cst_94 = arith.constant dense<0.000000e+00> : vector<32xf32>
    %319 = vector.multi_reduction <add>, %318, %cst_94 [1] : vector<32x512xf32> to vector<32xf32>
    %320 = vector.shape_cast %319 : vector<32xf32> to vector<32x1xf32>
    %cst_95 = arith.constant 0.001953125 : f32
    %321 = vector.broadcast %cst_95 : f32 to vector<32x1xf32>
    %322 = arith.mulf %320, %321 : vector<32x1xf32>
    %323 = arith.mulf %318, %318 : vector<32x512xf32>
    %cst_96 = arith.constant dense<0.000000e+00> : vector<32xf32>
    %324 = vector.multi_reduction <add>, %323, %cst_96 [1] : vector<32x512xf32> to vector<32xf32>
    %325 = vector.shape_cast %324 : vector<32xf32> to vector<32x1xf32>
    %cst_97 = arith.constant 0.001953125 : f32
    %326 = vector.broadcast %cst_97 : f32 to vector<32x1xf32>
    %327 = arith.mulf %325, %326 : vector<32x1xf32>
    %328 = arith.mulf %322, %322 : vector<32x1xf32>
    %329 = arith.subf %327, %328 : vector<32x1xf32>
    %cst_98 = arith.constant 0.000000e+00 : f32
    %330 = vector.broadcast %cst_98 : f32 to vector<32x1xf32>
    %331 = arith.maximumf %329, %330 : vector<32x1xf32>
    %cst_99 = arith.constant 9.99999974E-6 : f32
    %332 = vector.broadcast %cst_99 : f32 to vector<32x1xf32>
    %333 = arith.addf %331, %332 : vector<32x1xf32>
    %334 = math.rsqrt %333 : vector<32x1xf32>
    %c0_100 = arith.constant 0 : index
    %c0_101 = arith.constant 0 : index
    %335 = vector.load %arg12[%c0_100, %c0_101] : memref<32x1xf32, #tpu.memory_space<vmem>>, vector<32x1xf32>
    %336 = arith.mulf %334, %335 : vector<32x1xf32>
    %c0_102 = arith.constant 0 : index
    %c0_103 = arith.constant 0 : index
    %337 = vector.load %arg13[%c0_102, %c0_103] : memref<32x1xf32, #tpu.memory_space<vmem>>, vector<32x1xf32>
    %338 = arith.mulf %322, %336 : vector<32x1xf32>
    %339 = arith.subf %337, %338 : vector<32x1xf32>
    %340 = vector.broadcast %336 : vector<32x1xf32> to vector<32x512xf32>
    %341 = arith.mulf %318, %340 : vector<32x512xf32>
    %342 = vector.broadcast %339 : vector<32x1xf32> to vector<32x512xf32>
    %343 = arith.addf %341, %342 : vector<32x512xf32>
    %cst_104 = arith.constant 0.000000e+00 : f32
    %344 = vector.broadcast %cst_104 : f32 to vector<32x512xf32>
    %345 = arith.maximumf %343, %344 : vector<32x512xf32>
    %346 = vector.extract_strided_slice %345 {offsets = [0, 0], sizes = [32, 256], strides = [1, 1]} : vector<32x512xf32> to vector<32x256xf32>
    %c0_105 = arith.constant 0 : index
    %c0_106 = arith.constant 0 : index
    %c0_107 = arith.constant 0 : index
    %347 = vector.load %arg14[%c0_105, %c0_106, %c0_107] : memref<2x32x256xf32, #tpu.memory_space<vmem>>, vector<1x32x256xf32>
    %348 = vector.shape_cast %347 : vector<1x32x256xf32> to vector<32x256xf32>
    %349 = vector.shape_cast %346 : vector<32x256xf32> to vector<1x32x256xf32>
    tpu.vector_store %arg14[%c0_105, %c0_106, %c0_107], %349 {strides = array<i32>} : memref<2x32x256xf32, #tpu.memory_space<vmem>>, vector<1x32x256xf32>,
    %350 = vector.extract_strided_slice %345 {offsets = [0, 256], sizes = [32, 256], strides = [1, 1]} : vector<32x512xf32> to vector<32x256xf32>
    %c1_108 = arith.constant 1 : index
    %c0_109 = arith.constant 0 : index
    %c0_110 = arith.constant 0 : index
    %351 = vector.load %arg14[%c1_108, %c0_109, %c0_110] : memref<2x32x256xf32, #tpu.memory_space<vmem>>, vector<1x32x256xf32>
    %352 = vector.shape_cast %351 : vector<1x32x256xf32> to vector<32x256xf32>
    %353 = vector.shape_cast %350 : vector<32x256xf32> to vector<1x32x256xf32>
    tpu.vector_store %arg14[%c1_108, %c0_109, %c0_110], %353 {strides = array<i32>} : memref<2x32x256xf32, #tpu.memory_space<vmem>>, vector<1x32x256xf32>,
    return
  }
}

</mosaic_0001>

<bundles_post_ra>
// kernel: conv_block_forward.1
= control target key start
LH: loop header
LB: loop body
LE: loop exit
PB: predicated region body
PF: predicated region fallthrough
CT: control target
= control target key end

     0   :  { %s3409_s21 = smov 17   ;;  %s3410_s22 = smov 16   ;;  %v5689_v8 = vmov 0   ;;  %v55_v13 = vlaneseq  ;;  %v5778_v28 = vmov 0  ;;  %v5781_v29 = vmov 0  ;;  %s5653_s0 = inlined_call_operand.vmem [shape: f32[2,8,256], index: 0, kind: input, shape index: {}]   ;;  %s5654_s1 = inlined_call_operand.vmem [shape: bf16[32,72], index: 1, kind: input, shape index: {}]   ;;  %s5655_s2 = inlined_call_operand.vmem [shape: f32[32,1], index: 2, kind: input, shape index: {}]   ;;  %s5656_s3 = inlined_call_operand.vmem [shape: f32[32,1], index: 3, kind: input, shape index: {}]   ;;  %s5657_s4 = inlined_call_operand.vmem [shape: f32[32,1], index: 4, kind: input, shape index: {}]   ;;  %s5658_s6 = inlined_call_operand.vmem [shape: f32[8,1], index: 6, kind: input, shape index: {}]   ;;  %s5659_s8 = inlined_call_operand.vmem [shape: f32[32,1], index: 8, kind: input, shape index: {}]   ;;  %s5660_s7 = inlined_call_operand.vmem [shape: bf16[32,32], index: 7, kind: input, shape index: {}]   ;;  %s5661_s5 = inlined_call_operand.vmem [shape: bf16[8,32], index: 5, kind: input, shape index: {}]   ;;  %s5662_s9 = inlined_call_operand.<no memory space> [shape: f32[1,1], index: 9, kind: input, shape index: {}]   ;;  %s5663_s10 = inlined_call_operand.vmem [shape: bf16[32,288], index: 10, kind: input, shape index: {}]   ;;  %s5664_s11 = inlined_call_operand.vmem [shape: f32[32,1], index: 11, kind: input, shape index: {}]   ;;  %s5665_s12 = inlined_call_operand.vmem [shape: f32[32,1], index: 12, kind: input, shape index: {}]   ;;  %s5666_s13 = inlined_call_operand.vmem [shape: f32[32,1], index: 13, kind: input, shape index: {}]   ;;  %s5667_s14 = inlined_call_operand.vmem [shape: f32[2,32,256], index: 14, kind: output, shape index: {}]  }
   0x1   :  { %v3497_v0 = vld [vmem:[%s5653_s0 + $0x10] sm:$0xff]  ;;  %v3502_v1 = vld [vmem:[%s5653_s0 + $0x18] sm:$0xff]  ;;  %v3507_v2 = vld [vmem:[%s5653_s0] sm:$0xff]  ;;  %s3411_s23 = smov 1   ;;  %s3412_s24 = smov 15   ;;  %411 = vmatprep.mubr.bf16.mxu0 %v5689_v8  ;;  %464 = vmatprep.mubr.bf16.mxu1 %v5689_v8  ;;  %v5784_v35 = vmov 0 }
   0x2   :  { %v2970_v3 = vpack.i.bf16 %v3497_v0, %v3502_v1  ;;  %v3514_v4 = vld [vmem:[%s5653_s0 + $0x8] sm:$0xff]  ;;  %v3005_v6 = vpack.i.bf16 %v3502_v1, %v3507_v2  ;;  %s3413_s0 = smov 127   ;;  %s3414_s25 = smov 112   ;;  %3035 = vset.pattern.permute.xlu1 %v5689_v8  ;;  %3036 = vset.pattern.permute.xlu0 %v5689_v8  ;;  %v325_v9 = vld [vmem:[%s5655_s2] sm:$0xff]  ;;  %v327_v11 = vld [vmem:[%s5655_s2 + $0x10] sm:$0xff]  ;;  %v3558_v14 = vand.u32 127, %v55_v13 }
   0x3   :  { %v2960_v5 = vpack.i.bf16 %v3514_v4, %v3507_v2  ;;  %v3000_v7 = vpack.i.bf16 %v3497_v0, %v3514_v4  ;;  %s3415_s26 = smov 113   ;;  %s3417_s27 = smov 111   ;;  %v326_v10 = vld [vmem:[%s5655_s2 + $0x8] sm:$0xff]  ;;  %v328_v12 = vld [vmem:[%s5655_s2 + $0x18] sm:$0xff]  ;;  %vm5669_vm11 = vmmov 1   ;;  %v5789_v43 = vmov 0 }
   0x4   :  { %2971 = vrot.lane.b32.xlu1 %v2970_v3, %s3409_s21  ;;  %5773 = vst [vmem:[#allocation3_spill] sm:$0xff] %v3558_v14  ;;  %v3561_v15 = vadd.s32 128, %v3558_v14  ;;  %v58_v16 = vadd.s32 256, %v3558_v14  ;;  %v3565_v17 = vadd.s32 384, %v3558_v14  ;;  %v60_v18 = vand.u32 255, %v3558_v14 }
   0x5   :  { %2961 = vrot.lane.b32.xlu0 %v2960_v5, %s3409_s21  ;;  %vm5676_vm5 = vcmp.lt.s32.totalorder %v3558_v14, 1  ;;  %vm5671_vm6 = vcmp.lt.s32.totalorder %v3558_v14, 17  ;;  %vm5673_vm7 = vcmp.lt.s32.totalorder %v3558_v14, 16  ;;  %vm5678_vm10 = vcmp.lt.s32.totalorder %v3558_v14, 15 }
   0x6   :  { %v61_v19 = vand.u32 255, %v3561_v15  ;;  %v62_v20 = vand.u32 255, %v58_v16  ;;  %v63_v21 = vand.u32 255, %v3565_v17  ;;  %v3570_v22 = vand.u32 15, %v60_v18 }
   0x7   :  { %vm3582_vm0 = vcmp.ge.s32.totalorder %v60_v18, 16  ;;  %v5794_v63 = vmov 0 }
   0x8   :  { %2976 = vrot.lane.b32.xlu1 %v2970_v3, %s3410_s22  ;;  %5774 = vst [vmem:[#allocation4_spill] sm:$0xff] %v3570_v22  ;;  %v3574_v23 = vand.u32 15, %v61_v19  ;;  %v3576_v24 = vand.u32 15, %v62_v20  ;;  %v3580_v26 = vand.u32 15, %v63_v21  ;;  %v5779_v28 = vsel %vm3582_vm0, 4294967295, %v5778_v28 }
   0x9   :  { %2966 = vrot.lane.b32.xlu0 %v2960_v5, %s3410_s22  ;;  %5780 = vst [vmem:[#allocation8_spill] sm:$0xff] %v5779_v28  ;;  %vm5668_vm1 = vcmp.ge.s32.totalorder %v3570_v22, 1  ;;  %vm3588_vm3 = vcmp.ge.s32.totalorder %v62_v20, 16  ;;  %vm5674_vm15 = vcmp.lt.s32.totalorder %v3570_v22, 15 }
   0xa   :  { %5775 = vst [vmem:[#allocation5_spill] sm:$0xff] %v3574_v23  ;;  %5776 = vst [vmem:[#allocation6_spill] sm:$0xff] %v3576_v24  ;;  %vm5675_vm2 = vcmp.ge.s32.totalorder %v3574_v23, 1  ;;  %v5782_v29 = vsel %vm3588_vm3, 4294967295, %v5781_v29  ;;  %vm5672_vm4 = vcmp.ge.s32.totalorder %v3576_v24, 1  ;;  %vm5677_vm8 = vcmp.ge.s32.totalorder %v3580_v26, 1 }
   0xb   :  { %5777 = vst [vmem:[#allocation7_spill] sm:$0xff] %v3580_v26  ;;  %5783 = vst [vmem:[#allocation9_spill] sm:$0xff] %v5782_v29  ;;  %vm5681_vm13 = vcmp.lt.s32.totalorder %v3574_v23, 15 }
   0xc   :  { %2986 = vrot.lane.b32.xlu1 %v2960_v5, %s3411_s23  ;;  %vm3601_vm9 = vmand %vm3582_vm0, %vm5668_vm1 }
   0xd   :  { %2981 = vrot.lane.b32.xlu0 %v2960_v5, %s3412_s24  ;;  %v5785_v35 = vsel %vm3601_vm9, 4294967295, %v5784_v35  ;;  %vm3609_vm12 = vmpackc.low %vm5669_vm11, %vm5675_vm2 }
   0xe   :  { %5786 = vst [vmem:[#allocation10_spill] sm:$0xff] %v5785_v35  ;;  %vm3620_vm14 = vmand %vm3588_vm3, %vm5672_vm4  ;;  %vm5679_vm4 = vcmp.lt.s32.totalorder %v3576_v24, 15 }
   0xf   :  { %v5790_v43 = vsel %vm3620_vm14, 4294967295, %v5789_v43  ;;  %vm3632_vm1 = vmpackc.low %vm5669_vm11, %vm5677_vm8 }
  0x10   :  { %2996 = vrot.lane.b32.xlu1 %v2970_v3, %s3411_s23  ;;  %5791 = vst [vmem:[#allocation11_spill] sm:$0xff] %v5790_v43  ;;  %vm2672_vm11 = vmpackc.low %vm3582_vm0, %vm3601_vm9 }
  0x11   :  { %2991 = vrot.lane.b32.xlu0 %v2970_v3, %s3412_s24 }
  0x14   :  { %3006 = vrot.lane.b32.xlu1 %v3005_v6, %s3413_s0 }
  0x15   :  { %3001 = vrot.lane.b32.xlu0 %v3000_v7, %s3413_s0 }
  0x18   :  { %3016 = vrot.lane.b32.xlu1 %v3000_v7, %s3414_s25 }
  0x19   :  { %3011 = vrot.lane.b32.xlu0 %v3000_v7, %s3415_s26 }
  0x1c   :  { %3026 = vrot.lane.b32.xlu1 %v3005_v6, %s3414_s25 }
  0x1d   :  { %3021 = vrot.lane.b32.xlu0 %v3005_v6, %s3415_s26 }
  0x20   :  { %280 = vrot.lane.b32.xlu1 %v3497_v0, %s3417_s27 }
  0x21   :  { %3031 = vrot.lane.b32.xlu0 %v2960_v5, %s3417_s27 }
  0x24   :  { %331 = vperm.xlu1 %3035, %v325_v9  }
  0x25   :  { %282 = vrot.lane.b32.xlu0 %v3502_v1, %s3417_s27 }
  0x28   :  { %341 = vperm.xlu1 %3035, %v327_v11   ;;  %v5797_v11 = vmov 0 }
  0x29   :  { %336 = vperm.xlu0 %3036, %v326_v10  }
  0x2c   :  { %346 = vperm.xlu1 %3035, %v328_v12  }
  0x76   :  { %v2972_v25 = vpop.permute.xlu1 %2971 }
  0x77   :  { %v2962_v27 = vpop.permute.xlu0 %2961  ;;  %v2974_v30 = vunpack.i.h.bf16 %v2972_v25  ;;  %v2973_v31 = vunpack.i.l.bf16 %v2972_v25 }
  0x78   :  { %v2964_v32 = vunpack.i.h.bf16 %v2962_v27  ;;  %v2963_v33 = vunpack.i.l.bf16 %v2962_v27 }
  0x79   :  { %v110_v42 = vsel %vm5671_vm6, %v2974_v30, %v2973_v31 }
  0x7a   :  { %v2977_v34 = vpop.permute.xlu1 %2976  ;;  %v112_v44 = vsel %vm5671_vm6, %v2963_v33, %v2964_v32  ;;  %v113_v47 = vsel %vm5671_vm6, %v2973_v31, %v2963_v33  ;;  %v111_v48 = vsel %vm5671_vm6, %v2964_v32, %v2974_v30  ;;  %vm2699_vm6 = vmpackc.low %vm3588_vm3, %vm3620_vm14 }
  0x7b   :  { %v2979_v36 = vunpack.i.h.bf16 %v2977_v34  ;;  %v2978_v37 = vunpack.i.l.bf16 %v2977_v34  ;;  %v2967_v38 = vpop.permute.xlu0 %2966 }
  0x7c   :  { %v2969_v40 = vunpack.i.h.bf16 %v2967_v38  ;;  %v2968_v41 = vunpack.i.l.bf16 %v2967_v38 }
  0x7d   :  { %v135_v45 = vsel %vm5673_vm7, %v2979_v36, %v2978_v37 }
  0x7e   :  { %v2987_v49 = vpop.permute.xlu1 %2986  ;;  %v137_v50 = vsel %vm5673_vm7, %v2968_v41, %v2969_v40  ;;  %v2697_v51 = vpack.c.bf16 %v135_v45, %v110_v42  ;;  %v138_v52 = vsel %vm5673_vm7, %v2978_v37, %v2968_v41  ;;  %v136_v53 = vsel %vm5673_vm7, %v2969_v40, %v2979_v36  ;;  %vm3665_vm7 = vmand %vm3582_vm0, %vm5674_vm15 }
  0x7f   :  { %v2989_v54 = vunpack.i.h.bf16 %v2987_v49  ;;  %v2988_v55 = vunpack.i.l.bf16 %v2987_v49  ;;  %v2982_v56 = vpop.permute.xlu0 %2981  ;;  %v2670_v57 = vpack.c.bf16 %v137_v50, %v112_v44  ;;  %v2673_v58 = vpack.c.bf16 %v138_v52, %v113_v47  ;;  %vm3685_vm15 = vmand %vm3588_vm3, %vm5679_vm4 }
  0x80   :  { %v2984_v59 = vunpack.i.h.bf16 %v2982_v56  ;;  %v2983_v60 = vunpack.i.l.bf16 %v2982_v56  ;;  %2698 = vmatprep.subr.msk.bf16.mxu1 %vm3632_vm1, %v2697_v51  ;;  %v2700_v61 = vpack.c.bf16 %v136_v53, %v111_v48  ;;  %v5795_v63 = vsel %vm3665_vm7, 4294967295, %v5794_v63  ;;  %vm2675_vm1 = vmpackc.low %vm5675_vm2, %vm5681_vm13 }
  0x81   :  { %v187_v62 = vsel %vm5676_vm5, %v2988_v55, %v2989_v54  ;;  %2671 = vmatprep.subr.msk.bf16.mxu0 %vm3609_vm12, %v2670_v57  ;;  %5796 = vst [vmem:[#allocation12_spill] sm:$0xff] %v5795_v63  ;;  %vm5680_vm12 = vcmp.lt.s32.totalorder %v3580_v26, 15  ;;  %v5798_v11 = vsel %vm3685_vm15, 4294967295, %v5797_v11  ;;  %vm3742_vm4 = vcmp.lt.s32.totalorder %v61_v19, 240 }
  0x82   :  { %v162_v3 = vsel %vm5678_vm10, %v2983_v60, %v2984_v59  ;;  %2674 = vmatpush1.bf16.msk.msra.mxu0 %vm2672_vm11, %v2673_v58  ;;  %2701 = vmatpush1.bf16.msk.msra.mxu1 %vm2699_vm6, %v2700_v61  ;;  %v2997_v5 = vpop.permute.xlu1 %2996  ;;  %5799 = vst [vmem:[#allocation13_spill] sm:$0xff] %v5798_v11  ;;  %vm5800_vm6 = vcmp.ge.s32.totalorder %v3570_v22, 1  ;;  %vm3707_vm2 = vmpackc.low %vm5677_vm8, %vm5680_vm12  ;;  %vm5808_vm8 = vmmov 1   ;;  %v5813_v48 = vmov 0 }
  0x83   :  { %v2999_v6 = vunpack.i.h.bf16 %v2997_v5  ;;  %v2998_v7 = vunpack.i.l.bf16 %v2997_v5  ;;  %v2992_v9 = vpop.permute.xlu0 %2991  ;;  %v2676_v10 = vpack.c.bf16 %v187_v62, %v162_v3  ;;  %vm3693_vm11 = vmpackc.low %vm5800_vm6, %vm3665_vm7  ;;  %vm5688_vm6 = vcmp.lt.s32.totalorder %v3558_v14, 127 }
  0x84   :  { %v2994_v12 = vunpack.i.h.bf16 %v2992_v9  ;;  %v2993_v16 = vunpack.i.l.bf16 %v2992_v9  ;;  %v5814_v48 = vsel %vm3742_vm4, 4294967295, %v5813_v48 }
  0x85   :  { %v185_v20 = vsel %vm5676_vm5, %v2999_v6, %v2998_v7  ;;  %v186_v25 = vsel %vm5676_vm5, %v2989_v54, %v2999_v6  ;;  %v188_v27 = vsel %vm5676_vm5, %v2998_v7, %v2988_v55  ;;  %2677 = vmatprep.subr.msk.bf16.mxu0 %vm2675_vm1, %v2676_v10  ;;  %vm5805_vm1 = vcmp.ge.s32.totalorder %v3576_v24, 1  ;;  %5815 = vst [vmem:[#allocation14_spill] sm:$0xff] %v5814_v48 }
  0x86   :  { %v160_v31 = vsel %vm5678_vm10, %v2994_v12, %v2993_v16  ;;  %v161_v32 = vsel %vm5678_vm10, %v2984_v59, %v2994_v12  ;;  %v163_v33 = vsel %vm5678_vm10, %v2993_v16, %v2983_v60  ;;  %v3007_v34 = vpop.permute.xlu1 %3006  ;;  %vm3722_vm5 = vmpackc.low %vm5805_vm1, %vm3685_vm15  ;;  %vm5816_vm15 = vcmp.lt.s32.totalorder %v3570_v22, 15 }
  0x87   :  { %v3009_v37 = vunpack.i.h.bf16 %v3007_v34  ;;  %v3008_v38 = vunpack.i.l.bf16 %v3007_v34  ;;  %v3002_v39 = vpop.permute.xlu0 %3001  ;;  %v2679_v40 = vpack.c.bf16 %v188_v27, %v163_v33  ;;  %v2703_v41 = vpack.c.bf16 %v185_v20, %v160_v31  ;;  %vm3729_vm10 = vmpackc.low %vm5681_vm13, %vm5808_vm8 }
  0x88   :  { %v3004_v44 = vunpack.i.h.bf16 %v3002_v39  ;;  %v3003_v45 = vunpack.i.l.bf16 %v3002_v39  ;;  %v2706_v46 = vpack.c.bf16 %v186_v25, %v161_v32  ;;  %vm3736_vm1 = vmpackc.low %vm5680_vm12, %vm5808_vm8  ;;  %vm5686_vm12 = vcmp.lt.s32.totalorder %v3558_v14, 112 }
  0x89   :  { %v213_v49 = vsel %vm5688_vm6, %v3009_v37, %v3008_v38  ;;  %2680 = vmatpush1.bf16.msk.msra.mxu0 %vm3693_vm11, %v2679_v40  ;;  %2704 = vmatprep.subr.msk.bf16.mxu1 %vm3707_vm2, %v2703_v41  ;;  %vm5687_vm13 = vcmp.lt.s32.totalorder %v3558_v14, 113  ;;  %vm3757_vm7 = vmpackc.low %vm5816_vm15, %vm5808_vm8  ;;  %vm5819_vm2 = vcmp.lt.s32.totalorder %v3576_v24, 15  ;;  %vm5822_vm11 = vcmp.ge.s32.totalorder %v3574_v23, 1 }
  0x8a   :  { %v210_v19 = vsel %vm5688_vm6, %v3004_v44, %v3009_v37  ;;  %v211_v50 = vsel %vm5688_vm6, %v3003_v45, %v3004_v44  ;;  %v212_v51 = vsel %vm5688_vm6, %v3008_v38, %v3003_v45  ;;  %2707 = vmatpush1.bf16.msk.msra.mxu1 %vm3722_vm5, %v2706_v46  ;;  %v3017_v52 = vpop.permute.xlu1 %3016  ;;  %v2709_v53 = vpack.c.bf16 %v213_v49, %v3502_v1  ;;  %vm3773_vm15 = vmpackc.low %vm5819_vm2, %vm5808_vm8 }
  0x8b   :  { %v3019_v55 = vunpack.i.h.bf16 %v3017_v52  ;;  %v3018_v56 = vunpack.i.l.bf16 %v3017_v52  ;;  %v3012_v57 = vpop.permute.xlu0 %3011  ;;  %v2682_v58 = vpack.c.bf16 %v211_v50, %v3514_v4  ;;  %v2685_v59 = vpack.c.bf16 %v212_v51, %v3507_v2  ;;  %vm3783_vm5 = vmand %vm3742_vm4, %vm5822_vm11 }
  0x8c   :  { %v5823_v1 = vmov 0  ;;  %v3014_v60 = vunpack.i.h.bf16 %v3012_v57  ;;  %v3013_v61 = vunpack.i.l.bf16 %v3012_v57  ;;  %2710 = vmatprep.subr.msk.bf16.mxu1 %vm3736_vm1, %v2709_v53  ;;  %v2712_v62 = vpack.c.bf16 %v210_v19, %v3497_v0  ;;  %vm2687_vm1 = vmpackc.low %vm3742_vm4, %vm3783_vm5  ;;  %v3358_v57 = vld [vmem:[%s5654_s1 + $0x8] sm:$0xff]  }
  0x8d   :  { %v5824_v1 = vsel %vm3783_vm5, 4294967295, %v5823_v1  ;;  %vm3792_vm2 = vcmp.lt.s32.totalorder %v63_v21, 240  ;;  %v5826_v4 = vmov 0  ;;  %v261_v2 = vsel %vm5686_vm12, %v3018_v56, %v3019_v55  ;;  %2683 = vmatprep.subr.msk.bf16.mxu0 %vm3729_vm10, %v2682_v58 }
  0x8e   :  { %5825 = vst [vmem:[#allocation15_spill] sm:$0xff] %v5824_v1  ;;  %v5827_v4 = vsel %vm3792_vm2, 4294967295, %v5826_v4  ;;  %v236_v3 = vsel %vm5687_vm13, %v3013_v61, %v3014_v60  ;;  %2686 = vmatpush1.bf16.msk.msra.mxu0 %vm3757_vm7, %v2685_v59  ;;  %2713 = vmatpush1.bf16.msk.msra.mxu1 %vm3773_vm15, %v2712_v62  ;;  %v3027_v0 = vpop.permute.xlu1 %3026  ;;  %vm5829_vm10 = vcmp.ge.s32.totalorder %v3580_v26, 1  ;;  %v5830_v7 = vmov 0 }
  0x8f   :  { %5828 = vst [vmem:[#allocation16_spill] sm:$0xff] %v5827_v4  ;;  %v3029_v17 = vunpack.i.h.bf16 %v3027_v0  ;;  %v3028_v21 = vunpack.i.l.bf16 %v3027_v0  ;;  %v3022_v5 = vpop.permute.xlu0 %3021  ;;  %v2688_v6 = vpack.c.bf16 %v261_v2, %v236_v3  ;;  %vm3814_vm11 = vmand %vm3792_vm2, %vm5829_vm10  ;;  %vm5833_vm7 = vcmp.ge.s32.totalorder %v3570_v22, 1 }
  0x90   :  { %v5831_v7 = vsel %vm3814_vm11, 4294967295, %v5830_v7  ;;  %v3024_v9 = vunpack.i.h.bf16 %v3022_v5  ;;  %v3023_v10 = vunpack.i.l.bf16 %v3022_v5  ;;  %vm3827_vm15 = vmpackc.low %vm5808_vm8, %vm5833_vm7  ;;  %vm5766_vm10 = vcmp.lt.s32.totalorder %v3558_v14, 111 }
  0x91   :  { %5832 = vst [vmem:[#allocation17_spill] sm:$0xff] %v5831_v7  ;;  %v260_v12 = vsel %vm5686_vm12, %v3019_v55, %v3029_v17  ;;  %v262_v16 = vsel %vm5686_vm12, %v3028_v21, %v3018_v56  ;;  %v263_v18 = vsel %vm5686_vm12, %v3029_v17, %v3028_v21  ;;  %2689 = vmatprep.subr.msk.bf16.mxu0 %vm2687_vm1, %v2688_v6  ;;  %vm2714_vm1 = vmpackc.low %vm3792_vm2, %vm3814_vm11  ;;  %vm5836_vm7 = vcmp.ge.s32.totalorder %v3576_v24, 1  ;;  %v3357_v55 = vld [vmem:[%s5654_s1] sm:$0xff]  }
  0x92   :  { %v235_v25 = vsel %vm5687_vm13, %v3014_v60, %v3024_v9  ;;  %v237_v27 = vsel %vm5687_vm13, %v3023_v10, %v3013_v61  ;;  %v238_v30 = vsel %vm5687_vm13, %v3024_v9, %v3023_v10  ;;  %v281_v32 = vpop.permute.xlu1 %280  ;;  %vm2717_vm12 = vmpackc.low %vm5808_vm8, %vm5836_vm7  ;;  %vm5837_vm13 = vcmp.lt.s32.totalorder %v3574_v23, 15 }
  0x93   :  { %v3032_v31 = vpop.permute.xlu0 %3031  ;;  %v2691_v33 = vpack.c.bf16 %v262_v16, %v237_v27  ;;  %v2715_v34 = vpack.c.bf16 %v263_v18, %v238_v30  ;;  %v2718_v36 = vpack.c.bf16 %v260_v12, %v235_v25  ;;  %vm3849_vm6 = vmand %vm3742_vm4, %vm5837_vm13  ;;  %v5838_v39 = vmov 0 }
  0x94   :  { %v3034_v37 = vunpack.i.h.bf16 %v3032_v31  ;;  %v3033_v38 = vunpack.i.l.bf16 %v3032_v31  ;;  %v5839_v39 = vsel %vm3849_vm6, 4294967295, %v5838_v39  ;;  %vm5841_vm8 = vcmp.lt.s32.totalorder %v3580_v26, 15 }
  0x95   :  { %5840 = vst [vmem:[#allocation18_spill] sm:$0xff] %v5839_v39  ;;  %2692 = vmatpush1.bf16.msk.msra.mxu0 %vm3827_vm15, %v2691_v33  ;;  %2716 = vmatprep.subr.msk.bf16.mxu1 %vm2714_vm1, %v2715_v34  ;;  %vm3861_vm7 = vmand %vm3792_vm2, %vm5841_vm8  ;;  %v5842_v41 = vmov 0  ;;  %vm366_vm13 = vcmask 1043456   ;;  %vm5845_vm15 = vcmp.lt.s32.totalorder %v3570_v22, 15  ;;  %vm359_vm1 = vcmask 588800  }
  0x96   :  { %v286_v40 = vsel %vm5766_vm10, %v3034_v37, %v281_v32  ;;  %2719 = vmatpush1.bf16.msk.msra.mxu1 %vm2717_vm12, %v2718_v36  ;;  %v5843_v41 = vsel %vm3861_vm7, 4294967295, %v5842_v41  ;;  %v287_v42 = vsel %vm5766_vm10, %v3033_v38, %v3034_v37  ;;  %vm5846_vm12 = vcmp.lt.s32.totalorder %v3576_v24, 15 }
  0x97   :  { %5844 = vst [vmem:[#allocation19_spill] sm:$0xff] %v5843_v41  ;;  %v298_v44 = vsel %vm3849_vm6, %v286_v40, 0.0  ;;  %v283_v45 = vpop.permute.xlu0 %282  ;;  %v297_v46 = vsel %vm5845_vm15, %v287_v42, 0.0  ;;  %vm5765_vm8 = vcmask 261120   ;;  %vm1016_vm15 = vcmask 1047556  }
  0x98   :  { %v318_v47 = vpack.c.bf16 %v298_v44, %v298_v44  ;;  %v285_v49 = vsel %vm5766_vm10, %v281_v32, %v283_v45  ;;  %v288_v15 = vsel %vm5766_vm10, %v283_v45, %v3033_v38  ;;  %v317_v19 = vpack.c.bf16 %v297_v46, %v297_v46 }
  0x99   :  { %v300_v50 = vsel %vm3861_vm7, %v288_v15, 0.0  ;;  %v299_v51 = vsel %vm5846_vm12, %v285_v49, 0.0 }
  0x9a   :  { %v320_v52 = vpack.c.bf16 %v300_v50, %v300_v50  ;;  %2693 = vmatprep.subr.msk.bf16.mxu0 %vm366_vm13, %v318_v47  ;;  %v368_v53 = vsel %vm366_vm13, %v317_v19, 0  ;;  %v319_v54 = vpack.c.bf16 %v299_v51, %v299_v51 }
  0x9b   :  { %388 = vmatpush1.bf16.msra.mxu0 %v368_v53 }
  0x9c   :  { %2720 = vmatprep.subr.msk.bf16.mxu1 %vm366_vm13, %v320_v52  ;;  %v374_v56 = vsel %vm366_vm13, %v319_v54, 0 }
  0x9d   :  { %441 = vmatpush1.bf16.msra.mxu1 %v374_v56 }
  0x9e   :  { %2694 = vmatmul.mubr.msk.bf16.vlgmr.msra.gmra.mrb[0].mxu0 %vm359_vm1, %v3357_v55 }
  0x9f   :  { %421 = vmatprep.mubr.bf16.mxu0 %v5689_v8 }
  0xa0   :  { %2721 = vmatmul.mubr.msk.bf16.vlgmr.msra.gmra.mrb[0].mxu1 %vm359_vm1, %v3357_v55 }
  0xa1   :  { %474 = vmatprep.mubr.bf16.mxu1 %v5689_v8 }
  0xa3   :  { %v332_v58 = vpop.permute.xlu1 %331 }
  0xa6   :  { %2695 = vmatmul.mubr.msk.bf16.gmra.mrb[4].mxu0 %vm359_vm1, %v3358_v57 }
  0xa7   :  { %728 = vmatprep.mubr.bf16.mxu0 %v5689_v8  ;;  %v342_v61 = vpop.permute.xlu1 %341 }
  0xa8   :  { %2722 = vmatmul.mubr.msk.bf16.gmra.mrb[4].mxu1 %vm359_vm1, %v3358_v57  ;;  %v337_v60 = vpop.permute.xlu0 %336 }
  0xa9   :  { %769 = vmatprep.mubr.bf16.mxu1 %v5689_v8 }
  0xab   :  { %v347_v47 = vpop.permute.xlu1 %346 }
 0x171   :  { %v413_v59 = vpop.f32.mrb[0].mxu0 }
 0x172   :  { %v3893_v62 = vadd.f32 %v413_v59, %v332_v58  ;;  %v415_v2 = vpop.f32.mrb[1].mxu0 }
 0x173   :  { %v3895_v3 = vadd.f32 %v415_v2, %v332_v58  ;;  %v417_v0 = vpop.f32.mrb[2].mxu0  ;;  %v466_v17 = vpop.f32.mrb[0].mxu1 }
 0x174   :  { %v509_v21 = vmul.f32 %v3893_v62, %v3893_v62  ;;  %v3899_v5 = vadd.f32 %v417_v0, %v337_v60  ;;  %v3901_v6 = vadd.f32 %v466_v17, %v332_v58  ;;  %v419_v9 = vpop.f32.mrb[3].mxu0  ;;  %v468_v10 = vpop.f32.mrb[1].mxu1 }
 0x175   :  { %v485_v12 = vadd.f32 %v3895_v3, %v3893_v62  ;;  %v510_v16 = vmul.f32 %v3895_v3, %v3895_v3  ;;  %v3907_v18 = vadd.f32 %v419_v9, %v337_v60  ;;  %v470_v20 = vpop.f32.mrb[2].mxu1  ;;  %v3919_v34 = vadd.f32 %v468_v10, %v332_v58 }
 0x176   :  { %v513_v25 = vmul.f32 %v3899_v5, %v3899_v5  ;;  %v511_v27 = vmul.f32 %v3901_v6, %v3901_v6  ;;  %v3913_v30 = vadd.f32 %v470_v20, %v337_v60  ;;  %v472_v31 = vpop.f32.mrb[3].mxu1 }
 0x177   :  { %v490_v32 = vadd.f32 %v3907_v18, %v3899_v5  ;;  %v514_v33 = vmul.f32 %v3907_v18, %v3907_v18  ;;  %v486_v36 = vadd.f32 %v485_v12, %v3901_v6  ;;  %v525_v38 = vadd.f32 %v510_v16, %v509_v21 }
 0x178   :  { %v515_v37 = vmul.f32 %v3913_v30, %v3913_v30  ;;  %v3924_v40 = vadd.f32 %v472_v31, %v337_v60  ;;  %v512_v54 = vmul.f32 %v3919_v34, %v3919_v34 }
 0x179   :  { %v423_v42 = vpop.f32.mrb[4].mxu0  ;;  %v487_v44 = vadd.f32 %v486_v36, %v3919_v34  ;;  %v491_v45 = vadd.f32 %v490_v32, %v3913_v30  ;;  %v530_v46 = vadd.f32 %v514_v33, %v513_v25  ;;  %v526_v19 = vadd.f32 %v525_v38, %v511_v27 }
 0x17a   :  { %v3928_v49 = vadd.f32 %v423_v42, %v342_v61  ;;  %v425_v15 = vpop.f32.mrb[5].mxu0  ;;  %v516_v25 = vmul.f32 %v3924_v40, %v3924_v40 }
 0x17b   :  { %v3930_v50 = vadd.f32 %v425_v15, %v342_v61  ;;  %v427_v51 = vpop.f32.mrb[6].mxu0  ;;  %v476_v52 = vpop.f32.mrb[4].mxu1  ;;  %488 = vadd.xlane.f32.xlu0 %v487_v44  ;;  %v492_v53 = vadd.f32 %v491_v45, %v3924_v40  ;;  %v531_v60 = vadd.f32 %v530_v46, %v515_v37  ;;  %v527_v9 = vadd.f32 %v526_v19, %v512_v54 }
 0x17c   :  { %v517_v55 = vmul.f32 %v3928_v49, %v3928_v49  ;;  %v3937_v56 = vadd.f32 %v427_v51, %v347_v47  ;;  %v3939_v57 = vadd.f32 %v476_v52, %v342_v61  ;;  %v429_v58 = vpop.f32.mrb[7].mxu0  ;;  %v478_v59 = vpop.f32.mrb[5].mxu1 }
 0x17d   :  { %v495_v2 = vadd.f32 %v3930_v50, %v3928_v49  ;;  %v518_v0 = vmul.f32 %v3930_v50, %v3930_v50  ;;  %v3945_v17 = vadd.f32 %v429_v58, %v347_v47  ;;  %v480_v21 = vpop.f32.mrb[6].mxu1  ;;  %493 = vadd.xlane.f32.xlu1 %v492_v53  ;;  %v3959_v32 = vadd.f32 %v478_v59, %v342_v61 }
 0x17e   :  { %v521_v10 = vmul.f32 %v3937_v56, %v3937_v56  ;;  %v519_v12 = vmul.f32 %v3939_v57, %v3939_v57  ;;  %v3951_v16 = vadd.f32 %v480_v21, %v347_v47  ;;  %v482_v20 = vpop.f32.mrb[7].mxu1  ;;  %v532_v36 = vadd.f32 %v531_v60, %v516_v25 }
 0x17f   :  { %v500_v27 = vadd.f32 %v3945_v17, %v3937_v56  ;;  %v522_v31 = vmul.f32 %v3945_v17, %v3945_v17  ;;  %528 = vadd.xlane.f32.xlu0 %v527_v9  ;;  %v496_v33 = vadd.f32 %v495_v2, %v3939_v57  ;;  %v535_v37 = vadd.f32 %v518_v0, %v517_v55 }
 0x180   :  { %v523_v38 = vmul.f32 %v3951_v16, %v3951_v16  ;;  %v3966_v15 = vadd.f32 %v482_v20, %v347_v47  ;;  %v520_v61 = vmul.f32 %v3959_v32, %v3959_v32 }
 0x181   :  { %v497_v42 = vadd.f32 %v496_v33, %v3959_v32  ;;  %v501_v44 = vadd.f32 %v500_v27, %v3951_v16  ;;  %v540_v45 = vadd.f32 %v522_v31, %v521_v10  ;;  %v536_v46 = vadd.f32 %v535_v37, %v519_v12 }
 0x182   :  { %v524_v53 = vmul.f32 %v3966_v15, %v3966_v15 }
 0x183   :  { %498 = vadd.xlane.f32.xlu1 %v497_v42  ;;  %533 = vadd.xlane.f32.xlu0 %v532_v36  ;;  %v537_v19 = vadd.f32 %v536_v46, %v520_v61  ;;  %v502_v51 = vadd.f32 %v501_v44, %v3966_v15  ;;  %v541_v52 = vadd.f32 %v540_v45, %v523_v38 }
 0x185   :  { %v542_v54 = vadd.f32 %v541_v52, %v524_v53 }
 0x187   :  { %538 = vadd.xlane.f32.xlu1 %v537_v19  ;;  %503 = vadd.xlane.f32.xlu0 %v502_v51 }
 0x18b   :  { %543 = vadd.xlane.f32.xlu0 %v542_v54 }
 0x208   :  { %v489_v55 = vpop.xlane.xlu0 %488 }
 0x209   :  { %v505_v58 = vmul.f32 0.001953125, %v489_v55 }
 0x20a   :  { %v494_v47 = vpop.xlane.xlu1 %493 }
 0x20b   :  { %v549_v60 = vmul.f32 %v505_v58, %v505_v58  ;;  %v506_v2 = vmul.f32 0.001953125, %v494_v47 }
 0x20c   :  { %v529_v59 = vpop.xlane.xlu0 %528 }
 0x20d   :  { %v545_v0 = vmul.f32 0.001953125, %v529_v59  ;;  %v550_v12 = vmul.f32 %v506_v2, %v506_v2  ;;  %v569_v59 = vld [vmem:[%s5656_s3] sm:$0xff] }
 0x20f   :  { %v553_v21 = vsub.f32 %v545_v0, %v549_v60 }
 0x210   :  { %v499_v9 = vpop.xlane.xlu1 %498  ;;  %v534_v10 = vpop.xlane.xlu0 %533 }
 0x211   :  { %v557_v20 = vmax.f32 %v553_v21, 0.0  ;;  %v507_v25 = vmul.f32 0.001953125, %v499_v9  ;;  %v546_v27 = vmul.f32 0.001953125, %v534_v10  ;;  %v577_v9 = vld [vmem:[%s5657_s4] sm:$0xff]  ;;  %v570_v10 = vld [vmem:[%s5656_s3 + $0x8] sm:$0xff] }
 0x213   :  { %v561_v31 = vadd.f32 1e-05, %v557_v20  ;;  %v554_v33 = vsub.f32 %v546_v27, %v550_v12  ;;  %v551_v36 = vmul.f32 %v507_v25, %v507_v25 }
 0x214   :  { %v539_v37 = vpop.xlane.xlu1 %538  ;;  %v504_v38 = vpop.xlane.xlu0 %503 }
 0x215   :  { %3369 = vrsqrt.f32 %v561_v31  ;;  %v558_v42 = vmax.f32 %v554_v33, 0.0  ;;  %v547_v44 = vmul.f32 0.001953125, %v539_v37  ;;  %v508_v45 = vmul.f32 0.001953125, %v504_v38  ;;  %v571_v33 = vld [vmem:[%s5656_s3 + $0x10] sm:$0xff] }
 0x217   :  { %v562_v46 = vadd.f32 1e-05, %v558_v42  ;;  %v555_v61 = vsub.f32 %v547_v44, %v551_v36  ;;  %v552_v52 = vmul.f32 %v508_v45, %v508_v45  ;;  %v578_v36 = vld [vmem:[%s5657_s4 + $0x8] sm:$0xff] }
 0x218   :  { %v544_v19 = vpop.xlane.xlu0 %543 }
 0x219   :  { %3371 = vrsqrt.f32 %v562_v46  ;;  %v559_v51 = vmax.f32 %v555_v61, 0.0  ;;  %v548_v53 = vmul.f32 0.001953125, %v544_v19  ;;  %v572_v46 = vld [vmem:[%s5656_s3 + $0x18] sm:$0xff] }
 0x21b   :  { %v563_v54 = vadd.f32 1e-05, %v559_v51  ;;  %v556_v55 = vsub.f32 %v548_v53, %v552_v52 }
 0x21d   :  { %3373 = vrsqrt.f32 %v563_v54  ;;  %v560_v47 = vmax.f32 %v556_v55, 0.0  ;;  %v686_v54 = vld [vmem:[%s5658_s6] sm:$0xff] }
 0x21f   :  { %v3370_v60 = vpop.eup %3369  ;;  %v564_v0 = vadd.f32 1e-05, %v560_v47  ;;  %v782_v47 = vld [vmem:[%s5659_s8] sm:$0xff] }
 0x220   :  { %v573_v21 = vmul.f32 %v3370_v60, %v569_v59  ;;  %v784_v59 = vld [vmem:[%s5659_s8 + $0x10] sm:$0xff] }
 0x221   :  { %3375 = vrsqrt.f32 %v564_v0 }
 0x222   :  { %591 = vperm.xlu1 %3035, %v573_v21   ;;  %v581_v12 = vmul.f32 %v573_v21, %v505_v58  ;;  %v579_v58 = vld [vmem:[%s5657_s4 + $0x10] sm:$0xff] }
 0x223   :  { %v3372_v20 = vpop.eup %3371 }
 0x224   :  { %v585_v27 = vsub.f32 %v577_v9, %v581_v12  ;;  %v574_v31 = vmul.f32 %v3372_v20, %v570_v10 }
 0x226   :  { %627 = vperm.xlu1 %3035, %v585_v27   ;;  %596 = vperm.xlu0 %3036, %v574_v31   ;;  %v582_v37 = vmul.f32 %v574_v31, %v506_v2  ;;  %v580_v2 = vld [vmem:[%s5657_s4 + $0x18] sm:$0xff] }
 0x227   :  { %v3374_v38 = vpop.eup %3373 }
 0x228   :  { %v575_v42 = vmul.f32 %v3374_v38, %v571_v33  ;;  %v586_v44 = vsub.f32 %v578_v36, %v582_v37 }
 0x22a   :  { %601 = vperm.xlu0 %3036, %v575_v42   ;;  %632 = vperm.xlu1 %3035, %v586_v44   ;;  %v583_v61 = vmul.f32 %v575_v42, %v507_v25  ;;  %v783_v25 = vld [vmem:[%s5659_s8 + $0x8] sm:$0xff] }
 0x22b   :  { %v3376_v19 = vpop.eup %3375 }
 0x22c   :  { %v587_v51 = vsub.f32 %v579_v58, %v583_v61  ;;  %v576_v52 = vmul.f32 %v3376_v19, %v572_v46 }
 0x22e   :  { %637 = vperm.xlu0 %3036, %v587_v51   ;;  %606 = vperm.xlu1 %3035, %v576_v52   ;;  %v584_v53 = vmul.f32 %v576_v52, %v508_v45  ;;  %v785_v45 = vld [vmem:[%s5659_s8 + $0x18] sm:$0xff] }
 0x230   :  { %v588_v55 = vsub.f32 %v580_v2, %v584_v53 }
 0x232   :  { %689 = vperm.xlu0 %3036, %v686_v54   ;;  %642 = vperm.xlu1 %3035, %v588_v55  }
 0x236   :  { %793 = vperm.xlu0 %3036, %v783_v25   ;;  %788 = vperm.xlu1 %3035, %v782_v47  }
 0x23a   :  { %803 = vperm.xlu0 %3036, %v785_v45   ;;  %798 = vperm.xlu1 %3035, %v784_v59  }
 0x2a1   :  { %v592_v60 = vpop.permute.xlu1 %591 }
 0x2a2   :  { %v609_v0 = vmul.f32 %v592_v60, %v3893_v62  ;;  %v611_v21 = vmul.f32 %v592_v60, %v3901_v6  ;;  %v610_v27 = vmul.f32 %v592_v60, %v3895_v3  ;;  %v612_v31 = vmul.f32 %v592_v60, %v3919_v34 }
 0x2a5   :  { %v628_v9 = vpop.permute.xlu1 %627  ;;  %v597_v10 = vpop.permute.xlu0 %596 }
 0x2a6   :  { %v4014_v12 = vadd.f32 %v628_v9, %v609_v0  ;;  %v4016_v20 = vadd.f32 %v628_v9, %v611_v21  ;;  %v613_v33 = vmul.f32 %v597_v10, %v3899_v5  ;;  %v615_v36 = vmul.f32 %v597_v10, %v3913_v30 }
 0x2a7   :  { %v614_v62 = vmul.f32 %v597_v10, %v3907_v18  ;;  %v4023_v42 = vadd.f32 %v628_v9, %v610_v27  ;;  %v616_v6 = vmul.f32 %v597_v10, %v3924_v40  ;;  %v4026_v44 = vadd.f32 %v628_v9, %v612_v31 }
 0x2a8   :  { %5847 = vst [vmem:[#allocation20_spill] sm:$0xff] %v4014_v12  ;;  %5848 = vst [vmem:[#allocation21_spill] sm:$0xff] %v4016_v20  ;;  %v5704_v3 = vmax.f32 %v4014_v12, 0.0  ;;  %v5696_v5 = vmax.f32 %v4016_v20, 0.0 }
 0x2a9   :  { %v633_v37 = vpop.permute.xlu1 %632  ;;  %v602_v38 = vpop.permute.xlu0 %601  ;;  %5849 = vst [vmem:[#allocation22_spill] sm:$0xff] %v4023_v42  ;;  %5850 = vst [vmem:[#allocation23_spill] sm:$0xff] %v4026_v44  ;;  %v5700_v2 = vmax.f32 %v4023_v42, 0.0  ;;  %v5706_v54 = vmax.f32 %v4026_v44, 0.0 }
 0x2aa   :  { %v4028_v58 = vadd.f32 %v633_v37, %v613_v33  ;;  %v4030_v46 = vadd.f32 %v633_v37, %v615_v36  ;;  %v4034_v34 = vadd.f32 %v633_v37, %v614_v62  ;;  %v4036_v30 = vadd.f32 %v633_v37, %v616_v6 }
 0x2ab   :  { %v617_v40 = vmul.f32 %v602_v38, %v3928_v49  ;;  %v619_v19 = vmul.f32 %v602_v38, %v3939_v57  ;;  %v618_v45 = vmul.f32 %v602_v38, %v3930_v50  ;;  %v620_v49 = vmul.f32 %v602_v38, %v3959_v32 }
 0x2ac   :  { %5851 = vst [vmem:[#allocation24_spill] sm:$0xff] %v4028_v58  ;;  %5852 = vst [vmem:[#allocation25_spill] sm:$0xff] %v4030_v46  ;;  %v5703_v18 = vmax.f32 %v4028_v58, 0.0  ;;  %v5695_v61 = vmax.f32 %v4030_v46, 0.0  ;;  %v5699_v53 = vmax.f32 %v4034_v34, 0.0  ;;  %v5705_v55 = vmax.f32 %v4036_v30, 0.0 }
 0x2ad   :  { %5853 = vst [vmem:[#allocation26_spill] sm:$0xff] %v4034_v34  ;;  %5854 = vst [vmem:[#allocation27_spill] sm:$0xff] %v4036_v30  ;;  %v607_v51 = vpop.permute.xlu1 %606  ;;  %v638_v52 = vpop.permute.xlu0 %637 }
 0x2ae   :  { %v4046_v25 = vadd.f32 %v638_v52, %v617_v40  ;;  %v4048_v47 = vadd.f32 %v638_v52, %v619_v19  ;;  %v678_v57 = vpack.c.bf16 %v5699_v53, %v5700_v2  ;;  %v680_v59 = vpack.c.bf16 %v5705_v55, %v5706_v54 }
 0x2af   :  { %v677_v60 = vpack.c.bf16 %v5703_v18, %v5704_v3  ;;  %v679_v50 = vpack.c.bf16 %v5695_v61, %v5696_v5  ;;  %v621_v32 = vmul.f32 %v607_v51, %v3937_v56  ;;  %v623_v0 = vmul.f32 %v607_v51, %v3951_v16 }
 0x2b0   :  { %5855 = vst [vmem:[#allocation28_spill] sm:$0xff] %v4046_v25  ;;  %5856 = vst [vmem:[#allocation29_spill] sm:$0xff] %v4048_v47  ;;  %v622_v21 = vmul.f32 %v607_v51, %v3945_v17  ;;  %v4071_v9 = vadd.f32 %v638_v52, %v618_v45  ;;  %696 = vmatprep.subr.bf16.mxu0 %v678_v57  ;;  %737 = vmatprep.subr.bf16.mxu1 %v680_v59  ;;  %v5702_v16 = vmax.f32 %v4046_v25, 0.0 }
 0x2b1   :  { %v643_v10 = vpop.permute.xlu1 %642  ;;  %v624_v27 = vmul.f32 %v607_v51, %v3966_v15  ;;  %v4074_v31 = vadd.f32 %v638_v52, %v620_v49  ;;  %697 = vmatpush1.bf16.msra.mxu0 %v677_v60  ;;  %738 = vmatpush1.bf16.msra.mxu1 %v679_v50  ;;  %v5692_v17 = vmax.f32 %v4048_v47, 0.0 }
 0x2b2   :  { %5857 = vst [vmem:[#allocation30_spill] sm:$0xff] %v4071_v9  ;;  %v4076_v33 = vadd.f32 %v643_v10, %v621_v32  ;;  %v4078_v36 = vadd.f32 %v643_v10, %v623_v0  ;;  %v4080_v56 = vadd.f32 %v643_v10, %v622_v21  ;;  %v5694_v62 = vmax.f32 %v4071_v9, 0.0  ;;  %v685_v32 = vld [vmem:[%s5661_s5] sm:$0xf] }
 0x2b3   :  { %5858 = vst [vmem:[#allocation31_spill] sm:$0xff] %v4074_v31  ;;  %v4084_v37 = vadd.f32 %v643_v10, %v624_v27  ;;  %v5698_v40 = vmax.f32 %v4074_v31, 0.0  ;;  %v3359_v0 = vld [vmem:[%s5660_s7] sm:$0xff]   ;;  %v4131_v21 = vshrl.u32 %v55_v13, 7 }
 0x2b4   :  { %5859 = vst [vmem:[#allocation32_spill] sm:$0xff] %v4076_v33  ;;  %5860 = vst [vmem:[#allocation33_spill] sm:$0xff] %v4078_v36  ;;  %v5701_v38 = vmax.f32 %v4076_v33, 0.0  ;;  %v5691_v15 = vmax.f32 %v4078_v36, 0.0  ;;  %v5693_v6 = vmax.f32 %v4080_v56, 0.0 }
 0x2b5   :  { %5861 = vst [vmem:[#allocation34_spill] sm:$0xff] %v4080_v56  ;;  %5862 = vst [vmem:[#allocation35_spill] sm:$0xff] %v4084_v37  ;;  %v5697_v19 = vmax.f32 %v4084_v37, 0.0  ;;  %v789_v26 = vpop.permute.xlu1 %788 }
 0x2b6   :  { %v682_v51 = vpack.c.bf16 %v5693_v6, %v5694_v62  ;;  %v681_v52 = vpack.c.bf16 %v5701_v38, %v5702_v16  ;;  %v683_v45 = vpack.c.bf16 %v5691_v15, %v5692_v17 }
 0x2b7   :  { %v684_v49 = vpack.c.bf16 %v5697_v19, %v5698_v40 }
 0x2b8   :  { %698 = vmatprep.subr.bf16.mxu0 %v682_v51 }
 0x2b9   :  { %739 = vmatprep.subr.bf16.mxu1 %v684_v49  ;;  %699 = vmatpush1.bf16.msra.mxu0 %v681_v52 }
 0x2ba   :  { %740 = vmatpush1.bf16.msra.mxu1 %v683_v45  ;;  %822 = vmatprep.subr.bf16.mxu0 %v678_v57  ;;  %v3360_v57 = vld [vmem:[%s5660_s7 + $0x8] sm:$0xff]  }
 0x2bb   :  { %875 = vmatprep.subr.bf16.mxu1 %v680_v59  ;;  %v19_v59 = vstv %s5662_s9 }
 0x2bc   :  { %2723 = vmatmul.mubr.msk.bf16.vlgmr.msra.gmra.mrb[8].mxu0 %vm5765_vm8, %v685_v32  ;;  %20 = vst [vmem:[#allocation2] sm:$0x1] %v19_v59 }
 0x2bd   :  { %2724 = vmatmul.mubr.msk.bf16.vlgmr.msra.gmra.mrb[8].mxu1 %vm5765_vm8, %v685_v32  ;;  %823 = vmatpush1.bf16.msra.mxu0 %v677_v60  ;;  %v690_v60 = vpop.permute.xlu0 %689 }
 0x2be   :  { %876 = vmatpush1.bf16.msra.mxu1 %v679_v50  ;;  %824 = vmatprep.subr.bf16.mxu0 %v682_v51 }
 0x2bf   :  { %877 = vmatprep.subr.bf16.mxu1 %v684_v49  ;;  %854 = vmatprep.mubr.bf16.mxu0 %v5689_v8 }
 0x2c0   :  { %907 = vmatprep.mubr.bf16.mxu1 %v5689_v8 }
 0x2c1   :  { %825 = vmatpush1.bf16.msra.mxu0 %v681_v52  ;;  %v794_v23 = vpop.permute.xlu0 %793 }
 0x2c2   :  { %878 = vmatpush1.bf16.msra.mxu1 %v683_v45 }
 0x2c4   :  { %2727 = vmatmul.mubr.msk.bf16.vlgmr.msra.gmra.mrb[12].mxu0 %vm5765_vm8, %v3359_v0 }
 0x2c5   :  { %2729 = vmatmul.mubr.msk.bf16.vlgmr.msra.gmra.mrb[12].mxu1 %vm5765_vm8, %v3359_v0  ;;  %864 = vmatprep.mubr.bf16.mxu0 %v5689_v8 }
 0x2c6   :  { %917 = vmatprep.mubr.bf16.mxu1 %v5689_v8 }
 0x2cc   :  { %2728 = vmatmul.mubr.msk.bf16.gmra.mrb[16].mxu0 %vm5765_vm8, %v3360_v57 }
 0x2cd   :  { %2730 = vmatmul.mubr.msk.bf16.gmra.mrb[16].mxu1 %vm5765_vm8, %v3360_v57 }
 0x38f   :  { %v730_v50 = vpop.f32.mrb[8].mxu0 }
 0x390   :  { %v4133_v10 = vadd.f32 %v730_v50, %v690_v60  ;;  %v771_v27 = vpop.f32.mrb[8].mxu1  ;;  %v732_v51 = vpop.f32.mrb[9].mxu0 }
 0x391   :  { %v4135_v52 = vadd.f32 %v771_v27, %v690_v60  ;;  %v4137_v45 = vadd.f32 %v732_v51, %v690_v60  ;;  %v773_v49 = vpop.f32.mrb[9].mxu1  ;;  %v734_v32 = vpop.f32.mrb[10].mxu0  ;;  %v4148_v27 = vsub.s32 0, %v4131_v21  ;;  %v4151_v51 = vsub.s32 1, %v4131_v21 }
 0x392   :  { %v928_v0 = vmul.f32 %v4133_v10, %v4133_v10  ;;  %v4141_v57 = vadd.f32 %v773_v49, %v690_v60  ;;  %v775_v59 = vpop.f32.mrb[10].mxu1  ;;  %v735_v8 = vpop.f32.mrb[11].mxu0 }
 0x393   :  { %v930_v13 = vmul.f32 %v4135_v52, %v4135_v52  ;;  %v929_v50 = vmul.f32 %v4137_v45, %v4137_v45  ;;  %v776_v15 = vpop.f32.mrb[11].mxu1  ;;  %v4157_v8 = vsub.s32 2, %v4131_v21 }
 0x394   :  { %v932_v32 = vsel %vm366_vm13, %v928_v0, 0.0  ;;  %v972_v17 = vrot.slane %v928_v0, 4  ;;  %v931_v60 = vmul.f32 %v4141_v57, %v4141_v57 }
 0x395   :  { %v933_v49 = vrot.slane %v932_v32, 4  ;;  %v946_v59 = vsel %vm366_vm13, %v930_v13, 0.0  ;;  %v974_v6 = vrot.slane %v930_v13, 4  ;;  %v939_v15 = vsel %vm366_vm13, %v929_v50, 0.0 }
 0x396   :  { %v980_v62 = vsel %vm366_vm13, %v972_v17, 0.0  ;;  %v947_v61 = vrot.slane %v946_v59, 4  ;;  %v940_v5 = vrot.slane %v939_v15, 4  ;;  %v973_v19 = vrot.slane %v929_v50, 4 }
 0x397   :  { %v934_v40 = vadd.f32 %v933_v49, %v932_v32  ;;  %v981_v53 = vrot.slane %v980_v62, 4  ;;  %v994_v0 = vsel %vm366_vm13, %v974_v6, 0.0  ;;  %v953_v2 = vsel %vm366_vm13, %v931_v60, 0.0  ;;  %v856_v38 = vpop.f32.mrb[12].mxu0 }
 0x398   :  { %v948_v16 = vadd.f32 %v947_v61, %v946_v59  ;;  %v995_v18 = vrot.slane %v994_v0, 4  ;;  %v941_v3 = vadd.f32 %v940_v5, %v939_v15  ;;  %v987_v55 = vsel %vm366_vm13, %v973_v19, 0.0  ;;  %v909_v13 = vpop.f32.mrb[12].mxu1  ;;  %v858_v54 = vpop.f32.mrb[13].mxu0 }
 0x399   :  { %v935_v41 = vrot.slane %v934_v40, 2  ;;  %v982_v39 = vadd.f32 %v981_v53, %v980_v62  ;;  %v988_v17 = vrot.slane %v987_v55, 4  ;;  %v954_v4 = vrot.slane %v953_v2, 4  ;;  %v911_v48 = vpop.f32.mrb[13].mxu1  ;;  %v860_v50 = vpop.f32.mrb[14].mxu0 }
 0x39a   :  { %v949_v32 = vrot.slane %v948_v16, 2  ;;  %v996_v49 = vadd.f32 %v995_v18, %v994_v0  ;;  %v942_v7 = vrot.slane %v941_v3, 2  ;;  %v975_v6 = vrot.slane %v931_v60, 4  ;;  %v913_v1 = vpop.f32.mrb[14].mxu1  ;;  %v862_v24 = vpop.f32.mrb[15].mxu0 }
 0x39b   :  { %v936_v22 = vadd.f32 %v935_v41, %v934_v40  ;;  %v983_v61 = vrot.slane %v982_v39, 2  ;;  %v989_v59 = vadd.f32 %v988_v17, %v987_v55  ;;  %v955_v5 = vadd.f32 %v954_v4, %v953_v2  ;;  %v915_v15 = vpop.f32.mrb[15].mxu1 }
 0x39c   :  { %v950_v19 = vadd.f32 %v949_v32, %v948_v16  ;;  %v997_v11 = vrot.slane %v996_v49, 2  ;;  %v943_v63 = vadd.f32 %v942_v7, %v941_v3  ;;  %v1001_v53 = vsel %vm366_vm13, %v975_v6, 0.0 }
 0x39d   :  { %v937_v62 = vrot.slane %v936_v22, 1  ;;  %v984_v29 = vadd.f32 %v983_v61, %v982_v39  ;;  %v990_v28 = vrot.slane %v989_v59, 2  ;;  %v956_v43 = vrot.slane %v955_v5, 2 }
 0x39e   :  { %v951_v18 = vrot.slane %v950_v19, 1  ;;  %v998_v0 = vadd.f32 %v997_v11, %v996_v49  ;;  %v944_v60 = vrot.slane %v943_v63, 1  ;;  %v1002_v35 = vrot.slane %v1001_v53, 4 }
 0x39f   :  { %v938_v41 = vadd.f32 %v937_v62, %v936_v22  ;;  %v985_v40 = vrot.slane %v984_v29, 1  ;;  %v991_v55 = vadd.f32 %v990_v28, %v989_v59  ;;  %v957_v4 = vadd.f32 %v956_v43, %v955_v5  ;;  %v866_v2 = vpop.f32.mrb[16].mxu0 }
 0x3a0   :  { %v952_v16 = vadd.f32 %v951_v18, %v950_v19  ;;  %v999_v17 = vrot.slane %v998_v0, 1  ;;  %v945_v7 = vadd.f32 %v944_v60, %v943_v63  ;;  %v1003_v3 = vadd.f32 %v1002_v35, %v1001_v53  ;;  %v919_v32 = vpop.f32.mrb[16].mxu1  ;;  %v868_v6 = vpop.f32.mrb[17].mxu0 }
 0x3a1   :  { %3377 = vrsqrt.f32 %v938_v41  ;;  %v986_v39 = vadd.f32 %v985_v40, %v984_v29  ;;  %v992_v61 = vrot.slane %v991_v55, 1  ;;  %v958_v14 = vrot.slane %v957_v4, 1  ;;  %v921_v36 = vpop.f32.mrb[17].mxu1  ;;  %v870_v11 = vpop.f32.mrb[18].mxu0 }
 0x3a2   :  { %3379 = vrsqrt.f32 %v952_v16  ;;  %v1000_v49 = vadd.f32 %v999_v17, %v998_v0  ;;  %v1004_v47 = vrot.slane %v1003_v3, 2  ;;  %v4166_v22 = vadd.f32 %v856_v38, %v789_v26  ;;  %v923_v28 = vpop.f32.mrb[18].mxu1  ;;  %v872_v43 = vpop.f32.mrb[19].mxu0 }
 0x3a3   :  { %3381 = vrsqrt.f32 %v986_v39  ;;  %v993_v59 = vadd.f32 %v992_v61, %v991_v55  ;;  %v959_v5 = vadd.f32 %v958_v14, %v957_v4  ;;  %v4168_v63 = vadd.f32 %v909_v13, %v789_v26  ;;  %v925_v35 = vpop.f32.mrb[19].mxu1  ;;  %v799_v0 = vpop.permute.xlu1 %798 }
 0x3a4   :  { %3383 = vrsqrt.f32 %v1000_v49  ;;  %v1005_v19 = vadd.f32 %v1004_v47, %v1003_v3  ;;  %v4170_v29 = vadd.f32 %v858_v54, %v789_v26  ;;  %v4172_v53 = vadd.f32 %v911_v48, %v789_v26  ;;  %v804_v47 = vpop.permute.xlu0 %803 }
 0x3a5   :  { %3385 = vrsqrt.f32 %v945_v7  ;;  %v4174_v62 = vadd.f32 %v860_v50, %v794_v23  ;;  %v4176_v18 = vadd.f32 %v913_v1, %v794_v23  ;;  %v4178_v38 = vadd.f32 %v862_v24, %v794_v23 }
 0x3a6   :  { %3387 = vrsqrt.f32 %v993_v59  ;;  %v1006_v60 = vrot.slane %v1005_v19, 1  ;;  %v4180_v14 = vadd.f32 %v915_v15, %v794_v23  ;;  %v1046_v13 = vadd.f32 %v4170_v29, %v4166_v22 }
 0x3a7   :  { %3389 = vrsqrt.f32 %v959_v5  ;;  %v4184_v54 = vadd.f32 %v866_v2, %v799_v0  ;;  %v4186_v26 = vadd.f32 %v919_v32, %v799_v0  ;;  %v1049_v48 = vadd.f32 %v4178_v38, %v4174_v62 }
 0x3a8   :  { %v1007_v1 = vadd.f32 %v1006_v60, %v1005_v19  ;;  %1047 = vadd.xlane.f32.xlu0 %v1046_v13  ;;  %v4190_v24 = vadd.f32 %v868_v6, %v799_v0  ;;  %v4192_v50 = vadd.f32 %v921_v36, %v799_v0  ;;  %v4194_v23 = vadd.f32 %v870_v11, %v804_v47 }
 0x3a9   :  { %1050 = vadd.xlane.f32.xlu1 %v1049_v48  ;;  %v4196_v15 = vadd.f32 %v923_v28, %v804_v47  ;;  %v1311_v41 = vadd.f32 %v4172_v53, %v4168_v63  ;;  %v4200_v40 = vadd.f32 %v872_v43, %v804_v47  ;;  %v4202_v55 = vadd.f32 %v925_v35, %v804_v47 }
 0x3aa   :  { %3391 = vrsqrt.f32 %v1007_v1  ;;  %v1314_v4 = vadd.f32 %v4180_v14, %v4176_v18  ;;  %v1052_v36 = vadd.f32 %v4190_v24, %v4184_v54  ;;  %v1317_v2 = vadd.f32 %v4192_v50, %v4186_v26 }
 0x3ab   :  { %v3378_v16 = vpop.eup %3377  ;;  %v1055_v17 = vadd.f32 %v4200_v40, %v4194_v23  ;;  %v1320_v7 = vadd.f32 %v4202_v55, %v4196_v15  ;;  %v1060_v6 = vsub.s32 4, %v4131_v21  ;;  %v1112_v39 = vsub.s32 5, %v4131_v21 }
 0x3ac   :  { %v3380_v3 = vpop.eup %3379  ;;  %v4215_v32 = vmul.f32 %v3378_v16, %v4133_v10  ;;  %1312 = vadd.xlane.f32.xlu0 %v1311_v41  ;;  %v4223_v49 = vsub.s32 6, %v4131_v21  ;;  %v4226_v28 = vsub.s32 7, %v4131_v21  ;;  %v4229_v43 = vsub.s32 3, %v4131_v21 }
 0x3ad   :  { %v3382_v61 = vpop.eup %3381  ;;  %v4220_v11 = vmul.f32 %v3380_v3, %v4135_v52  ;;  %1315 = vadd.xlane.f32.xlu1 %v1314_v4 }
 0x3ae   :  { %v3384_v59 = vpop.eup %3383  ;;  %v4232_v5 = vmul.f32 %v3382_v61, %v4133_v10  ;;  %v4236_v35 = vrot.slane %v4215_v32, %v4148_v27  ;;  %v4240_v19 = vrot.slane %v4215_v32, %v4151_v51  ;;  %v4244_v0 = vrot.slane %v4215_v32, %v4157_v8 }
 0x3af   :  { %5863 = vst [vmem:[#allocation36_spill] sm:$0xff] %v4220_v11  ;;  %v3386_v60 = vpop.eup %3385  ;;  %v4247_v21 = vmul.f32 %v3384_v59, %v4135_v52  ;;  %v4251_v10 = vrot.slane %v4220_v11, %v4148_v27  ;;  %v4255_v13 = vrot.slane %v4220_v11, %v4151_v51  ;;  %v4259_v47 = vrot.slane %v4220_v11, %v4157_v8 }
 0x3b0   :  { %5864 = vst [vmem:[#allocation37_spill] sm:$0xff] %v4236_v35  ;;  %5865 = vst [vmem:[#allocation38_spill] sm:$0xff] %v4240_v19  ;;  %v3388_v48 = vpop.eup %3387  ;;  %v4262_v1 = vmul.f32 %v3386_v60, %v4137_v45  ;;  %1053 = vadd.xlane.f32.xlu0 %v1052_v36  ;;  %v1017_v52 = vsel %vm1016_vm15, %v4232_v5, 0.0  ;;  %v4267_v41 = vrot.slane %v4232_v5, %v1060_v6 }
 0x3b1   :  { %5866 = vst [vmem:[#allocation39_spill] sm:$0xff] %v4244_v0  ;;  %5867 = vst [vmem:[#allocation40_spill] sm:$0xff] %v4251_v10  ;;  %v4270_v4 = vrot.slane %v4232_v5, %v1112_v39  ;;  %v3390_v16 = vpop.eup %3389  ;;  %v4273_v3 = vmul.f32 %v3388_v48, %v4137_v45  ;;  %1056 = vadd.xlane.f32.xlu1 %v1055_v17  ;;  %v1282_v61 = vsel %vm1016_vm15, %v4247_v21, 0.0 }
 0x3b2   :  { %5868 = vst [vmem:[#allocation41_spill] sm:$0xff] %v4255_v13  ;;  %5869 = vst [vmem:[#allocation42_spill] sm:$0xff] %v4259_v47  ;;  %v4278_v59 = vrot.slane %v4247_v21, %v1060_v6  ;;  %v4281_v36 = vrot.slane %v4247_v21, %v1112_v39  ;;  %v4284_v60 = vmul.f32 %v3390_v16, %v4141_v57 }
 0x3b3   :  { %v1066_v56 = vmul.f32 %v4267_v41, %v4166_v22  ;;  %v1068_v45 = vmul.f32 %v4267_v41, %v4174_v62  ;;  %v1118_v17 = vmul.f32 %v4270_v4, %v4166_v22  ;;  %v1018_v48 = vsel %vm1016_vm15, %v4273_v3, 0.0 }
 0x3b4   :  { %v1065_v9 = vrot.slane %v4273_v3, %v1060_v6  ;;  %v1117_v46 = vrot.slane %v4273_v3, %v1112_v39  ;;  %v1120_v16 = vmul.f32 %v4270_v4, %v4174_v62  ;;  %v3392_v20 = vpop.eup %3391  ;;  %1318 = vadd.xlane.f32.xlu0 %v1317_v2  ;;  %v1019_v37 = vadd.f32 %v1018_v48, %v1017_v52 }
 0x3b5   :  { %v1331_v31 = vmul.f32 %v4278_v59, %v4168_v63  ;;  %v1333_v34 = vmul.f32 %v4278_v59, %v4176_v18  ;;  %v1383_v42 = vmul.f32 %v4281_v36, %v4168_v63  ;;  %v4305_v33 = vmul.f32 %v3392_v20, %v4141_v57  ;;  %1321 = vadd.xlane.f32.xlu1 %v1320_v7 }
 0x3b6   :  { %v1067_v25 = vmul.f32 %v1065_v9, %v4170_v29  ;;  %v1069_v58 = vmul.f32 %v1065_v9, %v4178_v38  ;;  %v1119_v2 = vmul.f32 %v1117_v46, %v4170_v29  ;;  %v1121_v52 = vmul.f32 %v1117_v46, %v4178_v38 }
 0x3b7   :  { %v1385_v48 = vmul.f32 %v4281_v36, %v4176_v18  ;;  %v4315_v12 = vrot.slane %v4232_v5, %v4223_v49  ;;  %v4319_v20 = vrot.slane %v4273_v3, %v4223_v49  ;;  %v1283_v57 = vsel %vm1016_vm15, %v4305_v33, 0.0 }
 0x3b8   :  { %v1074_v7 = vadd.f32 %v1067_v25, %v1066_v56  ;;  %v1077_v30 = vadd.f32 %v1069_v58, %v1068_v45  ;;  %v1126_v44 = vadd.f32 %v1119_v2, %v1118_v17  ;;  %v1284_v47 = vadd.f32 %v1283_v57, %v1282_v61 }
 0x3b9   :  { %v1129_v0 = vadd.f32 %v1121_v52, %v1120_v16  ;;  %v1330_v13 = vrot.slane %v4305_v33, %v1060_v6  ;;  %v1382_v10 = vrot.slane %v4305_v33, %v1112_v39  ;;  %1020 = vadd.xlane.f32.xlu1 %v1019_v37  ;;  %v1170_v19 = vmul.f32 %v4315_v12, %v4166_v22 }
 0x3ba   :  { %v1171_v35 = vmul.f32 %v4319_v20, %v4170_v29  ;;  %v1172_v11 = vmul.f32 %v4315_v12, %v4174_v62  ;;  %v1173_v58 = vmul.f32 %v4319_v20, %v4178_v38  ;;  %1285 = vadd.xlane.f32.xlu0 %v1284_v47  ;;  %v4343_v45 = vrot.slane %v4247_v21, %v4223_v49 }
 0x3bb   :  { %v1332_v25 = vmul.f32 %v1330_v13, %v4172_v53  ;;  %v1334_v56 = vmul.f32 %v1330_v13, %v4180_v14  ;;  %v1384_v6 = vmul.f32 %v1382_v10, %v4172_v53  ;;  %v1386_v37 = vmul.f32 %v1382_v10, %v4180_v14 }
 0x3bc   :  { %v4337_v39 = vadd.f32 %v1171_v35, %v1170_v19  ;;  %v4339_v61 = vadd.f32 %v1173_v58, %v1172_v11  ;;  %v4347_v17 = vrot.slane %v4305_v33, %v4223_v49  ;;  %v1435_v57 = vmul.f32 %v4343_v45, %v4168_v63 }
 0x3bd   :  { %v1339_v47 = vadd.f32 %v1332_v25, %v1331_v31  ;;  %v1342_v16 = vadd.f32 %v1334_v56, %v1333_v34  ;;  %v1391_v2 = vadd.f32 %v1384_v6, %v1383_v42  ;;  %v1394_v52 = vadd.f32 %v1386_v37, %v1385_v48  ;;  %1078 = vadd.xlane.f32.xlu1 %v1077_v30 }
 0x3be   :  { %v1436_v11 = vmul.f32 %v4347_v17, %v4172_v53  ;;  %v1437_v35 = vmul.f32 %v4343_v45, %v4176_v18  ;;  %v1438_v19 = vmul.f32 %v4347_v17, %v4180_v14  ;;  %1075 = vadd.xlane.f32.xlu0 %v1074_v7  ;;  %v1070_v31 = vmul.f32 %v4267_v41, %v4184_v54 }
 0x3bf   :  { %v1071_v42 = vmul.f32 %v1065_v9, %v4190_v24  ;;  %v1072_v34 = vmul.f32 %v4267_v41, %v4194_v23  ;;  %v1073_v30 = vmul.f32 %v1065_v9, %v4200_v40  ;;  %v1122_v58 = vmul.f32 %v4270_v4, %v4184_v54 }
 0x3c0   :  { %v4363_v49 = vadd.f32 %v1436_v11, %v1435_v57  ;;  %v4365_v48 = vadd.f32 %v1438_v19, %v1437_v35  ;;  %v1123_v25 = vmul.f32 %v1117_v46, %v4190_v24  ;;  %v1124_v6 = vmul.f32 %v4270_v4, %v4194_v23 }
 0x3c1   :  { %v4370_v7 = vadd.f32 %v1071_v42, %v1070_v31  ;;  %v4372_v56 = vadd.f32 %v1073_v30, %v1072_v34  ;;  %v1125_v41 = vmul.f32 %v1117_v46, %v4200_v40  ;;  %1130 = vadd.xlane.f32.xlu1 %v1129_v0  ;;  %v1217_v37 = vrot.slane %v4232_v5, %v4226_v28 }
 0x3c2   :  { %v4377_v9 = vadd.f32 %v1123_v25, %v1122_v58  ;;  %v1221_v57 = vrot.slane %v4273_v3, %v4226_v28  ;;  %v1335_v11 = vmul.f32 %v4278_v59, %v4186_v26  ;;  %1127 = vadd.xlane.f32.xlu0 %v1126_v44  ;;  %v1336_v19 = vmul.f32 %v1330_v13, %v4192_v50 }
 0x3c3   :  { %v4385_v35 = vadd.f32 %v1125_v41, %v1124_v6  ;;  %v1337_v46 = vmul.f32 %v4278_v59, %v4196_v15  ;;  %v1338_v0 = vmul.f32 %v1330_v13, %v4202_v55  ;;  %v1222_v4 = vmul.f32 %v1217_v37, %v4166_v22 }
 0x3c4   :  { %v1223_v5 = vmul.f32 %v1221_v57, %v4170_v29  ;;  %v1224_v31 = vmul.f32 %v1217_v37, %v4174_v62  ;;  %v1225_v3 = vmul.f32 %v1221_v57, %v4178_v38  ;;  %v4395_v42 = vadd.f32 %v1336_v19, %v1335_v11 }
 0x3c5   :  { %v4397_v44 = vadd.f32 %v1338_v0, %v1337_v46  ;;  %v1387_v34 = vmul.f32 %v4281_v36, %v4186_v26  ;;  %v1388_v30 = vmul.f32 %v1382_v10, %v4192_v50  ;;  %1343 = vadd.xlane.f32.xlu1 %v1342_v16  ;;  %v1389_v22 = vmul.f32 %v4281_v36, %v4196_v15 }
 0x3c6   :  { %v1230_v59 = vadd.f32 %v1223_v5, %v1222_v4  ;;  %v1233_v13 = vadd.f32 %v1225_v3, %v1224_v31  ;;  %v1390_v29 = vmul.f32 %v1382_v10, %v4202_v55  ;;  %1340 = vadd.xlane.f32.xlu0 %v1339_v47  ;;  %v1482_v38 = vrot.slane %v4247_v21, %v4226_v28 }
 0x3c7   :  { %v1397_v62 = vadd.f32 %v1388_v30, %v1387_v34  ;;  %v1486_v58 = vrot.slane %v4305_v33, %v4226_v28  ;;  %v1174_v25 = vmul.f32 %v4315_v12, %v4184_v54  ;;  %v1175_v16 = vmul.f32 %v4319_v20, %v4190_v24 }
 0x3c8   :  { %v1400_v6 = vadd.f32 %v1390_v29, %v1389_v22  ;;  %v1176_v36 = vmul.f32 %v4315_v12, %v4194_v23  ;;  %v1177_v10 = vmul.f32 %v4319_v20, %v4200_v40  ;;  %v1487_v47 = vmul.f32 %v1482_v38, %v4168_v63 }
 0x3c9   :  { %v1488_v21 = vmul.f32 %v1486_v58, %v4172_v53  ;;  %v1489_v41 = vmul.f32 %v1482_v38, %v4176_v18  ;;  %v1490_v33 = vmul.f32 %v1486_v58, %v4180_v14  ;;  %1395 = vadd.xlane.f32.xlu1 %v1394_v52  ;;  %v1184_v28 = vadd.f32 %v1175_v16, %v1174_v25 }
 0x3ca   :  { %v1187_v11 = vadd.f32 %v1177_v10, %v1176_v36  ;;  %v1439_v19 = vmul.f32 %v4343_v45, %v4186_v26  ;;  %v1440_v12 = vmul.f32 %v4347_v17, %v4192_v50  ;;  %1392 = vadd.xlane.f32.xlu0 %v1391_v2  ;;  %v1441_v63 = vmul.f32 %v4343_v45, %v4196_v15  ;;  %v5871_v36 = vld [vmem:[#allocation37_spill] sm:$0xff] }
 0x3cb   :  { %v1495_v46 = vadd.f32 %v1488_v21, %v1487_v47  ;;  %v1498_v20 = vadd.f32 %v1490_v33, %v1489_v41  ;;  %v1442_v53 = vmul.f32 %v4347_v17, %v4202_v55  ;;  %v1226_v14 = vmul.f32 %v1217_v37, %v4184_v54 }
 0x3cc   :  { %v1449_v18 = vadd.f32 %v1440_v12, %v1439_v19  ;;  %v1227_v52 = vmul.f32 %v1221_v57, %v4190_v24  ;;  %v1228_v0 = vmul.f32 %v1217_v37, %v4194_v23  ;;  %v1229_v5 = vmul.f32 %v1221_v57, %v4200_v40  ;;  %v5870_v37 = vld [vmem:[#allocation36_spill] sm:$0xff] }
 0x3cd   :  { %v1452_v4 = vadd.f32 %v1442_v53, %v1441_v63  ;;  %v1491_v2 = vmul.f32 %v1482_v38, %v4186_v26  ;;  %v1492_v31 = vmul.f32 %v1486_v58, %v4192_v50  ;;  %1182 = vadd.xlane.f32.xlu1 %v4339_v61  ;;  %v1493_v3 = vmul.f32 %v1482_v38, %v4196_v15 }
 0x3ce   :  { %v1236_v45 = vadd.f32 %v1227_v52, %v1226_v14  ;;  %v1494_v17 = vmul.f32 %v1486_v58, %v4202_v55  ;;  %v4440_v54 = vrot.slane %v4262_v1, %v4148_v27  ;;  %1179 = vadd.xlane.f32.xlu0 %v4337_v39  ;;  %v1239_v24 = vadd.f32 %v1229_v5, %v1228_v0 }
 0x3cf   :  { %v1501_v23 = vadd.f32 %v1492_v31, %v1491_v2  ;;  %v4445_v26 = vrot.slane %v4262_v1, %v4151_v51  ;;  %v4449_v50 = vrot.slane %v4284_v60, %v4148_v27  ;;  %v4453_v15 = vrot.slane %v4284_v60, %v4151_v51 }
 0x3d0   :  { %v1504_v40 = vadd.f32 %v1494_v17, %v1493_v3  ;;  %v4457_v55 = vrot.slane %v4262_v1, %v4157_v8  ;;  %v4461_v39 = vrot.slane %v4284_v60, %v4157_v8  ;;  %v4465_v61 = vrot.slane %v4215_v32, %v4229_v43  ;;  %v2731_v8 = vld [vmem:[#allocation2] ss:$0 sm:$0xff] }
 0x3d1   :  { %v4469_v27 = vrot.slane %v4262_v1, %v4229_v43  ;;  %v4473_v51 = vrot.slane %v5870_v37, %v4229_v43  ;;  %v4477_v57 = vrot.slane %v4284_v60, %v4229_v43  ;;  %1447 = vadd.xlane.f32.xlu1 %v4365_v48 }
 0x3d2   :  { %1444 = vadd.xlane.f32.xlu0 %v4363_v49 }
 0x3d5   :  { %1084 = vadd.xlane.f32.xlu1 %v4372_v56 }
 0x3d6   :  { %1081 = vadd.xlane.f32.xlu0 %v4370_v7 }
 0x3d9   :  { %1136 = vadd.xlane.f32.xlu1 %v4385_v35 }
 0x3da   :  { %1133 = vadd.xlane.f32.xlu0 %v4377_v9 }
 0x3dd   :  { %1234 = vadd.xlane.f32.xlu1 %v1233_v13 }
 0x3de   :  { %1231 = vadd.xlane.f32.xlu0 %v1230_v59 }
 0x3e1   :  { %1349 = vadd.xlane.f32.xlu1 %v4397_v44 }
 0x3e2   :  { %1346 = vadd.xlane.f32.xlu0 %v4395_v42 }
 0x3e5   :  { %1401 = vadd.xlane.f32.xlu1 %v1400_v6 }
 0x3e6   :  { %1398 = vadd.xlane.f32.xlu0 %v1397_v62 }
 0x3e9   :  { %1499 = vadd.xlane.f32.xlu1 %v1498_v20 }
 0x3ea   :  { %1496 = vadd.xlane.f32.xlu0 %v1495_v46 }
 0x3ed   :  { %1188 = vadd.xlane.f32.xlu1 %v1187_v11  ;;  %v5872_v11 = vld [vmem:[#allocation38_spill] sm:$0xff] }
 0x3ee   :  { %1185 = vadd.xlane.f32.xlu0 %v1184_v28 }
 0x3f1   :  { %1453 = vadd.xlane.f32.xlu1 %v1452_v4 }
 0x3f2   :  { %1450 = vadd.xlane.f32.xlu0 %v1449_v18 }
 0x3f5   :  { %1240 = vadd.xlane.f32.xlu1 %v1239_v24 }
 0x3f6   :  { %1237 = vadd.xlane.f32.xlu0 %v1236_v45 }
 0x3f9   :  { %1505 = vadd.xlane.f32.xlu1 %v1504_v40 }
 0x3fa   :  { %1502 = vadd.xlane.f32.xlu0 %v1501_v23 }
 0x410   :  { %1553 = vperm.xlu0 %3036, %v2731_v8   ;;  %v5873_v8 = vld [vmem:[#allocation40_spill] sm:$0xff] }
 0x435   :  { %v4487_v43 = vpop.xlane.xlu0 %1047 }
 0x436   :  { %v4489_v49 = vpop.xlane.xlu1 %1050 }
 0x439   :  { %v4491_v48 = vpop.xlane.xlu0 %1312 }
 0x43a   :  { %v4493_v7 = vpop.xlane.xlu1 %1315 }
 0x43d   :  { %v4495_v56 = vpop.xlane.xlu0 %1053 }
 0x43e   :  { %v4497_v9 = vpop.xlane.xlu1 %1056 }
 0x441   :  { %v4501_v42 = vpop.xlane.xlu0 %1318 }
 0x442   :  { %v4499_v35 = vpop.xlane.xlu1 %1321 }
 0x446   :  { %v1021_v44 = vpop.xlane.xlu1 %1020 }
 0x447   :  { %v1022_v34 = vadd.f32 1e-06, %v1021_v44  ;;  %v1286_v30 = vpop.xlane.xlu0 %1285 }
 0x448   :  { %v1287_v59 = vadd.f32 1e-06, %v1286_v30  ;;  %v5874_v30 = vld [vmem:[#allocation41_spill] sm:$0xff] }
 0x449   :  { %v1024_v13 = vrot.slane %v1022_v34, 4 }
 0x44a   :  { %v1289_v22 = vrot.slane %v1287_v59, 4  ;;  %v1079_v29 = vpop.xlane.xlu1 %1078 }
 0x44b   :  { %v1026_v62 = vmul.f32 %v1024_v13, %v4215_v32  ;;  %v1027_v38 = vmul.f32 %v1024_v13, %v4262_v1  ;;  %v1076_v58 = vpop.xlane.xlu0 %1075  ;;  %v1096_v10 = vmul.f32 %v5871_v36, %v1079_v29  ;;  %v1097_v33 = vmul.f32 %v4440_v54, %v1079_v29 }
 0x44c   :  { %v1291_v16 = vmul.f32 %v1289_v22, %v5870_v37  ;;  %v1292_v41 = vmul.f32 %v1289_v22, %v4284_v60  ;;  %v1094_v32 = vmul.f32 %v5871_v36, %v1076_v58  ;;  %v1095_v1 = vmul.f32 %v4440_v54, %v1076_v58 }
 0x44d   :  { %v1028_v25 = vsel %vm366_vm13, %v1026_v62, 0.0  ;;  %v1035_v6 = vsel %vm366_vm13, %v1027_v38, 0.0 }
 0x44e   :  { %v1029_v47 = vrot.slane %v1028_v25, 4  ;;  %v1036_v21 = vrot.slane %v1035_v6, 4  ;;  %v1131_v28 = vpop.xlane.xlu1 %1130  ;;  %v1293_v60 = vsel %vm366_vm13, %v1291_v16, 0.0  ;;  %v1300_v45 = vsel %vm366_vm13, %v1292_v41, 0.0 }
 0x44f   :  { %v1148_v19 = vmul.f32 %v5872_v11, %v1131_v28  ;;  %v1149_v12 = vmul.f32 %v4445_v26, %v1131_v28  ;;  %v1128_v46 = vpop.xlane.xlu0 %1127  ;;  %v1294_v24 = vrot.slane %v1293_v60, 4  ;;  %v1301_v40 = vrot.slane %v1300_v45, 4 }
 0x450   :  { %v1030_v20 = vadd.f32 %v1029_v47, %v1028_v25  ;;  %v1037_v63 = vadd.f32 %v1036_v21, %v1035_v6  ;;  %v1146_v53 = vmul.f32 %v5872_v11, %v1128_v46  ;;  %v1147_v18 = vmul.f32 %v4445_v26, %v1128_v46 }
 0x451   :  { %v1156_v14 = vadd.f32 %v1148_v19, %v1096_v10  ;;  %v1157_v52 = vadd.f32 %v1149_v12, %v1097_v33  ;;  %v1295_v6 = vadd.f32 %v1294_v24, %v1293_v60  ;;  %v1302_v21 = vadd.f32 %v1301_v40, %v1300_v45  ;;  %v5876_v24 = vld [vmem:[#allocation42_spill] sm:$0xff] }
 0x452   :  { %v1031_v0 = vrot.slane %v1030_v20, 2  ;;  %v1038_v4 = vrot.slane %v1037_v63, 2  ;;  %v1154_v5 = vadd.f32 %v1146_v53, %v1094_v32  ;;  %v1155_v2 = vadd.f32 %v1147_v18, %v1095_v1  ;;  %v1344_v31 = vpop.xlane.xlu1 %1343  ;;  %v5875_v32 = vld [vmem:[#allocation39_spill] sm:$0xff] }
 0x453   :  { %v1341_v3 = vpop.xlane.xlu0 %1340  ;;  %v1361_v44 = vmul.f32 %v5873_v8, %v1344_v31  ;;  %v1362_v34 = vmul.f32 %v4449_v50, %v1344_v31  ;;  %v1296_v53 = vrot.slane %v1295_v6, 2 }
 0x454   :  { %v1032_v17 = vadd.f32 %v1031_v0, %v1030_v20  ;;  %v1039_v23 = vadd.f32 %v1038_v4, %v1037_v63  ;;  %v1359_v29 = vmul.f32 %v5873_v8, %v1341_v3  ;;  %v1360_v62 = vmul.f32 %v4449_v50, %v1341_v3 }
 0x455   :  { %v1303_v4 = vrot.slane %v1302_v21, 2 }
 0x456   :  { %v1396_v37 = vpop.xlane.xlu1 %1395  ;;  %v1033_v25 = vrot.slane %v1032_v17, 1  ;;  %v1040_v47 = vrot.slane %v1039_v23, 1 }
 0x457   :  { %v1413_v59 = vmul.f32 %v5874_v30, %v1396_v37  ;;  %v1414_v13 = vmul.f32 %v4453_v15, %v1396_v37  ;;  %v1393_v22 = vpop.xlane.xlu0 %1392 }
 0x458   :  { %v1411_v38 = vmul.f32 %v5874_v30, %v1393_v22  ;;  %v1412_v58 = vmul.f32 %v4453_v15, %v1393_v22  ;;  %v1034_v63 = vadd.f32 %v1033_v25, %v1032_v17  ;;  %v1041_v0 = vadd.f32 %v1040_v47, %v1039_v23 }
 0x459   :  { %v1421_v16 = vadd.f32 %v1413_v59, %v1361_v44  ;;  %v1422_v10 = vadd.f32 %v1414_v13, %v1362_v34  ;;  %v1297_v22 = vadd.f32 %v1296_v53, %v1295_v6  ;;  %v1304_v23 = vadd.f32 %v1303_v4, %v1302_v21 }
 0x45a   :  { %v1419_v41 = vadd.f32 %v1411_v38, %v1359_v29  ;;  %v1420_v33 = vadd.f32 %v1412_v58, %v1360_v62  ;;  %v1183_v28 = vpop.xlane.xlu1 %1182  ;;  %v1042_v13 = vadd.f32 256.0, %v1034_v63 }
 0x45b   :  { %v1200_v1 = vmul.f32 %v5875_v32, %v1183_v28  ;;  %v1201_v19 = vmul.f32 %v4457_v55, %v1183_v28  ;;  %v1180_v12 = vpop.xlane.xlu0 %1179  ;;  %v1298_v38 = vrot.slane %v1297_v22, 1  ;;  %v1305_v58 = vrot.slane %v1304_v23, 1 }
 0x45c   :  { %v1198_v46 = vmul.f32 %v5875_v32, %v1180_v12  ;;  %v1199_v20 = vmul.f32 %v4457_v55, %v1180_v12  ;;  %3393 = vrcp.f32 %v1042_v13 }
 0x45d   :  { %v1208_v18 = vadd.f32 %v1200_v1, %v1156_v14  ;;  %v1209_v60 = vadd.f32 %v1201_v19, %v1157_v52  ;;  %v1043_v52 = vadd.f32 256.0, %v1041_v0  ;;  %v1299_v19 = vadd.f32 %v1298_v38, %v1297_v22 }
 0x45e   :  { %v1206_v31 = vadd.f32 %v1198_v46, %v1154_v5  ;;  %v1207_v45 = vadd.f32 %v1199_v20, %v1155_v2  ;;  %v1448_v3 = vpop.xlane.xlu1 %1447  ;;  %v1306_v20 = vadd.f32 %v1305_v58, %v1304_v23 }
 0x45f   :  { %v1465_v40 = vmul.f32 %v5876_v24, %v1448_v3  ;;  %v1466_v37 = vmul.f32 %v4461_v39, %v1448_v3  ;;  %v1445_v44 = vpop.xlane.xlu0 %1444  ;;  %3395 = vrcp.f32 %v1043_v52  ;;  %v1307_v3 = vadd.f32 256.0, %v1299_v19 }
 0x460   :  { %v1463_v34 = vmul.f32 %v5876_v24, %v1445_v44  ;;  %v1464_v59 = vmul.f32 %v4461_v39, %v1445_v44  ;;  %v1308_v44 = vadd.f32 256.0, %v1306_v20 }
 0x461   :  { %v4535_v17 = vadd.f32 %v1465_v40, %v1421_v16  ;;  %v4537_v14 = vadd.f32 %v1466_v37, %v1422_v10  ;;  %3397 = vrcp.f32 %v1307_v3 }
 0x462   :  { %v4539_v5 = vadd.f32 %v1463_v34, %v1419_v41  ;;  %v4541_v2 = vadd.f32 %v1464_v59, %v1420_v33  ;;  %v1085_v29 = vpop.xlane.xlu1 %1084  ;;  %3399 = vrcp.f32 %v1308_v44 }
 0x463   :  { %v1082_v62 = vpop.xlane.xlu0 %1081  ;;  %v1100_v47 = vmul.f32 %v5871_v36, %v1085_v29  ;;  %v1101_v6 = vmul.f32 %v4440_v54, %v1085_v29 }
 0x464   :  { %v1098_v41 = vmul.f32 %v5871_v36, %v1082_v62  ;;  %v1099_v33 = vmul.f32 %v4440_v54, %v1082_v62 }
 0x466   :  { %v1137_v25 = vpop.xlane.xlu1 %1136  ;;  %v4563_v22 = vpop.eup %3393 }
 0x467   :  { %v1152_v16 = vmul.f32 %v5872_v11, %v1137_v25  ;;  %v1153_v10 = vmul.f32 %v4445_v26, %v1137_v25  ;;  %v1134_v21 = vpop.xlane.xlu0 %1133 }
 0x468   :  { %v1150_v28 = vmul.f32 %v5872_v11, %v1134_v21  ;;  %v1151_v1 = vmul.f32 %v4445_v26, %v1134_v21 }
 0x469   :  { %v4551_v12 = vadd.f32 %v1152_v16, %v1100_v47  ;;  %v4553_v46 = vadd.f32 %v1153_v10, %v1101_v6  ;;  %v4567_v62 = vpop.eup %3395 }
 0x46a   :  { %v4555_v63 = vadd.f32 %v1150_v28, %v1098_v41  ;;  %v4557_v53 = vadd.f32 %v1151_v1, %v1099_v33  ;;  %v1235_v0 = vpop.xlane.xlu1 %1234 }
 0x46b   :  { %v1252_v4 = vmul.f32 %v4465_v61, %v1235_v0  ;;  %v1253_v36 = vmul.f32 %v4469_v27, %v1235_v0  ;;  %v1232_v54 = vpop.xlane.xlu0 %1231 }
 0x46c   :  { %v1250_v11 = vmul.f32 %v4465_v61, %v1232_v54  ;;  %v1251_v26 = vmul.f32 %v4469_v27, %v1232_v54 }
 0x46d   :  { %v1260_v40 = vadd.f32 %v1252_v4, %v1208_v18  ;;  %v1261_v37 = vadd.f32 %v1253_v36, %v1209_v60 }
 0x46e   :  { %v1258_v34 = vadd.f32 %v1250_v11, %v1206_v31  ;;  %v1259_v59 = vadd.f32 %v1251_v26, %v1207_v45  ;;  %v1350_v13 = vpop.xlane.xlu1 %1349 }
 0x46f   :  { %v1268_v52 = vadd.f32 %v1260_v40, %v4489_v49  ;;  %v1269_v23 = vadd.f32 %v1261_v37, %v4489_v49  ;;  %v1347_v29 = vpop.xlane.xlu0 %1346  ;;  %v1365_v25 = vmul.f32 %v5873_v8, %v1350_v13  ;;  %v1366_v47 = vmul.f32 %v4449_v50, %v1350_v13  ;;  %v4599_v40 = vpop.eup %3397 }
 0x470   :  { %v1266_v38 = vadd.f32 %v1258_v34, %v4487_v43  ;;  %v1267_v58 = vadd.f32 %v1259_v59, %v4487_v43  ;;  %v1363_v10 = vmul.f32 %v5873_v8, %v1347_v29  ;;  %v1364_v21 = vmul.f32 %v4449_v50, %v1347_v29 }
 0x471   :  { %v4572_v18 = vmul.f32 %v4563_v22, %v1268_v52  ;;  %v4575_v60 = vmul.f32 %v4567_v62, %v1269_v23  ;;  %v3400_v52 = vpop.eup %3399 }
 0x472   :  { %v4578_v31 = vmul.f32 %v4563_v22, %v1266_v38  ;;  %v4581_v49 = vmul.f32 %v4567_v62, %v1267_v58  ;;  %v1402_v45 = vpop.xlane.xlu1 %1401 }
 0x473   :  { %v1417_v43 = vmul.f32 %v5874_v30, %v1402_v45  ;;  %v1418_v6 = vmul.f32 %v4453_v15, %v1402_v45  ;;  %v1399_v16 = vpop.xlane.xlu0 %1398 }
 0x474   :  { %v1415_v41 = vmul.f32 %v5874_v30, %v1399_v16  ;;  %v1416_v33 = vmul.f32 %v4453_v15, %v1399_v16 }
 0x475   :  { %v1425_v28 = vadd.f32 %v1417_v43, %v1365_v25  ;;  %v1426_v1 = vadd.f32 %v1418_v6, %v1366_v47 }
 0x476   :  { %v1423_v19 = vadd.f32 %v1415_v41, %v1363_v10  ;;  %v1424_v20 = vadd.f32 %v1416_v33, %v1364_v21  ;;  %v1500_v0 = vpop.xlane.xlu1 %1499 }
 0x477   :  { %v1517_v4 = vmul.f32 %v4473_v51, %v1500_v0  ;;  %v1518_v36 = vmul.f32 %v4477_v57, %v1500_v0  ;;  %v1497_v54 = vpop.xlane.xlu0 %1496 }
 0x478   :  { %v1515_v11 = vmul.f32 %v4473_v51, %v1497_v54  ;;  %v1516_v8 = vmul.f32 %v4477_v57, %v1497_v54 }
 0x479   :  { %v1525_v50 = vadd.f32 %v1517_v4, %v4535_v17  ;;  %v1526_v30 = vadd.f32 %v1518_v36, %v4537_v14 }
 0x47a   :  { %v1523_v15 = vadd.f32 %v1515_v11, %v4539_v5  ;;  %v1524_v26 = vadd.f32 %v1516_v8, %v4541_v2  ;;  %v1189_v3 = vpop.xlane.xlu1 %1188 }
 0x47b   :  { %v1533_v37 = vadd.f32 %v1525_v50, %v4493_v7  ;;  %v1534_v44 = vadd.f32 %v1526_v30, %v4493_v7  ;;  %v1204_v34 = vmul.f32 %v5875_v32, %v1189_v3  ;;  %v1205_v59 = vmul.f32 %v4457_v55, %v1189_v3  ;;  %v1186_v13 = vpop.xlane.xlu0 %1185 }
 0x47c   :  { %v1531_v17 = vadd.f32 %v1523_v15, %v4491_v48  ;;  %v1532_v14 = vadd.f32 %v1524_v26, %v4491_v48  ;;  %v1202_v5 = vmul.f32 %v5875_v32, %v1186_v13  ;;  %v1203_v2 = vmul.f32 %v4457_v55, %v1186_v13 }
 0x47d   :  { %v4610_v23 = vmul.f32 %v4599_v40, %v1533_v37  ;;  %v1542_v29 = vmul.f32 %v3400_v52, %v1534_v44  ;;  %v1212_v7 = vadd.f32 %v1204_v34, %v4551_v12  ;;  %v1213_v38 = vadd.f32 %v1205_v59, %v4553_v46 }
 0x47e   :  { %v4615_v58 = vmul.f32 %v4599_v40, %v1531_v17  ;;  %v1540_v45 = vmul.f32 %v3400_v52, %v1532_v14  ;;  %v1210_v25 = vadd.f32 %v1202_v5, %v4555_v63  ;;  %v1211_v48 = vadd.f32 %v1203_v2, %v4557_v53  ;;  %v1454_v47 = vpop.xlane.xlu1 %1453 }
 0x47f   :  { %v1469_v32 = vmul.f32 %v5876_v24, %v1454_v47  ;;  %v1470_v55 = vmul.f32 %v4461_v39, %v1454_v47  ;;  %v1451_v43 = vpop.xlane.xlu0 %1450 }
 0x480   :  { %v1467_v6 = vmul.f32 %v5876_v24, %v1451_v43  ;;  %v1468_v12 = vmul.f32 %v4461_v39, %v1451_v43 }
 0x481   :  { %v1477_v16 = vadd.f32 %v1469_v32, %v1425_v28  ;;  %v1478_v46 = vadd.f32 %v1470_v55, %v1426_v1 }
 0x482   :  { %v1475_v10 = vadd.f32 %v1467_v6, %v1423_v19  ;;  %v1476_v21 = vadd.f32 %v1468_v12, %v1424_v20  ;;  %v1241_v41 = vpop.xlane.xlu1 %1240  ;;  %v5879_v6 = vld [vmem:[#allocation27_spill] sm:$0xff] }
 0x483   :  { %v1256_v33 = vmul.f32 %v4465_v61, %v1241_v41  ;;  %v1257_v63 = vmul.f32 %v4469_v27, %v1241_v41  ;;  %v1238_v53 = vpop.xlane.xlu0 %1237 }
 0x484   :  { %v1254_v0 = vmul.f32 %v4465_v61, %v1238_v53  ;;  %v1255_v4 = vmul.f32 %v4469_v27, %v1238_v53 }
 0x485   :  { %v1264_v36 = vadd.f32 %v1256_v33, %v1212_v7  ;;  %v1265_v54 = vadd.f32 %v1257_v63, %v1213_v38  ;;  %v5889_v33 = vld [vmem:[#allocation22_spill] sm:$0xff] }
 0x486   :  { %v1262_v11 = vadd.f32 %v1254_v0, %v1210_v25  ;;  %v1263_v24 = vadd.f32 %v1255_v4, %v1211_v48  ;;  %v1506_v8 = vpop.xlane.xlu1 %1505  ;;  %v5890_v63 = vmax.f32 %v5889_v33, 0.0  ;;  %v5891_v0 = vld [vmem:[#allocation26_spill] sm:$0xff] }
 0x487   :  { %v1272_v39 = vadd.f32 %v1264_v36, %v4497_v9  ;;  %v1273_v28 = vadd.f32 %v1265_v54, %v4497_v9  ;;  %v1521_v1 = vmul.f32 %v4473_v51, %v1506_v8  ;;  %v1522_v19 = vmul.f32 %v4477_v57, %v1506_v8  ;;  %v1503_v20 = vpop.xlane.xlu0 %1502 }
 0x488   :  { %v1270_v50 = vadd.f32 %v1262_v11, %v4495_v56  ;;  %v1271_v61 = vadd.f32 %v1263_v24, %v4495_v56  ;;  %v1519_v27 = vmul.f32 %v4473_v51, %v1503_v20  ;;  %v1520_v30 = vmul.f32 %v4477_v57, %v1503_v20  ;;  %v5893_v20 = vld [vmem:[#allocation31_spill] sm:$0xff] }
 0x489   :  { %v1280_v15 = vmul.f32 %v4563_v22, %v1272_v39  ;;  %v1281_v26 = vmul.f32 %v4567_v62, %v1273_v28  ;;  %v1529_v3 = vadd.f32 %v1521_v1, %v1477_v16  ;;  %v1530_v37 = vadd.f32 %v1522_v19, %v1478_v46  ;;  %v5885_v46 = vld [vmem:[#allocation28_spill] sm:$0xff] }
 0x48a   :  { %v1278_v9 = vmul.f32 %v4563_v22, %v1270_v50  ;;  %v1279_v44 = vmul.f32 %v4567_v62, %v1271_v61  ;;  %v1527_v34 = vadd.f32 %v1519_v27, %v1475_v10  ;;  %v1528_v59 = vadd.f32 %v1520_v30, %v1476_v21  ;;  %v5895_v27 = vld [vmem:[#allocation35_spill] sm:$0xff] }
 0x48b   :  { %v1537_v13 = vadd.f32 %v1529_v3, %v4499_v35  ;;  %v1538_v56 = vadd.f32 %v1530_v37, %v4499_v35  ;;  %v5892_v4 = vmax.f32 %v5891_v0, 0.0  ;;  %v5894_v50 = vmax.f32 %v5893_v20, 0.0  ;;  %v5897_v3 = vld [vmem:[#allocation21_spill] sm:$0xff] }
 0x48c   :  { %v1535_v51 = vadd.f32 %v1527_v34, %v4501_v42  ;;  %v1536_v57 = vadd.f32 %v1528_v59, %v4501_v42  ;;  %v5877_v42 = vld [vmem:[#allocation23_spill] sm:$0xff]  ;;  %v5896_v30 = vmax.f32 %v5895_v27, 0.0  ;;  %v5898_v37 = vmax.f32 %v5897_v3, 0.0 }
 0x48d   :  { %v1545_v17 = vmul.f32 %v4599_v40, %v1537_v13  ;;  %v1546_v14 = vmul.f32 %v3400_v52, %v1538_v56  ;;  %v5878_v55 = vmax.f32 %v5877_v42, 0.0  ;;  %v2180_v27 = vld [vmem:[%s5664_s11] sm:$0xff] }
 0x48e   :  { %v1543_v5 = vmul.f32 %v4599_v40, %v1535_v51  ;;  %v1544_v2 = vmul.f32 %v3400_v52, %v1536_v57  ;;  %v5880_v40 = vmax.f32 %v5879_v6, 0.0 }
 0x48f   :  { %v1554_v7 = vpop.permute.xlu0 %1553 }
 0x490   :  { %v1559_v22 = vmul.f32 %v1554_v7, %v1540_v45  ;;  %v1563_v38 = vmul.f32 %v1554_v7, %v1542_v29  ;;  %v1556_v62 = vmul.f32 %v1554_v7, %v4578_v31  ;;  %v1560_v25 = vmul.f32 %v1554_v7, %v4572_v18  ;;  %v5881_v45 = vld [vmem:[#allocation20_spill] sm:$0xff] }
 0x491   :  { %v1564_v48 = vmul.f32 %v1554_v7, %v1278_v9  ;;  %v1568_v47 = vmul.f32 %v1554_v7, %v1280_v15  ;;  %v1557_v35 = vmul.f32 %v1554_v7, %v4581_v49  ;;  %v1561_v32 = vmul.f32 %v1554_v7, %v4575_v60  ;;  %v5883_v31 = vld [vmem:[#allocation24_spill] sm:$0xff] }
 0x492   :  { %v4651_v43 = vadd.f32 %v1559_v22, %v5878_v55  ;;  %v4655_v52 = vadd.f32 %v1563_v38, %v5880_v40  ;;  %v5882_v29 = vmax.f32 %v5881_v45, 0.0  ;;  %v5884_v18 = vmax.f32 %v5883_v31, 0.0  ;;  %v5887_v60 = vld [vmem:[#allocation32_spill] sm:$0xff] }
 0x493   :  { %v5886_v49 = vmax.f32 %v5885_v46, 0.0  ;;  %v5888_v21 = vmax.f32 %v5887_v60, 0.0  ;;  %v4675_v53 = vadd.f32 %v1557_v35, %v5890_v63  ;;  %v4679_v36 = vadd.f32 %v1561_v32, %v5892_v4  ;;  %v3363_v46 = vld [vmem:[%s5663_s10 + $0x4] ss:$12 sps:$4 sm:$0xff]  }
 0x494   :  { %v4659_v12 = vadd.f32 %v1556_v62, %v5882_v29  ;;  %v4663_v16 = vadd.f32 %v1560_v25, %v5884_v18  ;;  %v4683_v54 = vpack.i.bf16 %v4655_v52, %v4651_v43  ;;  %v1567_v24 = vmul.f32 %v1554_v7, %v1544_v2  ;;  %v5901_v2 = vld [vmem:[#allocation30_spill] sm:$0xff]  ;;  %2272 = vmatprep.mubr.bf16.mxu0 %v3363_v46 }
 0x495   :  { %v4667_v10 = vadd.f32 %v1564_v48, %v5886_v49  ;;  %v4671_v41 = vadd.f32 %v1568_v47, %v5888_v21  ;;  %v1571_v8 = vmul.f32 %v1554_v7, %v1546_v14  ;;  %v4695_v28 = vpack.i.bf16 %v4679_v36, %v4675_v53  ;;  %v5903_v62 = vld [vmem:[#allocation34_spill] sm:$0xff]  ;;  %2378 = vmatprep.mubr.bf16.mxu1 %v3363_v46 }
 0x496   :  { %v4687_v11 = vpack.i.bf16 %v4663_v16, %v4659_v12  ;;  %v1558_v1 = vmul.f32 %v1554_v7, %v4615_v58  ;;  %v1562_v19 = vmul.f32 %v1554_v7, %v4610_v23  ;;  %3048 = vrot.lane.b32.xlu0 %v4683_v54, %s3409_s21  ;;  %v4705_v61 = vadd.f32 %v1567_v24, %v5894_v50  ;;  %v5899_v58 = vld [vmem:[#allocation25_spill] sm:$0xff] }
 0x497   :  { %v4691_v39 = vpack.i.bf16 %v4671_v41, %v4667_v10  ;;  %v4709_v15 = vadd.f32 %v1571_v8, %v5896_v30  ;;  %v5900_v23 = vmax.f32 %v5899_v58, 0.0  ;;  %v1565_v59 = vmul.f32 %v1554_v7, %v1279_v44 }
 0x498   :  { %3038 = vrot.lane.b32.xlu1 %v4687_v11, %s3409_s21  ;;  %v4713_v9 = vadd.f32 %v1558_v1, %v5898_v37  ;;  %v1569_v13 = vmul.f32 %v1554_v7, %v1281_v26  ;;  %v1566_v51 = vmul.f32 %v1554_v7, %v1543_v5  ;;  %v1570_v57 = vmul.f32 %v1554_v7, %v1545_v17  ;;  %v5905_v26 = vld [vmem:[#allocation29_spill] sm:$0xff] }
 0x499   :  { %v4717_v34 = vadd.f32 %v1562_v19, %v5900_v23  ;;  %v4721_v56 = vpack.i.bf16 %v4709_v15, %v4705_v61  ;;  %v5902_v22 = vmax.f32 %v5901_v2, 0.0  ;;  %v5904_v25 = vmax.f32 %v5903_v62, 0.0  ;;  %v5907_v5 = vld [vmem:[#allocation33_spill] sm:$0xff] }
 0x49a   :  { %3058 = vrot.lane.b32.xlu0 %v4691_v39, %s3409_s21  ;;  %v5906_v44 = vmax.f32 %v5905_v26, 0.0  ;;  %v5908_v7 = vmax.f32 %v5907_v5, 0.0  ;;  %v1877_v42 = vpack.c.bf16 %v4679_v36, %v4675_v53  ;;  %v1876_v55 = vpack.c.bf16 %v4663_v16, %v4659_v12 }
 0x49b   :  { %v4725_v14 = vpack.i.bf16 %v4717_v34, %v4713_v9  ;;  %v4729_v38 = vadd.f32 %v1565_v59, %v5902_v22  ;;  %v4733_v48 = vadd.f32 %v1569_v13, %v5904_v25  ;;  %v1879_v40 = vpack.c.bf16 %v4655_v52, %v4651_v43  ;;  %v2182_v22 = vld [vmem:[%s5664_s11 + $0x10] sm:$0xff] }
 0x49c   :  { %3043 = vrot.lane.b32.xlu1 %v4695_v28, %s3409_s21  ;;  %v4741_v17 = vadd.f32 %v1566_v51, %v5906_v44  ;;  %v4745_v47 = vadd.f32 %v1570_v57, %v5908_v7  ;;  %v1880_v45 = vpack.c.bf16 %v4671_v41, %v4667_v10  ;;  %v1878_v29 = vpack.c.bf16 %v4717_v34, %v4713_v9  ;;  %v5922_v7 = vld [vmem:[#allocation7_spill] sm:$0xff] }
 0x49d   :  { %v4749_v35 = vpack.i.bf16 %v4733_v48, %v4729_v38  ;;  %v1881_v6 = vpack.c.bf16 %v4733_v48, %v4729_v38  ;;  %v1883_v31 = vpack.c.bf16 %v4709_v15, %v4705_v61 }
 0x49e   :  { %v4753_v32 = vpack.i.bf16 %v4745_v47, %v4741_v17  ;;  %3068 = vrot.lane.b32.xlu0 %v4721_v56, %s3409_s21  ;;  %v1882_v18 = vpack.c.bf16 %v4745_v47, %v4741_v17 }
 0x4a0   :  { %3053 = vrot.lane.b32.xlu1 %v4725_v14, %s3409_s21 }
 0x4a2   :  { %3078 = vrot.lane.b32.xlu0 %v4687_v11, %s3410_s22 }
 0x4a4   :  { %3063 = vrot.lane.b32.xlu1 %v4749_v35, %s3409_s21 }
 0x4a6   :  { %3088 = vrot.lane.b32.xlu0 %v4683_v54, %s3410_s22 }
 0x4a8   :  { %3073 = vrot.lane.b32.xlu1 %v4753_v32, %s3409_s21 }
 0x4aa   :  { %3098 = vrot.lane.b32.xlu0 %v4691_v39, %s3410_s22 }
 0x4ac   :  { %3083 = vrot.lane.b32.xlu1 %v4695_v28, %s3410_s22 }
 0x4ae   :  { %3108 = vrot.lane.b32.xlu0 %v4721_v56, %s3410_s22 }
 0x4b0   :  { %3093 = vrot.lane.b32.xlu1 %v4725_v14, %s3410_s22 }
 0x4b2   :  { %3118 = vrot.lane.b32.xlu0 %v4687_v11, %s3412_s24 }
 0x4b4   :  { %3103 = vrot.lane.b32.xlu1 %v4749_v35, %s3410_s22 }
 0x4b6   :  { %3128 = vrot.lane.b32.xlu0 %v4683_v54, %s3412_s24 }
 0x4b8   :  { %3113 = vrot.lane.b32.xlu1 %v4753_v32, %s3410_s22 }
 0x4ba   :  { %3138 = vrot.lane.b32.xlu0 %v4691_v39, %s3412_s24 }
 0x4bc   :  { %3123 = vrot.lane.b32.xlu1 %v4695_v28, %s3412_s24 }
 0x4be   :  { %3148 = vrot.lane.b32.xlu0 %v4721_v56, %s3412_s24 }
 0x4c0   :  { %3133 = vrot.lane.b32.xlu1 %v4725_v14, %s3412_s24 }
 0x4c2   :  { %3158 = vrot.lane.b32.xlu0 %v4687_v11, %s3411_s23 }
 0x4c4   :  { %3143 = vrot.lane.b32.xlu1 %v4749_v35, %s3412_s24 }
 0x4c6   :  { %3168 = vrot.lane.b32.xlu0 %v4683_v54, %s3411_s23 }
 0x4c8   :  { %3153 = vrot.lane.b32.xlu1 %v4753_v32, %s3412_s24 }
 0x4ca   :  { %3178 = vrot.lane.b32.xlu0 %v4691_v39, %s3411_s23 }
 0x4cc   :  { %3163 = vrot.lane.b32.xlu1 %v4695_v28, %s3411_s23 }
 0x4ce   :  { %3188 = vrot.lane.b32.xlu0 %v4721_v56, %s3411_s23 }
 0x4d0   :  { %3173 = vrot.lane.b32.xlu1 %v4725_v14, %s3411_s23 }
 0x4d2   :  { %3198 = vrot.lane.b32.xlu0 %v4695_v28, %s3413_s0 }
 0x4d4   :  { %3183 = vrot.lane.b32.xlu1 %v4749_v35, %s3411_s23 }
 0x4d6   :  { %3208 = vrot.lane.b32.xlu0 %v4687_v11, %s3413_s0 }
 0x4d8   :  { %3193 = vrot.lane.b32.xlu1 %v4753_v32, %s3411_s23 }
 0x4da   :  { %3218 = vrot.lane.b32.xlu0 %v4749_v35, %s3413_s0 }
 0x4dc   :  { %3203 = vrot.lane.b32.xlu1 %v4725_v14, %s3413_s0 }
 0x4de   :  { %3228 = vrot.lane.b32.xlu0 %v4691_v39, %s3413_s0 }
 0x4e0   :  { %3213 = vrot.lane.b32.xlu1 %v4683_v54, %s3413_s0 }
 0x4e2   :  { %3238 = vrot.lane.b32.xlu0 %v4695_v28, %s3415_s26 }
 0x4e4   :  { %3223 = vrot.lane.b32.xlu1 %v4753_v32, %s3413_s0 }
 0x4e6   :  { %3248 = vrot.lane.b32.xlu0 %v4687_v11, %s3415_s26 }
 0x4e8   :  { %3233 = vrot.lane.b32.xlu1 %v4721_v56, %s3413_s0 }
 0x4ea   :  { %3258 = vrot.lane.b32.xlu0 %v4749_v35, %s3415_s26 }
 0x4ec   :  { %3243 = vrot.lane.b32.xlu1 %v4725_v14, %s3415_s26 }
 0x4ee   :  { %3268 = vrot.lane.b32.xlu0 %v4691_v39, %s3415_s26 }
 0x4f0   :  { %3253 = vrot.lane.b32.xlu1 %v4683_v54, %s3415_s26 }
 0x4f2   :  { %3278 = vrot.lane.b32.xlu0 %v4695_v28, %s3414_s25 }
 0x4f4   :  { %3263 = vrot.lane.b32.xlu1 %v4753_v32, %s3415_s26 }
 0x4f6   :  { %3288 = vrot.lane.b32.xlu0 %v4687_v11, %s3414_s25 }
 0x4f8   :  { %3273 = vrot.lane.b32.xlu1 %v4721_v56, %s3415_s26 }
 0x4fa   :  { %3298 = vrot.lane.b32.xlu0 %v4749_v35, %s3414_s25 }
 0x4fc   :  { %3283 = vrot.lane.b32.xlu1 %v4725_v14, %s3414_s25 }
 0x4fe   :  { %3308 = vrot.lane.b32.xlu0 %v4691_v39, %s3414_s25 }
 0x500   :  { %3293 = vrot.lane.b32.xlu1 %v4683_v54, %s3414_s25 }
 0x502   :  { %3318 = vrot.lane.b32.xlu0 %v4695_v28, %s3417_s27 }
 0x504   :  { %3303 = vrot.lane.b32.xlu1 %v4753_v32, %s3414_s25 }
 0x506   :  { %3328 = vrot.lane.b32.xlu0 %v4687_v11, %s3417_s27  ;;  %v5909_v11 = vld [vmem:[#allocation3_spill] sm:$0xff] }
 0x507   :  { %vm5910_vm13 = vcmp.lt.s32.totalorder %v5909_v11, 17 }
 0x508   :  { %3313 = vrot.lane.b32.xlu1 %v4721_v56, %s3414_s25  ;;  %v3049_v49 = vpop.permute.xlu0 %3048  ;;  %vm5911_vm12 = vmmov %vm5910_vm13 }
 0x509   :  { %v3051_v21 = vunpack.i.h.bf16 %v3049_v49  ;;  %v3050_v33 = vunpack.i.l.bf16 %v3049_v49  ;;  %vm5912_vm1 = vmmov %vm5911_vm12 }
 0x50a   :  { %v3039_v60 = vpop.permute.xlu1 %3038  ;;  %3338 = vrot.lane.b32.xlu0 %v4749_v35, %s3417_s27  ;;  %vm5913_vm15 = vmmov %vm5912_vm1 }
 0x50b   :  { %v3041_v63 = vunpack.i.h.bf16 %v3039_v60  ;;  %v3040_v0 = vunpack.i.l.bf16 %v3039_v60  ;;  %vm5921_vm10 = vmmov %vm5912_vm1 }
 0x50c   :  { %3323 = vrot.lane.b32.xlu1 %v4725_v14, %s3417_s27  ;;  %v3059_v4 = vpop.permute.xlu0 %3058 }
 0x50d   :  { %v1633_v1 = vsel %vm5910_vm13, %v3051_v21, %v3041_v63  ;;  %v1632_v19 = vsel %vm5911_vm12, %v3050_v33, %v3040_v0  ;;  %vm5767_vm12 = vmpackc.low %vm3601_vm9, %vm3601_vm9  ;;  %v3061_v46 = vunpack.i.h.bf16 %v3059_v4  ;;  %v3060_v49 = vunpack.i.l.bf16 %v3059_v4  ;;  %v2181_v4 = vld [vmem:[%s5664_s11 + $0x8] sm:$0xff] }
 0x50e   :  { %v3044_v24 = vpop.permute.xlu1 %3043  ;;  %3348 = vrot.lane.b32.xlu0 %v4691_v39, %s3417_s27  ;;  %v2742_v13 = vpack.c.bf16 %v1633_v1, %v1632_v19 }
 0x50f   :  { %v3046_v8 = vunpack.i.h.bf16 %v3044_v24  ;;  %v3045_v28 = vunpack.i.l.bf16 %v3044_v24 }
 0x510   :  { %3333 = vrot.lane.b32.xlu1 %v4683_v54, %s3417_s27  ;;  %v3069_v30 = vpop.permute.xlu0 %3068  ;;  %v5914_v54 = vld [vmem:[#allocation5_spill] sm:$0xff] }
 0x511   :  { %v1628_v20 = vsel %vm5912_vm1, %v3040_v0, %v3045_v28  ;;  %v1629_v50 = vsel %vm5913_vm15, %v3041_v63, %v3046_v8  ;;  %vm5915_vm8 = vcmp.ge.s32.totalorder %v5914_v54, 1  ;;  %v3071_v51 = vunpack.i.h.bf16 %v3069_v30  ;;  %vm5920_vm15 = vmmov %vm5912_vm1 }
 0x512   :  { %v2739_v39 = vpack.c.bf16 %v1629_v50, %v1628_v20  ;;  %v3054_v3 = vpop.permute.xlu1 %3053  ;;  %vm4904_vm13 = vmpackc.low %vm5915_vm8, %vm5915_vm8  ;;  %2186 = vperm.xlu0 %3036, %v2180_v27   ;;  %v3070_v57 = vunpack.i.l.bf16 %v3069_v30  ;;  %v2183_v30 = vld [vmem:[%s5664_s11 + $0x18] sm:$0xff] }
 0x513   :  { %v3056_v23 = vunpack.i.h.bf16 %v3054_v3  ;;  %v3055_v59 = vunpack.i.l.bf16 %v3054_v3  ;;  %vm5919_vm8 = vmmov %vm5912_vm1 }
 0x514   :  { %3343 = vrot.lane.b32.xlu1 %v4753_v32, %s3417_s27  ;;  %2740 = vmatprep.subr.msk.bf16.mxu0 %vm4904_vm13, %v2739_v39  ;;  %v3079_v44 = vpop.permute.xlu0 %3078 }
 0x515   :  { %v1621_v14 = vsel %vm5912_vm1, %v3056_v23, %v3051_v21  ;;  %v1620_v2 = vsel %vm5919_vm8, %v3055_v59, %v3050_v33  ;;  %v1624_v62 = vsel %vm5920_vm15, %v3045_v28, %v3055_v59  ;;  %v1625_v25 = vsel %vm5921_vm10, %v3046_v8, %v3056_v23  ;;  %2743 = vmatpush1.bf16.msk.msra.mxu0 %vm5767_vm12, %v2742_v13  ;;  %vm5927_vm15 = vmmov %vm5921_vm10 }
 0x516   :  { %v2825_v26 = vpack.c.bf16 %v1621_v14, %v1620_v2  ;;  %v3064_v5 = vpop.permute.xlu1 %3063  ;;  %vm5923_vm1 = vcmp.ge.s32.totalorder %v5922_v7, 1  ;;  %v2828_v60 = vpack.c.bf16 %v1625_v25, %v1624_v62  ;;  %2196 = vperm.xlu0 %3036, %v2182_v22   ;;  %v1634_v63 = vsel %vm5927_vm15, %v3070_v57, %v3060_v49  ;;  %vm5931_vm15 = vmpackc.low %vm3620_vm14, %vm3620_vm14 }
 0x517   :  { %vm4934_vm8 = vmpackc.low %vm5923_vm1, %vm5923_vm1  ;;  %v3066_v21 = vunpack.i.h.bf16 %v3064_v5  ;;  %v3065_v33 = vunpack.i.l.bf16 %v3064_v5  ;;  %v3081_v62 = vunpack.i.h.bf16 %v3079_v44  ;;  %v3080_v25 = vunpack.i.l.bf16 %v3079_v44 }
 0x518   :  { %3353 = vrot.lane.b32.xlu1 %v4721_v56, %s3417_s27  ;;  %vm5928_vm1 = vmmov %vm5921_vm10  ;;  %2826 = vmatprep.subr.msk.bf16.mxu1 %vm4934_vm8, %v2825_v26  ;;  %v3089_v56 = vpop.permute.xlu0 %3088 }
 0x519   :  { %v1635_v0 = vsel %vm5928_vm1, %v3071_v51, %v3061_v46  ;;  %vm5929_vm12 = vmmov %vm5928_vm1  ;;  %2829 = vmatpush1.bf16.msk.msra.mxu1 %vm5931_vm15, %v2828_v60  ;;  %v3091_v3 = vunpack.i.h.bf16 %v3089_v56  ;;  %v3090_v23 = vunpack.i.l.bf16 %v3089_v56 }
 0x51a   :  { %v1631_v24 = vsel %vm5929_vm12, %v3061_v46, %v3066_v21  ;;  %vm5930_vm10 = vmmov %vm5928_vm1  ;;  %v3074_v28 = vpop.permute.xlu1 %3073  ;;  %v2748_v20 = vpack.c.bf16 %v1635_v0, %v1634_v63 }
 0x51b   :  { %v1630_v8 = vsel %vm5930_vm10, %v3060_v49, %v3065_v33  ;;  %v3076_v19 = vunpack.i.h.bf16 %v3074_v28  ;;  %v3075_v50 = vunpack.i.l.bf16 %v3074_v28  ;;  %vm5932_vm12 = vmmov %vm5928_vm1 }
 0x51c   :  { %v2745_v1 = vpack.c.bf16 %v1631_v24, %v1630_v8  ;;  %2191 = vperm.xlu1 %3035, %v2181_v4   ;;  %vm5933_vm10 = vmmov %vm5928_vm1 }
 0x51d   :  { %v1623_v27 = vsel %vm5932_vm12, %v3076_v19, %v3071_v51  ;;  %v1627_v39 = vsel %vm5928_vm1, %v3066_v21, %v3076_v19  ;;  %v1622_v59 = vsel %vm5933_vm10, %v3075_v50, %v3070_v57  ;;  %vm5934_vm15 = vmmov %vm5928_vm1  ;;  %v3099_v51 = vpop.permute.xlu0 %3098  ;;  %vm5936_vm1 = vcmp.lt.s32.totalorder %v5909_v11, 16 }
 0x51e   :  { %2746 = vmatprep.subr.msk.bf16.mxu0 %vm4904_vm13, %v2745_v1  ;;  %v1626_v13 = vsel %vm5934_vm15, %v3065_v33, %v3075_v50  ;;  %vm5935_vm12 = vmpackc.low %vm3601_vm9, %vm3601_vm9  ;;  %v3084_v14 = vpop.permute.xlu1 %3083  ;;  %v2831_v2 = vpack.c.bf16 %v1623_v27, %v1622_v59  ;;  %v1704_v57 = vsel %vm5936_vm1, %v3090_v23, %v3080_v25  ;;  %v3101_v28 = vunpack.i.h.bf16 %v3099_v51 }
 0x51f   :  { %2749 = vmatpush1.bf16.msk.msra.mxu0 %vm5935_vm12, %v2748_v20  ;;  %v2834_v22 = vpack.c.bf16 %v1627_v39, %v1626_v13  ;;  %v3086_v26 = vunpack.i.h.bf16 %v3084_v14  ;;  %v3085_v5 = vunpack.i.l.bf16 %v3084_v14  ;;  %vm5937_vm10 = vmmov %vm5936_vm1  ;;  %v3100_v1 = vunpack.i.l.bf16 %v3099_v51 }
 0x520   :  { %2201 = vperm.xlu1 %3035, %v2183_v30   ;;  %2832 = vmatprep.subr.msk.bf16.mxu1 %vm4934_vm8, %v2831_v2  ;;  %v1705_v58 = vsel %vm5937_vm10, %v3091_v3, %v3081_v62  ;;  %vm5938_vm9 = vmpackc.low %vm3620_vm14, %vm3620_vm14 }
 0x521   :  { %2835 = vmatpush1.bf16.msk.msra.mxu1 %vm5938_vm9, %v2834_v22  ;;  %v3109_v46 = vpop.permute.xlu0 %3108  ;;  %vm5939_vm15 = vmmov %vm5936_vm1  ;;  %v2751_v32 = vpack.c.bf16 %v1705_v58, %v1704_v57 }
 0x522   :  { %v3094_v44 = vpop.permute.xlu1 %3093  ;;  %v1700_v49 = vsel %vm5939_vm15, %v3080_v25, %v3085_v5  ;;  %vm5940_vm12 = vmmov %vm5936_vm1  ;;  %v3111_v63 = vunpack.i.h.bf16 %v3109_v46  ;;  %v3110_v0 = vunpack.i.l.bf16 %v3109_v46 }
 0x523   :  { %v1701_v60 = vsel %vm5940_vm12, %v3081_v62, %v3086_v26  ;;  %v3096_v21 = vunpack.i.h.bf16 %v3094_v44  ;;  %v3095_v33 = vunpack.i.l.bf16 %v3094_v44  ;;  %vm2750_vm1 = vmpackc.low %vm3582_vm0, %vm3582_vm0 }
 0x524   :  { %v1725_v24 = vpack.c.bf16 %v1701_v60, %v1700_v49  ;;  %vm5942_vm14 = vmmov %vm5937_vm10 }
 0x525   :  { %v1696_v8 = vsel %vm5942_vm14, %v3085_v5, %v3095_v33  ;;  %v1697_v56 = vsel %vm5937_vm10, %v3086_v26, %v3096_v21  ;;  %v3119_v19 = vpop.permute.xlu0 %3118  ;;  %vm5943_vm9 = vmmov %vm5937_vm10 }
 0x526   :  { %2244 = vmatprep.subr.bf16.mxu0 %v1725_v24  ;;  %v3104_v20 = vpop.permute.xlu1 %3103  ;;  %v1692_v50 = vsel %vm5943_vm9, %v3095_v33, %v3090_v23  ;;  %vm5944_vm15 = vmmov %vm5943_vm9  ;;  %v2837_v39 = vpack.c.bf16 %v1697_v56, %v1696_v8  ;;  %v3121_v60 = vunpack.i.h.bf16 %v3119_v19 }
 0x527   :  { %v1693_v27 = vsel %vm5944_vm15, %v3096_v21, %v3091_v3  ;;  %2752 = vmatpush1.bf16.msk.msra.mxu0 %vm2750_vm1, %v2751_v32  ;;  %v3106_v30 = vunpack.i.h.bf16 %v3104_v20  ;;  %v3105_v59 = vunpack.i.l.bf16 %v3104_v20  ;;  %vm5945_vm12 = vmmov %vm5943_vm9  ;;  %v3120_v21 = vunpack.i.l.bf16 %v3119_v19 }
 0x528   :  { %v1706_v13 = vsel %vm5945_vm12, %v3110_v0, %v3100_v1  ;;  %vm5946_vm14 = vmmov %vm5943_vm9  ;;  %v1727_v14 = vpack.c.bf16 %v1693_v27, %v1692_v50 }
 0x529   :  { %v1707_v51 = vsel %vm5946_vm14, %v3111_v63, %v3101_v28  ;;  %vm5768_vm10 = vmpackc.low %vm3588_vm3, %vm3588_vm3  ;;  %v1702_v3 = vsel %vm5943_vm9, %v3100_v1, %v3105_v59  ;;  %v3129_v22 = vpop.permute.xlu0 %3128 }
 0x52a   :  { %vm5948_vm15 = vmmov %vm5943_vm9  ;;  %2350 = vmatprep.subr.bf16.mxu1 %v1727_v14  ;;  %v3114_v62 = vpop.permute.xlu1 %3113  ;;  %v2754_v26 = vpack.c.bf16 %v1707_v51, %v1706_v13  ;;  %v3131_v58 = vunpack.i.h.bf16 %v3129_v22  ;;  %v3130_v46 = vunpack.i.l.bf16 %v3129_v22 }
 0x52b   :  { %v1703_v2 = vsel %vm5948_vm15, %v3101_v28, %v3106_v30  ;;  %2838 = vmatpush1.bf16.msk.msra.mxu1 %vm5768_vm10, %v2837_v39  ;;  %v3116_v5 = vunpack.i.h.bf16 %v3114_v62  ;;  %v3115_v57 = vunpack.i.l.bf16 %v3114_v62  ;;  %vm5949_vm12 = vmmov %vm5943_vm9  ;;  %v5966_v62 = vld [vmem:[#allocation13_spill] sm:$0xff] }
 0x52c   :  { %v1729_v25 = vpack.c.bf16 %v1703_v2, %v1702_v3  ;;  %vm5950_vm14 = vmmov %vm5943_vm9 }
 0x52d   :  { %v1698_v44 = vsel %vm5949_vm12, %v3105_v59, %v3115_v57  ;;  %v1699_v49 = vsel %vm5950_vm14, %v3106_v30, %v3116_v5  ;;  %v3139_v33 = vpop.permute.xlu0 %3138  ;;  %v1694_v32 = vsel %vm5943_vm9, %v3115_v57, %v3110_v0  ;;  %vm5951_vm15 = vmmov %vm5943_vm9  ;;  %vm5952_vm12 = vcmp.lt.s32.totalorder %v5909_v11, 15  ;;  %v5959_v0 = vld [vmem:[#allocation12_spill] sm:$0xff] }
 0x52e   :  { %2246 = vmatprep.subr.bf16.mxu0 %v1729_v25  ;;  %v3124_v24 = vpop.permute.xlu1 %3123  ;;  %v1695_v8 = vsel %vm5951_vm15, %v3116_v5, %v3111_v63  ;;  %v2840_v56 = vpack.c.bf16 %v1699_v49, %v1698_v44  ;;  %v1776_v20 = vsel %vm5952_vm12, %v3130_v46, %v3120_v21  ;;  %vm5953_vm14 = vmmov %vm5952_vm12  ;;  %vm5956_vm9 = vcmp.lt.s32.totalorder %v5914_v54, 15 }
 0x52f   :  { %2755 = vmatpush1.bf16.msk.msra.mxu0 %vm2750_vm1, %v2754_v26  ;;  %v3126_v28 = vunpack.i.h.bf16 %v3124_v24  ;;  %v3125_v1 = vunpack.i.l.bf16 %v3124_v24  ;;  %v1777_v4 = vsel %vm5953_vm14, %v3131_v58, %v3121_v60  ;;  %v1731_v50 = vpack.c.bf16 %v1695_v8, %v1694_v32  ;;  %vm5954_vm0 = vmmov %vm5952_vm12 }
 0x530   :  { %vm5955_vm1 = vmmov %vm5954_vm0  ;;  %vm5960_vm10 = vnez %v5959_v0  ;;  %v2760_v13 = vpack.c.bf16 %v1777_v4, %v1776_v20 }
 0x531   :  { %v1773_v19 = vsel %vm5954_vm0, %v3121_v60, %v3126_v28  ;;  %v1772_v27 = vsel %vm5955_vm1, %v3120_v21, %v3125_v1  ;;  %vm5050_vm15 = vmpackc.low %vm5956_vm9, %vm5956_vm9  ;;  %2352 = vmatprep.subr.bf16.mxu1 %v1731_v50  ;;  %v3149_v30 = vpop.permute.xlu0 %3148 }
 0x532   :  { %vm5771_vm12 = vmpackc.low %vm5960_vm10, %vm5960_vm10  ;;  %v2757_v39 = vpack.c.bf16 %v1773_v19, %v1772_v27  ;;  %v3134_v59 = vpop.permute.xlu1 %3133  ;;  %v3151_v14 = vunpack.i.h.bf16 %v3149_v30  ;;  %v3150_v3 = vunpack.i.l.bf16 %v3149_v30 }
 0x533   :  { %vm5961_vm14 = vmpackc.low %vm3588_vm3, %vm3588_vm3  ;;  %v3136_v54 = vunpack.i.h.bf16 %v3134_v59  ;;  %v3135_v51 = vunpack.i.l.bf16 %v3134_v59  ;;  %vm5963_vm3 = vcmp.lt.s32.totalorder %v5922_v7, 15  ;;  %v3140_v7 = vunpack.i.l.bf16 %v3139_v33 }
 0x534   :  { %2841 = vmatpush1.bf16.msk.msra.mxu1 %vm5961_vm14, %v2840_v56  ;;  %2758 = vmatprep.subr.msk.bf16.mxu0 %vm5050_vm15, %v2757_v39  ;;  %vm5962_vm1 = vmmov %vm5954_vm0  ;;  %vm5967_vm14 = vnez %v5966_v62 }
 0x535   :  { %v1765_v2 = vsel %vm5954_vm0, %v3136_v54, %v3131_v58  ;;  %v1764_v22 = vsel %vm5962_vm1, %v3135_v51, %v3130_v46  ;;  %2761 = vmatpush1.bf16.msk.msra.mxu0 %vm5771_vm12, %v2760_v13  ;;  %vm5076_vm9 = vmpackc.low %vm5963_vm3, %vm5963_vm3  ;;  %v1769_v26 = vsel %vm5962_vm1, %v3126_v28, %v3136_v54  ;;  %v3159_v57 = vpop.permute.xlu0 %3158  ;;  %v3141_v46 = vunpack.i.h.bf16 %v3139_v33 }
 0x536   :  { %vm5772_vm0 = vmpackc.low %vm5967_vm14, %vm5967_vm14  ;;  %v2843_v5 = vpack.c.bf16 %v1765_v2, %v1764_v22  ;;  %v3144_v58 = vpop.permute.xlu1 %3143 }
 0x537   :  { %vm5968_vm7 = vmmov %vm5962_vm1  ;;  %v3146_v49 = vunpack.i.h.bf16 %v3144_v58  ;;  %v3145_v60 = vunpack.i.l.bf16 %v3144_v58 }
 0x538   :  { %v1768_v25 = vsel %vm5968_vm7, %v3125_v1, %v3135_v51  ;;  %2844 = vmatprep.subr.msk.bf16.mxu1 %vm5076_vm9, %v2843_v5  ;;  %vm5969_vm3 = vmmov %vm5962_vm1  ;;  %v3161_v51 = vunpack.i.h.bf16 %v3159_v57 }
 0x539   :  { %v2846_v44 = vpack.c.bf16 %v1769_v26, %v1768_v25  ;;  %v1778_v21 = vsel %vm5969_vm3, %v3150_v3, %v3140_v7  ;;  %vm5970_vm12 = vmmov %vm5962_vm1  ;;  %v1774_v33 = vsel %vm5962_vm1, %v3140_v7, %v3145_v60  ;;  %v3169_v8 = vpop.permute.xlu0 %3168 }
 0x53a   :  { %v1779_v24 = vsel %vm5970_vm12, %v3151_v14, %v3141_v46  ;;  %vm5971_vm7 = vmmov %vm5962_vm1  ;;  %v3154_v56 = vpop.permute.xlu1 %3153  ;;  %v3171_v50 = vunpack.i.h.bf16 %v3169_v8  ;;  %v3170_v19 = vunpack.i.l.bf16 %v3169_v8 }
 0x53b   :  { %v1775_v32 = vsel %vm5971_vm7, %v3141_v46, %v3146_v49  ;;  %2847 = vmatpush1.bf16.msk.msra.mxu1 %vm5772_vm0, %v2846_v44  ;;  %v3156_v1 = vunpack.i.h.bf16 %v3154_v56  ;;  %v2766_v20 = vpack.c.bf16 %v1779_v24, %v1778_v21  ;;  %v3155_v4 = vunpack.i.l.bf16 %v3154_v56  ;;  %vm5972_vm12 = vmmov %vm5962_vm1 }
 0x53c   :  { %v2763_v28 = vpack.c.bf16 %v1775_v32, %v1774_v33  ;;  %vm5973_vm3 = vmmov %vm5962_vm1 }
 0x53d   :  { %v1767_v27 = vsel %vm5972_vm12, %v3156_v1, %v3151_v14  ;;  %v1771_v39 = vsel %vm5973_vm3, %v3146_v49, %v3156_v1  ;;  %vm5974_vm7 = vmmov %vm5962_vm1  ;;  %v1770_v59 = vsel %vm5962_vm1, %v3145_v60, %v3155_v4  ;;  %v3179_v13 = vpop.permute.xlu0 %3178  ;;  %v3160_v14 = vunpack.i.l.bf16 %v3159_v57  ;;  %v5981_v49 = vld [vmem:[#allocation4_spill] sm:$0xff] }
 0x53e   :  { %2764 = vmatprep.subr.msk.bf16.mxu0 %vm5050_vm15, %v2763_v28  ;;  %v1766_v30 = vsel %vm5974_vm7, %v3155_v4, %v3150_v3  ;;  %vm5975_vm0 = vmpackc.low %vm5960_vm10, %vm5960_vm10  ;;  %v3164_v54 = vpop.permute.xlu1 %3163  ;;  %v2852_v22 = vpack.c.bf16 %v1771_v39, %v1770_v59  ;;  %vm5976_vm12 = vcmp.lt.s32.totalorder %v5909_v11, 1  ;;  %vm5982_vm1 = vcmp.ge.s32.totalorder %v5981_v49, 1 }
 0x53f   :  { %2767 = vmatpush1.bf16.msk.msra.mxu0 %vm5975_vm0, %v2766_v20  ;;  %v2849_v2 = vpack.c.bf16 %v1767_v27, %v1766_v30  ;;  %v3166_v25 = vunpack.i.h.bf16 %v3164_v54  ;;  %v3165_v26 = vunpack.i.l.bf16 %v3164_v54  ;;  %v1848_v3 = vsel %vm5976_vm12, %v3170_v19, %v3160_v14  ;;  %vm5977_vm3 = vmmov %vm5976_vm12  ;;  %v5988_v30 = vld [vmem:[#allocation6_spill] sm:$0xff] }
 0x540   :  { %v1849_v5 = vsel %vm5977_vm3, %v3171_v50, %v3161_v51  ;;  %vm5978_vm10 = vmmov %vm5977_vm3  ;;  %v3181_v4 = vunpack.i.h.bf16 %v3179_v13  ;;  %v3180_v27 = vunpack.i.l.bf16 %v3179_v13 }
 0x541   :  { %2850 = vmatprep.subr.msk.bf16.mxu1 %vm5076_vm9, %v2849_v2  ;;  %v1845_v0 = vsel %vm5978_vm10, %v3161_v51, %v3166_v25  ;;  %vm5979_vm0 = vmmov %vm5977_vm3  ;;  %v3189_v57 = vpop.permute.xlu0 %3188  ;;  %v2772_v21 = vpack.c.bf16 %v1849_v5, %v1848_v3 }
 0x542   :  { %v1844_v58 = vsel %vm5979_vm0, %v3160_v14, %v3165_v26  ;;  %vm5980_vm7 = vmpackc.low %vm5967_vm14, %vm5967_vm14  ;;  %v3174_v46 = vpop.permute.xlu1 %3173  ;;  %v3191_v32 = vunpack.i.h.bf16 %v3189_v57  ;;  %v3190_v33 = vunpack.i.l.bf16 %v3189_v57 }
 0x543   :  { %2853 = vmatpush1.bf16.msk.msra.mxu1 %vm5980_vm7, %v2852_v22  ;;  %v2769_v7 = vpack.c.bf16 %v1845_v0, %v1844_v58  ;;  %v3176_v44 = vunpack.i.h.bf16 %v3174_v46  ;;  %vm5135_vm12 = vmpackc.low %vm5982_vm1, %vm5982_vm1  ;;  %v3175_v24 = vunpack.i.l.bf16 %v3174_v46  ;;  %vm5989_vm7 = vcmp.ge.s32.totalorder %v5988_v30, 1 }
 0x544   :  { %vm5985_vm3 = vmmov %vm5979_vm0 }
 0x545   :  { %v1837_v62 = vsel %vm5985_vm3, %v3176_v44, %v3171_v50  ;;  %vm5986_vm14 = vmmov %vm5979_vm0  ;;  %2770 = vmatprep.subr.msk.bf16.mxu0 %vm4904_vm13, %v2769_v7  ;;  %v1840_v28 = vsel %vm5979_vm0, %v3165_v26, %v3175_v24  ;;  %v3199_v1 = vpop.permute.xlu0 %3198 }
 0x546   :  { %v1841_v8 = vsel %vm5986_vm14, %v3166_v25, %v3176_v44  ;;  %vm5987_vm10 = vmmov %vm5979_vm0  ;;  %2773 = vmatpush1.bf16.msk.msra.mxu0 %vm5135_vm12, %v2772_v21  ;;  %v3184_v20 = vpop.permute.xlu1 %3183  ;;  %v3200_v37 = vunpack.i.l.bf16 %v3199_v1 }
 0x547   :  { %v1836_v56 = vsel %vm5987_vm10, %v3175_v24, %v3170_v19  ;;  %v2858_v39 = vpack.c.bf16 %v1841_v8, %v1840_v28  ;;  %vm5154_vm1 = vmpackc.low %vm5989_vm7, %vm5989_vm7  ;;  %v3186_v19 = vunpack.i.h.bf16 %v3184_v20  ;;  %v3185_v54 = vunpack.i.l.bf16 %v3184_v20 }
 0x548   :  { %v2855_v50 = vpack.c.bf16 %v1837_v62, %v1836_v56  ;;  %vm5992_vm3 = vmmov %vm5979_vm0 }
 0x549   :  { %v1850_v51 = vsel %vm5992_vm3, %v3190_v33, %v3180_v27  ;;  %vm5993_vm14 = vmmov %vm5979_vm0  ;;  %v1846_v2 = vsel %vm5979_vm0, %v3180_v27, %v3185_v54  ;;  %v3209_v22 = vpop.permute.xlu0 %3208 }
 0x54a   :  { %v1851_v14 = vsel %vm5993_vm14, %v3191_v32, %v3181_v4  ;;  %2856 = vmatprep.subr.msk.bf16.mxu1 %vm4934_vm8, %v2855_v50  ;;  %vm5994_vm10 = vmmov %vm5979_vm0  ;;  %v3194_v25 = vpop.permute.xlu1 %3193  ;;  %v3211_v28 = vunpack.i.h.bf16 %v3209_v22 }
 0x54b   :  { %v1847_v13 = vsel %vm5994_vm10, %v3181_v4, %v3186_v19  ;;  %2859 = vmatpush1.bf16.msk.msra.mxu1 %vm5154_vm1, %v2858_v39  ;;  %v3196_v3 = vunpack.i.h.bf16 %v3194_v25  ;;  %v2778_v5 = vpack.c.bf16 %v1851_v14, %v1850_v51  ;;  %v3195_v0 = vunpack.i.l.bf16 %v3194_v25  ;;  %vm5995_vm7 = vmmov %vm5979_vm0 }
 0x54c   :  { %v2775_v26 = vpack.c.bf16 %v1847_v13, %v1846_v2  ;;  %vm5996_vm3 = vmmov %vm5979_vm0 }
 0x54d   :  { %v1839_v58 = vsel %vm5995_vm7, %v3196_v3, %v3191_v32  ;;  %v1843_v57 = vsel %vm5996_vm3, %v3186_v19, %v3196_v3  ;;  %vm5997_vm14 = vmmov %vm5979_vm0  ;;  %v3219_v44 = vpop.permute.xlu0 %3218  ;;  %v3201_v32 = vunpack.i.h.bf16 %v3199_v1 }
 0x54e   :  { %2776 = vmatprep.subr.msk.bf16.mxu0 %vm4904_vm13, %v2775_v26  ;;  %v1838_v46 = vsel %vm5997_vm14, %v3195_v0, %v3190_v33  ;;  %vm5998_vm10 = vmmov %vm5979_vm0  ;;  %v3204_v21 = vpop.permute.xlu1 %3203  ;;  %v3210_v33 = vunpack.i.l.bf16 %v3209_v22  ;;  %vm5999_vm13 = vcmp.lt.s32.totalorder %v5909_v11, 127  ;;  %v3220_v50 = vunpack.i.l.bf16 %v3219_v44 }
 0x54f   :  { %v1842_v7 = vsel %vm5998_vm10, %v3185_v54, %v3195_v0  ;;  %2779 = vmatpush1.bf16.msk.msra.mxu0 %vm5135_vm12, %v2778_v5  ;;  %v2861_v24 = vpack.c.bf16 %v1839_v58, %v1838_v46  ;;  %v3206_v8 = vunpack.i.h.bf16 %v3204_v21  ;;  %v3205_v56 = vunpack.i.l.bf16 %v3204_v21  ;;  %vm6000_vm0 = vmmov %vm5999_vm13 }
 0x550   :  { %v2864_v62 = vpack.c.bf16 %v1843_v57, %v1842_v7  ;;  %2256 = vmatprep.subr.bf16.mxu0 %v1877_v42  ;;  %vm6002_vm7 = vmmov %vm6000_vm0  ;;  %v3221_v48 = vunpack.i.h.bf16 %v3219_v44  ;;  %vm6005_vm10 = vcmp.lt.s32.totalorder %v5981_v49, 15 }
 0x551   :  { %2862 = vmatprep.subr.msk.bf16.mxu1 %vm4934_vm8, %v2861_v24  ;;  %v1921_v20 = vsel %vm5999_vm13, %v3201_v32, %v3206_v8  ;;  %v1920_v4 = vsel %vm6000_vm0, %v3200_v37, %v3205_v56  ;;  %v3229_v53 = vpop.permute.xlu0 %3228  ;;  %vm6001_vm8 = vmmov %vm6000_vm0  ;;  %v1925_v16 = vsel %vm6002_vm7, %v3211_v28, %v3201_v32 }
 0x552   :  { %2865 = vmatpush1.bf16.msk.msra.mxu1 %vm5154_vm1, %v2864_v62  ;;  %v3214_v36 = vpop.permute.xlu1 %3213  ;;  %v3230_v35 = vunpack.i.l.bf16 %v3229_v53  ;;  %v1924_v12 = vsel %vm6001_vm8, %v3210_v33, %v3200_v37  ;;  %v3231_v27 = vunpack.i.h.bf16 %v3229_v53  ;;  %vm6003_vm3 = vmmov %vm6000_vm0 }
 0x553   :  { %2257 = vmatpush1.bf16.msra.mxu0 %v1876_v55  ;;  %v3216_v42 = vunpack.i.h.bf16 %v3214_v36  ;;  %2362 = vmatprep.subr.bf16.mxu1 %v1879_v40  ;;  %v3215_v1 = vunpack.i.l.bf16 %v3214_v36  ;;  %v2781_v55 = vpack.c.bf16 %v1921_v20, %v1920_v4  ;;  %vm6004_vm14 = vmmov %vm6000_vm0  ;;  %v2784_v41 = vpack.c.bf16 %v1925_v16, %v1924_v12 }
 0x554   :  { %2258 = vmatprep.subr.bf16.mxu0 %v1881_v6  ;;  %vm5224_vm13 = vmpackc.low %vm6005_vm10, %vm6005_vm10  ;;  %v1926_v9 = vsel %vm6000_vm0, %v3230_v35, %v3220_v50 }
 0x555   :  { %v1929_v39 = vsel %vm6003_vm3, %v3216_v42, %v3211_v28  ;;  %v1928_v38 = vsel %vm6004_vm14, %v3215_v1, %v3210_v33  ;;  %v3239_v43 = vpop.permute.xlu0 %3238  ;;  %vm6008_vm8 = vmmov %vm6000_vm0 }
 0x556   :  { %2363 = vmatpush1.bf16.msra.mxu1 %v1878_v29  ;;  %v3224_v52 = vpop.permute.xlu1 %3223  ;;  %v1927_v40 = vsel %vm6008_vm8, %v3231_v27, %v3221_v48  ;;  %vm6009_vm7 = vmmov %vm6000_vm0  ;;  %v3241_v0 = vunpack.i.h.bf16 %v3239_v43  ;;  %v3240_v58 = vunpack.i.l.bf16 %v3239_v43 }
 0x557   :  { %2259 = vmatpush1.bf16.msra.mxu0 %v1880_v45  ;;  %2364 = vmatprep.subr.bf16.mxu1 %v1883_v31  ;;  %v3226_v34 = vunpack.i.h.bf16 %v3224_v52  ;;  %v3225_v6 = vunpack.i.l.bf16 %v3224_v52  ;;  %v1916_v61 = vsel %vm6009_vm7, %v3205_v56, %v3215_v1  ;;  %vm6010_vm3 = vmmov %vm6000_vm0  ;;  %v2867_v45 = vpack.c.bf16 %v1929_v39, %v1928_v38 }
 0x558   :  { %2782 = vmatprep.subr.msk.bf16.mxu0 %vm5050_vm15, %v2781_v55  ;;  %v1917_v15 = vsel %vm6010_vm3, %v3206_v8, %v3216_v42  ;;  %vm6011_vm14 = vmmov %vm6000_vm0  ;;  %v2790_v13 = vpack.c.bf16 %v1927_v40, %v1926_v9 }
 0x559   :  { %v1923_v29 = vsel %vm6011_vm14, %v3221_v48, %v3226_v34  ;;  %vm6012_vm10 = vmmov %vm6000_vm0  ;;  %v3249_v49 = vpop.permute.xlu0 %3248  ;;  %vm6013_vm0 = vcmp.lt.s32.totalorder %v5988_v30, 15  ;;  %v2870_v2 = vpack.c.bf16 %v1917_v15, %v1916_v61 }
 0x55a   :  { %v1922_v31 = vsel %vm6012_vm10, %v3220_v50, %v3225_v6  ;;  %2365 = vmatpush1.bf16.msra.mxu1 %v1882_v18  ;;  %v3234_v19 = vpop.permute.xlu1 %3233  ;;  %vm5250_vm8 = vmpackc.low %vm6013_vm0, %vm6013_vm0  ;;  %v3251_v25 = vunpack.i.h.bf16 %v3249_v49  ;;  %v3250_v17 = vunpack.i.l.bf16 %v3249_v49 }
 0x55b   :  { %2785 = vmatpush1.bf16.msk.msra.mxu0 %vm5224_vm13, %v2784_v41  ;;  %v2787_v54 = vpack.c.bf16 %v1923_v29, %v1922_v31  ;;  %v3236_v51 = vunpack.i.h.bf16 %v3234_v19  ;;  %2868 = vmatprep.subr.msk.bf16.mxu1 %vm5076_vm9, %v2867_v45  ;;  %v3235_v22 = vunpack.i.l.bf16 %v3234_v19  ;;  %vm6016_vm7 = vmmov %vm6010_vm3 }
 0x55c   :  { %vm6017_vm14 = vmmov %vm6010_vm3 }
 0x55d   :  { %v1931_v47 = vsel %vm6016_vm7, %v3236_v51, %v3231_v27  ;;  %v1919_v18 = vsel %vm6010_vm3, %v3226_v34, %v3236_v51  ;;  %2788 = vmatprep.subr.msk.bf16.mxu0 %vm5050_vm15, %v2787_v54  ;;  %v1918_v30 = vsel %vm6017_vm14, %v3225_v6, %v3235_v22  ;;  %vm6018_vm10 = vmmov %vm6010_vm3  ;;  %v3259_v3 = vpop.permute.xlu0 %3258  ;;  %vm6019_vm15 = vcmp.lt.s32.totalorder %v5909_v11, 113 }
 0x55e   :  { %v1930_v26 = vsel %vm6018_vm10, %v3235_v22, %v3230_v35  ;;  %2871 = vmatpush1.bf16.msk.msra.mxu1 %vm5250_vm8, %v2870_v2  ;;  %v3244_v5 = vpop.permute.xlu1 %3243  ;;  %v2876_v46 = vpack.c.bf16 %v1919_v18, %v1918_v30  ;;  %v1996_v44 = vsel %vm6019_vm15, %v3250_v17, %v3240_v58  ;;  %vm6020_vm0 = vmmov %vm6019_vm15  ;;  %v3261_v55 = vunpack.i.h.bf16 %v3259_v3 }
 0x55f   :  { %2791 = vmatpush1.bf16.msk.msra.mxu0 %vm5224_vm13, %v2790_v13  ;;  %v2873_v57 = vpack.c.bf16 %v1931_v47, %v1930_v26  ;;  %v3246_v63 = vunpack.i.h.bf16 %v3244_v5  ;;  %v3245_v7 = vunpack.i.l.bf16 %v3244_v5  ;;  %v1997_v21 = vsel %vm6020_vm0, %v3251_v25, %v3241_v0  ;;  %vm6021_vm7 = vmmov %vm6020_vm0 }
 0x560   :  { %vm6022_vm3 = vmmov %vm6020_vm0  ;;  %v2796_v33 = vpack.c.bf16 %v1997_v21, %v1996_v44  ;;  %v3260_v27 = vunpack.i.l.bf16 %v3259_v3 }
 0x561   :  { %2874 = vmatprep.subr.msk.bf16.mxu1 %vm5076_vm9, %v2873_v57  ;;  %v1993_v24 = vsel %vm6021_vm7, %v3241_v0, %v3246_v63  ;;  %v1992_v62 = vsel %vm6022_vm3, %v3240_v58, %v3245_v7  ;;  %v3269_v32 = vpop.permute.xlu0 %3268  ;;  %vm2792_vm14 = vmpackc.low %vm3783_vm5, %vm3783_vm5  ;;  %vm6035_vm5 = vcmp.lt.s32.totalorder %v5909_v11, 112  ;;  %v3366_v57 = vld [vmem:[%s5663_s10 + $0x18] ss:$12 sps:$4 sm:$0xff]  }
 0x562   :  { %2877 = vmatpush1.bf16.msk.msra.mxu1 %vm5250_vm8, %v2876_v46  ;;  %v3254_v37 = vpop.permute.xlu1 %3253  ;;  %v2793_v56 = vpack.c.bf16 %v1993_v24, %v1992_v62  ;;  %v3271_v20 = vunpack.i.h.bf16 %v3269_v32  ;;  %v3270_v4 = vunpack.i.l.bf16 %v3269_v32  ;;  %vm6024_vm9 = vmmov %vm6020_vm0 }
 0x563   :  { %v3256_v28 = vunpack.i.h.bf16 %v3254_v37  ;;  %v3255_v23 = vunpack.i.l.bf16 %v3254_v37  ;;  %vm6025_vm10 = vmmov %vm6020_vm0 }
 0x564   :  { %2794 = vmatprep.subr.msk.bf16.mxu0 %vm2792_vm14, %v2793_v56  ;;  %vm6026_vm15 = vmmov %vm6020_vm0 }
 0x565   :  { %v2001_v53 = vsel %vm6024_vm9, %v3256_v28, %v3251_v25  ;;  %v1989_v36 = vsel %vm6025_vm10, %v3246_v63, %v3256_v28  ;;  %v1988_v42 = vsel %vm6026_vm15, %v3245_v7, %v3255_v23  ;;  %v2000_v35 = vsel %vm6020_vm0, %v3255_v23, %v3250_v17  ;;  %2797 = vmatpush1.bf16.msk.msra.mxu0 %vm5135_vm12, %v2796_v33  ;;  %v3279_v1 = vpop.permute.xlu0 %3278  ;;  %vm2878_vm7 = vmpackc.low %vm3814_vm11, %vm3814_vm11 }
 0x566   :  { %v3264_v12 = vpop.permute.xlu1 %3263  ;;  %v2879_v50 = vpack.c.bf16 %v2001_v53, %v2000_v35  ;;  %v2882_v39 = vpack.c.bf16 %v1989_v36, %v1988_v42  ;;  %vm6028_vm3 = vmmov %vm6020_vm0  ;;  %v3281_v22 = vunpack.i.h.bf16 %v3279_v1  ;;  %v3280_v25 = vunpack.i.l.bf16 %v3279_v1 }
 0x567   :  { %v3266_v38 = vunpack.i.h.bf16 %v3264_v12  ;;  %v3265_v43 = vunpack.i.l.bf16 %v3264_v12  ;;  %v1998_v52 = vsel %vm6028_vm3, %v3270_v4, %v3260_v27  ;;  %vm6029_vm9 = vmmov %vm6020_vm0 }
 0x568   :  { %v1999_v48 = vsel %vm6029_vm9, %v3271_v20, %v3261_v55  ;;  %2880 = vmatprep.subr.msk.bf16.mxu1 %vm2878_vm7, %v2879_v50  ;;  %vm6030_vm10 = vmmov %vm6020_vm0 }
 0x569   :  { %v1995_v41 = vsel %vm6030_vm10, %v3261_v55, %v3266_v38  ;;  %vm6031_vm15 = vmmov %vm6020_vm0  ;;  %2883 = vmatpush1.bf16.msk.msra.mxu1 %vm5154_vm1, %v2882_v39  ;;  %v3289_v34 = vpop.permute.xlu0 %3288  ;;  %v2802_v15 = vpack.c.bf16 %v1999_v48, %v1998_v52 }
 0x56a   :  { %v1994_v9 = vsel %vm6031_vm15, %v3260_v27, %v3265_v43  ;;  %v3274_v6 = vpop.permute.xlu1 %3273  ;;  %v3291_v29 = vunpack.i.h.bf16 %v3289_v34  ;;  %v3290_v31 = vunpack.i.l.bf16 %v3289_v34  ;;  %vm6032_vm3 = vmmov %vm6020_vm0 }
 0x56b   :  { %v2799_v40 = vpack.c.bf16 %v1995_v41, %v1994_v9  ;;  %v3276_v61 = vunpack.i.h.bf16 %v3274_v6  ;;  %v3275_v45 = vunpack.i.l.bf16 %v3274_v6  ;;  %vm6033_vm9 = vmmov %vm6020_vm0  ;;  %v3361_v9 = vld [vmem:[%s5663_s10] ss:$12 sps:$4 sm:$0xff]  }
 0x56c   :  { %vm6034_vm10 = vmmov %vm6020_vm0  ;;  %v2068_v26 = vsel %vm6035_vm5, %v3290_v31, %v3280_v25 }
 0x56d   :  { %v2003_v49 = vsel %vm6020_vm0, %v3276_v61, %v3271_v20  ;;  %v1991_v19 = vsel %vm6032_vm3, %v3266_v38, %v3276_v61  ;;  %2800 = vmatprep.subr.msk.bf16.mxu0 %vm2792_vm14, %v2799_v40  ;;  %v1990_v54 = vsel %vm6033_vm9, %v3265_v43, %v3275_v45  ;;  %v2002_v51 = vsel %vm6034_vm10, %v3275_v45, %v3270_v4  ;;  %v3299_v13 = vpop.permute.xlu0 %3298  ;;  %vm6036_vm14 = vmmov %vm6035_vm5 }
 0x56e   :  { %2803 = vmatpush1.bf16.msk.msra.mxu0 %vm5135_vm12, %v2802_v15  ;;  %v3284_v2 = vpop.permute.xlu1 %3283  ;;  %v2885_v17 = vpack.c.bf16 %v2003_v49, %v2002_v51  ;;  %v2888_v47 = vpack.c.bf16 %v1991_v19, %v1990_v54  ;;  %v2069_v3 = vsel %vm6036_vm14, %v3291_v29, %v3281_v22  ;;  %vm6037_vm12 = vmmov %vm6035_vm5  ;;  %v3301_v33 = vunpack.i.h.bf16 %v3299_v13  ;;  %v3364_v15 = vld [vmem:[%s5663_s10 + $0x1c] ss:$12 sps:$4 sm:$0xff]  }
 0x56f   :  { %v3286_v18 = vunpack.i.h.bf16 %v3284_v2  ;;  %v3285_v30 = vunpack.i.l.bf16 %v3284_v2  ;;  %vm6038_vm15 = vmmov %vm6035_vm5  ;;  %v2092_v7 = vpack.c.bf16 %v2069_v3, %v2068_v26  ;;  %v3300_v23 = vunpack.i.l.bf16 %v3299_v13 }
 0x570   :  { %2886 = vmatprep.subr.msk.bf16.mxu1 %vm2878_vm7, %v2885_v17  ;;  %vm2804_vm0 = vmpackc.low %vm3742_vm4, %vm3742_vm4  ;;  %vm6052_vm4 = vcmp.lt.s32.totalorder %v5909_v11, 111  ;;  %v3368_v11 = vld [vmem:[%s5663_s10 + $0x20] ss:$12 sps:$4 sm:$0xff]  }
 0x571   :  { %v2065_v60 = vsel %vm6037_vm12, %v3281_v22, %v3286_v18  ;;  %v2064_v5 = vsel %vm6038_vm15, %v3280_v25, %v3285_v30  ;;  %2889 = vmatpush1.bf16.msk.msra.mxu1 %vm5154_vm1, %v2888_v47  ;;  %v3309_v0 = vpop.permute.xlu0 %3308  ;;  %vm6040_vm11 = vmmov %vm6035_vm5 }
 0x572   :  { %v3294_v58 = vpop.permute.xlu1 %3293  ;;  %v2805_v46 = vpack.c.bf16 %v2065_v60, %v2064_v5  ;;  %v3311_v21 = vunpack.i.h.bf16 %v3309_v0  ;;  %v3310_v24 = vunpack.i.l.bf16 %v3309_v0  ;;  %vm6041_vm7 = vmmov %vm6035_vm5 }
 0x573   :  { %v3296_v63 = vunpack.i.h.bf16 %v3294_v58  ;;  %v3295_v44 = vunpack.i.l.bf16 %v3294_v58  ;;  %vm6042_vm1 = vmmov %vm6035_vm5 }
 0x574   :  { %2806 = vmatprep.subr.msk.bf16.mxu0 %vm2804_vm0, %v2805_v46  ;;  %vm6043_vm3 = vmmov %vm6042_vm1 }
 0x575   :  { %v2073_v62 = vsel %vm6040_vm11, %v3296_v63, %v3291_v29  ;;  %v2061_v32 = vsel %vm6041_vm7, %v3286_v18, %v3296_v63  ;;  %v2060_v59 = vsel %vm6042_vm1, %v3285_v30, %v3295_v44  ;;  %v2072_v37 = vsel %vm6043_vm3, %v3295_v44, %v3290_v31  ;;  %2269 = vmatpush1.bf16.msra.mxu0 %v2092_v7  ;;  %v3319_v8 = vpop.permute.xlu0 %3318  ;;  %vm2890_vm9 = vmpackc.low %vm3792_vm2, %vm3792_vm2 }
 0x576   :  { %v3304_v56 = vpop.permute.xlu1 %3303  ;;  %v2094_v20 = vpack.c.bf16 %v2061_v32, %v2060_v59  ;;  %v2891_v4 = vpack.c.bf16 %v2073_v62, %v2072_v37  ;;  %vm6045_vm10 = vmmov %vm6042_vm1  ;;  %v3321_v45 = vunpack.i.h.bf16 %v3319_v8  ;;  %v3320_v29 = vunpack.i.l.bf16 %v3319_v8 }
 0x577   :  { %v3306_v53 = vunpack.i.h.bf16 %v3304_v56  ;;  %v3305_v36 = vunpack.i.l.bf16 %v3304_v56  ;;  %v2070_v42 = vsel %vm6045_vm10, %v3310_v24, %v3300_v23  ;;  %vm6046_vm5 = vmmov %vm6042_vm1 }
 0x578   :  { %v2071_v35 = vsel %vm6046_vm5, %v3311_v21, %v3301_v33  ;;  %2892 = vmatprep.subr.msk.bf16.mxu1 %vm2890_vm9, %v2891_v4  ;;  %vm6047_vm14 = vmmov %vm6042_vm1  ;;  %v6066_v4 = vmov 0  }
 0x579   :  { %v2067_v1 = vsel %vm6047_vm14, %v3301_v33, %v3306_v53  ;;  %vm6048_vm12 = vmmov %vm6042_vm1  ;;  %2375 = vmatpush1.bf16.msra.mxu1 %v2094_v20  ;;  %v3329_v16 = vpop.permute.xlu0 %3328  ;;  %v2096_v39 = vpack.c.bf16 %v2071_v35, %v2070_v42 }
 0x57a   :  { %v2066_v12 = vsel %vm6048_vm12, %v3300_v23, %v3305_v36  ;;  %v3314_v55 = vpop.permute.xlu1 %3313  ;;  %v3331_v43 = vunpack.i.h.bf16 %v3329_v16  ;;  %v3330_v52 = vunpack.i.l.bf16 %v3329_v16  ;;  %vm6049_vm15 = vmmov %vm6042_vm1 }
 0x57b   :  { %v2808_v27 = vpack.c.bf16 %v2067_v1, %v2066_v12  ;;  %v3316_v50 = vunpack.i.h.bf16 %v3314_v55  ;;  %v3315_v38 = vunpack.i.l.bf16 %v3314_v55  ;;  %vm6050_vm11 = vmmov %vm6042_vm1  ;;  %v3367_v55 = vld [vmem:[%s5663_s10 + $0x8] ss:$12 sps:$4 sm:$0xff]  }
 0x57c   :  { %vm6051_vm7 = vmmov %vm6042_vm1  ;;  %v2140_v51 = vsel %vm6052_vm4, %v3330_v52, %v3320_v29 }
 0x57d   :  { %v2075_v48 = vsel %vm6049_vm15, %v3316_v50, %v3311_v21  ;;  %v2063_v41 = vsel %vm6050_vm11, %v3306_v53, %v3316_v50  ;;  %2809 = vmatprep.subr.msk.bf16.mxu0 %vm2804_vm0, %v2808_v27  ;;  %v2062_v34 = vsel %vm6051_vm7, %v3305_v36, %v3315_v38  ;;  %v2074_v6 = vsel %vm6042_vm1, %v3315_v38, %v3310_v24  ;;  %v3339_v40 = vpop.permute.xlu0 %3338  ;;  %vm6053_vm0 = vmmov %vm6052_vm4  ;;  %v6061_v24 = vld [vmem:[#allocation19_spill] sm:$0xff] }
 0x57e   :  { %2271 = vmatpush1.bf16.msra.mxu0 %v2096_v39  ;;  %v3324_v61 = vpop.permute.xlu1 %3323  ;;  %v2098_v31 = vpack.c.bf16 %v2063_v41, %v2062_v34  ;;  %v2894_v49 = vpack.c.bf16 %v2075_v48, %v2074_v6  ;;  %v2141_v13 = vsel %vm6053_vm0, %v3331_v43, %v3321_v45  ;;  %vm6054_vm3 = vmmov %vm6053_vm0  ;;  %v3341_v46 = vunpack.i.h.bf16 %v3339_v40 }
 0x57f   :  { %v3326_v19 = vunpack.i.h.bf16 %v3324_v61  ;;  %v3325_v54 = vunpack.i.l.bf16 %v3324_v61  ;;  %vm6055_vm10 = vmmov %vm6053_vm0  ;;  %v2814_v26 = vpack.c.bf16 %v2141_v13, %v2140_v51  ;;  %v3340_v63 = vunpack.i.l.bf16 %v3339_v40 }
 0x580   :  { %2895 = vmatprep.subr.msk.bf16.mxu1 %vm2890_vm9, %v2894_v49  ;;  %vm2810_vm5 = vmpackc.low %vm3849_vm6, %vm3849_vm6  ;;  %vm6062_vm15 = vnez %v6061_v24  ;;  %vm6071_vm6 = vcmask 261120  }
 0x581   :  { %2273 = vmatmul.mubr.bf16.vlgmr.msra.gmra.mrb[20].mxu0 %v3361_v9  ;;  %v2137_v2 = vsel %vm6054_vm3, %v3321_v45, %v3326_v19  ;;  %v2136_v22 = vsel %vm6055_vm10, %v3320_v29, %v3325_v54  ;;  %2377 = vmatpush1.bf16.msra.mxu1 %v2098_v31  ;;  %v3349_v25 = vpop.permute.xlu0 %3348  ;;  %vm6057_vm2 = vmmov %vm6053_vm0 }
 0x582   :  { %v3334_v17 = vpop.permute.xlu1 %3333  ;;  %2282 = vmatprep.mubr.bf16.mxu0 %v3364_v15  ;;  %v2811_v18 = vpack.c.bf16 %v2137_v2, %v2136_v22  ;;  %v3351_v3 = vunpack.i.h.bf16 %v3349_v25  ;;  %v3350_v60 = vunpack.i.l.bf16 %v3349_v25  ;;  %vm6058_vm9 = vmmov %vm6053_vm0 }
 0x583   :  { %v3336_v30 = vunpack.i.h.bf16 %v3334_v17  ;;  %v3335_v5 = vunpack.i.l.bf16 %v3334_v17  ;;  %vm6059_vm14 = vmmov %vm6053_vm0 }
 0x584   :  { %2812 = vmatprep.subr.msk.bf16.mxu0 %vm2810_vm5, %v2811_v18  ;;  %vm6060_vm12 = vmmov %vm6053_vm0  ;;  %2379 = vmatmul.mubr.bf16.vlgmr.msra.gmra.mrb[20].mxu1 %v3361_v9 }
 0x585   :  { %v2145_v0 = vsel %vm6057_vm2, %v3336_v30, %v3331_v43  ;;  %v2133_v58 = vsel %vm6058_vm9, %v3326_v19, %v3336_v30  ;;  %v2132_v7 = vsel %vm6059_vm14, %v3325_v54, %v3335_v5  ;;  %v2144_v44 = vsel %vm6060_vm12, %v3335_v5, %v3330_v52  ;;  %2815 = vmatpush1.bf16.msk.msra.mxu0 %vm5224_vm13, %v2814_v26  ;;  %vm2896_vm11 = vmpackc.low %vm6062_vm15, %vm6062_vm15 }
 0x586   :  { %v3344_v21 = vpop.permute.xlu1 %3343  ;;  %v2897_v62 = vpack.c.bf16 %v2145_v0, %v2144_v44  ;;  %v2900_v32 = vpack.c.bf16 %v2133_v58, %v2132_v7  ;;  %2388 = vmatprep.mubr.bf16.mxu1 %v3364_v15  ;;  %vm6063_vm7 = vmmov %vm6053_vm0 }
 0x587   :  { %v3346_v59 = vunpack.i.h.bf16 %v3344_v21  ;;  %v3345_v37 = vunpack.i.l.bf16 %v3344_v21  ;;  %v2142_v8 = vsel %vm6063_vm7, %v3350_v60, %v3340_v63  ;;  %vm6064_vm1 = vmmov %vm6053_vm0 }
 0x588   :  { %v2143_v56 = vsel %vm6064_vm1, %v3351_v3, %v3341_v46  ;;  %vm6065_vm4 = vmmov %vm6053_vm0  ;;  %2898 = vmatprep.subr.msk.bf16.mxu1 %vm2896_vm11, %v2897_v62 }
 0x589   :  { %v2139_v28 = vsel %vm6065_vm4, %v3341_v46, %v3346_v59  ;;  %v2138_v33 = vsel %vm6053_vm0, %v3340_v63, %v3345_v37  ;;  %2283 = vmatmul.mubr.bf16.gmra.mrb[24].mxu0 %v3366_v57  ;;  %2901 = vmatpush1.bf16.msk.msra.mxu1 %vm5250_vm8, %v2900_v32  ;;  %v2820_v53 = vpack.c.bf16 %v2143_v56, %v2142_v8  ;;  %vm6067_vm3 = vmmov %vm6053_vm0 }
 0x58a   :  { %v2817_v23 = vpack.c.bf16 %v2139_v28, %v2138_v33  ;;  %v3354_v20 = vpop.permute.xlu1 %3353  ;;  %2325 = vmatprep.mubr.bf16.mxu0 %v6066_v4  ;;  %vm6068_vm10 = vmmov %vm6053_vm0 }
 0x58b   :  { %v3356_v36 = vunpack.i.h.bf16 %v3354_v20  ;;  %v3355_v42 = vunpack.i.l.bf16 %v3354_v20  ;;  %vm6069_vm2 = vmmov %vm6053_vm0 }
 0x58c   :  { %2818 = vmatprep.subr.msk.bf16.mxu0 %vm2810_vm5, %v2817_v23  ;;  %vm6070_vm9 = vmmov %vm6053_vm0  ;;  %2389 = vmatmul.mubr.bf16.gmra.mrb[24].mxu1 %v3366_v57 }
 0x58d   :  { %v2147_v35 = vsel %vm6067_vm3, %v3356_v36, %v3351_v3  ;;  %v2134_v1 = vsel %vm6068_vm10, %v3345_v37, %v3355_v42  ;;  %v2135_v12 = vsel %vm6069_vm2, %v3346_v59, %v3356_v36  ;;  %v2146_v16 = vsel %vm6070_vm9, %v3355_v42, %v3350_v60  ;;  %2821 = vmatpush1.bf16.msk.msra.mxu0 %vm5224_vm13, %v2820_v53  ;;  %vm6072_vm13 = vmmov %vm6071_vm6 }
 0x58e   :  { %v2903_v27 = vpack.c.bf16 %v2147_v35, %v2146_v16  ;;  %v2906_v50 = vpack.c.bf16 %v2135_v12, %v2134_v1  ;;  %2431 = vmatprep.mubr.bf16.mxu1 %v6066_v4  ;;  %vm6073_vm5 = vmmov %vm6071_vm6 }
 0x58f   :  { %vm6074_vm14 = vmmov %vm6073_vm5 }
 0x590   :  { %2904 = vmatprep.subr.msk.bf16.mxu1 %vm2896_vm11, %v2903_v27 }
 0x591   :  { %2822 = vmatmul.mubr.msk.bf16.vlgmr.msra.gmra.mrb[20].mxu0 %vm6071_vm6, %v3367_v55  ;;  %2907 = vmatpush1.bf16.msk.msra.mxu1 %vm5250_vm8, %v2906_v50  ;;  %v2187_v10 = vpop.permute.xlu0 %2186 }
 0x592   :  { %2335 = vmatprep.mubr.bf16.mxu0 %v6066_v4 }
 0x594   :  { %2908 = vmatmul.mubr.msk.bf16.vlgmr.msra.gmra.mrb[20].mxu1 %vm6072_vm13, %v3367_v55 }
 0x595   :  { %2441 = vmatprep.mubr.bf16.mxu1 %v6066_v4  ;;  %v2197_v54 = vpop.permute.xlu0 %2196 }
 0x599   :  { %2823 = vmatmul.mubr.msk.bf16.gmra.mrb[24].mxu0 %vm6073_vm5, %v3368_v11 }
 0x59b   :  { %v2192_v43 = vpop.permute.xlu1 %2191 }
 0x59c   :  { %2909 = vmatmul.mubr.msk.bf16.gmra.mrb[24].mxu1 %vm6074_vm14, %v3368_v11 }
 0x59f   :  { %v2202_v0 = vpop.permute.xlu1 %2201 }
 0x664   :  { %v2327_v39 = vpop.f32.mrb[20].mxu0 }
 0x665   :  { %v5485_v38 = vadd.f32 %v2327_v39, %v2187_v10  ;;  %v2329_v14 = vpop.f32.mrb[21].mxu0 }
 0x666   :  { %v5487_v52 = vadd.f32 %v2329_v14, %v2187_v10  ;;  %v2331_v48 = vpop.f32.mrb[22].mxu0 }
 0x667   :  { %v2476_v41 = vmul.f32 %v5485_v38, %v5485_v38  ;;  %v5491_v9 = vadd.f32 %v2331_v48, %v2192_v43  ;;  %v2333_v34 = vpop.f32.mrb[23].mxu0  ;;  %v2433_v45 = vpop.f32.mrb[20].mxu1 }
 0x668   :  { %v2452_v6 = vadd.f32 %v5487_v52, %v5485_v38  ;;  %v2477_v40 = vmul.f32 %v5487_v52, %v5487_v52  ;;  %v5497_v61 = vadd.f32 %v2333_v34, %v2192_v43  ;;  %v5505_v49 = vadd.f32 %v2433_v45, %v2187_v10  ;;  %v2435_v19 = vpop.f32.mrb[21].mxu1 }
 0x669   :  { %v2480_v15 = vmul.f32 %v5491_v9, %v5491_v9  ;;  %v5507_v13 = vadd.f32 %v2435_v19, %v2187_v10  ;;  %v2437_v2 = vpop.f32.mrb[22].mxu1 }
 0x66a   :  { %v2457_v29 = vadd.f32 %v5497_v61, %v5491_v9  ;;  %v2481_v31 = vmul.f32 %v5497_v61, %v5497_v61  ;;  %v2492_v51 = vadd.f32 %v2477_v40, %v2476_v41  ;;  %v2453_v22 = vadd.f32 %v5505_v49, %v2452_v6  ;;  %v2439_v47 = vpop.f32.mrb[23].mxu1 }
 0x66b   :  { %v2478_v25 = vmul.f32 %v5505_v49, %v5505_v49  ;;  %v5512_v17 = vadd.f32 %v2437_v2, %v2192_v43  ;;  %v2479_v26 = vmul.f32 %v5507_v13, %v5507_v13  ;;  %v5516_v3 = vadd.f32 %v2439_v47, %v2192_v43 }
 0x66c   :  { %v2337_v18 = vpop.f32.mrb[24].mxu0  ;;  %v2497_v30 = vadd.f32 %v2481_v31, %v2480_v15  ;;  %v2454_v7 = vadd.f32 %v5507_v13, %v2453_v22 }
 0x66d   :  { %v5518_v60 = vadd.f32 %v2337_v18, %v2197_v54  ;;  %v2339_v5 = vpop.f32.mrb[25].mxu0  ;;  %v2458_v58 = vadd.f32 %v5512_v17, %v2457_v29  ;;  %v2482_v57 = vmul.f32 %v5512_v17, %v5512_v17  ;;  %v2483_v44 = vmul.f32 %v5516_v3, %v5516_v3 }
 0x66e   :  { %v5523_v46 = vadd.f32 %v2339_v5, %v2197_v54  ;;  %v2341_v63 = vpop.f32.mrb[26].mxu0  ;;  %v2493_v32 = vadd.f32 %v2492_v51, %v2478_v25  ;;  %2455 = vadd.xlane.f32.xlu0 %v2454_v7 }
 0x66f   :  { %v2484_v21 = vmul.f32 %v5518_v60, %v5518_v60  ;;  %v5530_v24 = vadd.f32 %v2341_v63, %v2202_v0  ;;  %v2343_v62 = vpop.f32.mrb[27].mxu0  ;;  %v2459_v56 = vadd.f32 %v5516_v3, %v2458_v58  ;;  %v2443_v28 = vpop.f32.mrb[24].mxu1  ;;  %v2498_v33 = vadd.f32 %v2497_v30, %v2482_v57 }
 0x670   :  { %v2462_v59 = vadd.f32 %v5523_v46, %v5518_v60  ;;  %v2485_v37 = vmul.f32 %v5523_v46, %v5523_v46  ;;  %v5536_v8 = vadd.f32 %v2343_v62, %v2202_v0  ;;  %v5541_v4 = vadd.f32 %v2443_v28, %v2197_v54  ;;  %v2445_v53 = vpop.f32.mrb[25].mxu1 }
 0x671   :  { %v2488_v20 = vmul.f32 %v5530_v24, %v5530_v24  ;;  %2460 = vadd.xlane.f32.xlu1 %v2459_v56  ;;  %v5547_v35 = vadd.f32 %v2445_v53, %v2197_v54  ;;  %v2447_v1 = vpop.f32.mrb[26].mxu1  ;;  %v2499_v12 = vadd.f32 %v2498_v33, %v2483_v44  ;;  %v2494_v11 = vadd.f32 %v2493_v32, %v2479_v26 }
 0x672   :  { %v2502_v23 = vadd.f32 %v2485_v37, %v2484_v21  ;;  %v2467_v36 = vadd.f32 %v5536_v8, %v5530_v24  ;;  %v2489_v42 = vmul.f32 %v5536_v8, %v5536_v8  ;;  %v2463_v16 = vadd.f32 %v5541_v4, %v2462_v59  ;;  %v2449_v50 = vpop.f32.mrb[27].mxu1 }
 0x673   :  { %v2486_v55 = vmul.f32 %v5541_v4, %v5541_v4  ;;  %v5552_v27 = vadd.f32 %v2447_v1, %v2202_v0  ;;  %v2487_v10 = vmul.f32 %v5547_v35, %v5547_v35  ;;  %2500 = vadd.xlane.f32.xlu0 %v2499_v12  ;;  %v5560_v34 = vadd.f32 %v2449_v50, %v2202_v0  ;;  %v2537_v1 = vld [vmem:[%s5665_s12 + $0x8] sm:$0xff]  ;;  %v2536_v12 = vld [vmem:[%s5665_s12] sm:$0xff] }
 0x674   :  { %v2464_v39 = vadd.f32 %v5547_v35, %v2463_v16  ;;  %v2507_v43 = vadd.f32 %v2489_v42, %v2488_v20 }
 0x675   :  { %2495 = vadd.xlane.f32.xlu1 %v2494_v11  ;;  %v2503_v14 = vadd.f32 %v2502_v23, %v2486_v55  ;;  %v2468_v48 = vadd.f32 %v5552_v27, %v2467_v36  ;;  %v2490_v41 = vmul.f32 %v5552_v27, %v5552_v27  ;;  %v2491_v40 = vmul.f32 %v5560_v34, %v5560_v34 }
 0x677   :  { %v2504_v6 = vadd.f32 %v2503_v14, %v2487_v10  ;;  %2465 = vadd.xlane.f32.xlu0 %v2464_v39  ;;  %v2469_v15 = vadd.f32 %v5560_v34, %v2468_v48  ;;  %v2508_v45 = vadd.f32 %v2507_v43, %v2490_v41  ;;  %v2544_v39 = vld [vmem:[%s5666_s13] sm:$0xff]  ;;  %v2545_v14 = vld [vmem:[%s5666_s13 + $0x8] sm:$0xff]  ;;  %v2538_v41 = vld [vmem:[%s5665_s12 + $0x10] sm:$0xff] }
 0x679   :  { %2505 = vadd.xlane.f32.xlu1 %v2504_v6  ;;  %v2509_v29 = vadd.f32 %v2508_v45, %v2491_v40 }
 0x67b   :  { %2470 = vadd.xlane.f32.xlu0 %v2469_v15 }
 0x67f   :  { %2510 = vadd.xlane.f32.xlu0 %v2509_v29  ;;  %v2546_v29 = vld [vmem:[%s5666_s13 + $0x10] sm:$0xff] }
 0x6fb   :  { %v2456_v31 = vpop.xlane.xlu0 %2455 }
 0x6fc   :  { %v2472_v54 = vmul.f32 0.001953125, %v2456_v31 }
 0x6fe   :  { %v2461_v19 = vpop.xlane.xlu1 %2460  ;;  %v2516_v18 = vmul.f32 %v2472_v54, %v2472_v54 }
 0x6ff   :  { %v2473_v51 = vmul.f32 0.001953125, %v2461_v19  ;;  %v2539_v19 = vld [vmem:[%s5665_s12 + $0x18] sm:$0xff] }
 0x700   :  { %v2501_v22 = vpop.xlane.xlu0 %2500 }
 0x701   :  { %v2517_v2 = vmul.f32 %v2473_v51, %v2473_v51  ;;  %v2513_v25 = vmul.f32 0.001953125, %v2501_v22  ;;  %v2547_v22 = vld [vmem:[%s5666_s13 + $0x18] sm:$0xff] }
 0x702   :  { %v2496_v47 = vpop.xlane.xlu1 %2495 }
 0x703   :  { %v2512_v30 = vmul.f32 0.001953125, %v2496_v47  ;;  %v2521_v26 = vsub.f32 %v2513_v25, %v2517_v2 }
 0x704   :  { %v2466_v0 = vpop.xlane.xlu0 %2465 }
 0x705   :  { %v2520_v5 = vsub.f32 %v2512_v30, %v2516_v18  ;;  %v2525_v58 = vmax.f32 %v2521_v26, 0.0  ;;  %v2474_v57 = vmul.f32 0.001953125, %v2466_v0 }
 0x706   :  { %v2506_v63 = vpop.xlane.xlu1 %2505 }
 0x707   :  { %v2524_v7 = vmax.f32 %v2520_v5, 0.0  ;;  %v2514_v44 = vmul.f32 0.001953125, %v2506_v63  ;;  %v2529_v21 = vadd.f32 1e-05, %v2525_v58  ;;  %v2518_v62 = vmul.f32 %v2474_v57, %v2474_v57 }
 0x708   :  { %v2471_v59 = vpop.xlane.xlu0 %2470 }
 0x709   :  { %v2528_v32 = vadd.f32 1e-05, %v2524_v7  ;;  %3401 = vrsqrt.f32 %v2529_v21  ;;  %v2522_v37 = vsub.f32 %v2514_v44, %v2518_v62  ;;  %v2475_v56 = vmul.f32 0.001953125, %v2471_v59 }
 0x70b   :  { %3403 = vrsqrt.f32 %v2528_v32  ;;  %v2526_v28 = vmax.f32 %v2522_v37, 0.0  ;;  %v2519_v20 = vmul.f32 %v2475_v56, %v2475_v56 }
 0x70c   :  { %v2511_v33 = vpop.xlane.xlu0 %2510 }
 0x70d   :  { %v2530_v23 = vadd.f32 1e-05, %v2526_v28  ;;  %v2515_v53 = vmul.f32 0.001953125, %v2511_v33 }
 0x70f   :  { %3405 = vrsqrt.f32 %v2530_v23  ;;  %v2523_v36 = vsub.f32 %v2515_v53, %v2519_v20 }
 0x711   :  { %v2527_v42 = vmax.f32 %v2523_v36, 0.0 }
 0x713   :  { %v3402_v16 = vpop.eup %3401  ;;  %v2531_v55 = vadd.f32 1e-05, %v2527_v42 }
 0x714   :  { %v2541_v11 = vmul.f32 %v3402_v16, %v2537_v1 }
 0x715   :  { %v3404_v50 = vpop.eup %3403  ;;  %3407 = vrsqrt.f32 %v2531_v55 }
 0x716   :  { %v2540_v10 = vmul.f32 %v3404_v50, %v2536_v12  ;;  %2563 = vperm.xlu0 %3036, %v2541_v11   ;;  %v2549_v43 = vmul.f32 %v2541_v11, %v2473_v51 }
 0x718   :  { %2558 = vperm.xlu1 %3035, %v2540_v10   ;;  %v2548_v48 = vmul.f32 %v2540_v10, %v2472_v54  ;;  %v2553_v15 = vsub.f32 %v2545_v14, %v2549_v43 }
 0x719   :  { %v3406_v6 = vpop.eup %3405 }
 0x71a   :  { %v2552_v40 = vsub.f32 %v2544_v39, %v2548_v48  ;;  %v2542_v45 = vmul.f32 %v3406_v6, %v2538_v41 }
 0x71c   :  { %2594 = vperm.xlu0 %3036, %v2552_v40   ;;  %2599 = vperm.xlu1 %3035, %v2553_v15   ;;  %v2550_v31 = vmul.f32 %v2542_v45, %v2474_v57 }
 0x71e   :  { %v2554_v54 = vsub.f32 %v2546_v29, %v2550_v31 }
 0x71f   :  { %v3408_v51 = vpop.eup %3407 }
 0x720   :  { %2568 = vperm.xlu1 %3035, %v2542_v45   ;;  %2604 = vperm.xlu0 %3036, %v2554_v54   ;;  %v2543_v2 = vmul.f32 %v3408_v51, %v2539_v19 }
 0x722   :  { %v2551_v25 = vmul.f32 %v2543_v2, %v2475_v56 }
 0x724   :  { %2573 = vperm.xlu1 %3035, %v2543_v2   ;;  %v2555_v47 = vsub.f32 %v2547_v22, %v2551_v25 }
 0x728   :  { %2609 = vperm.xlu1 %3035, %v2555_v47  }
 0x795   :  { %v2564_v18 = vpop.permute.xlu0 %2563 }
 0x796   :  { %v2580_v26 = vmul.f32 %v5491_v9, %v2564_v18  ;;  %v2581_v5 = vmul.f32 %v5497_v61, %v2564_v18  ;;  %v2582_v0 = vmul.f32 %v5512_v17, %v2564_v18  ;;  %v2583_v58 = vmul.f32 %v5516_v3, %v2564_v18 }
 0x797   :  { %v2559_v30 = vpop.permute.xlu1 %2558 }
 0x798   :  { %v2576_v57 = vmul.f32 %v5485_v38, %v2559_v30  ;;  %v2577_v63 = vmul.f32 %v5487_v52, %v2559_v30  ;;  %v2578_v7 = vmul.f32 %v5505_v49, %v2559_v30  ;;  %v2579_v44 = vmul.f32 %v5507_v13, %v2559_v30 }
 0x79b   :  { %v2600_v21 = vpop.permute.xlu1 %2599  ;;  %v2595_v62 = vpop.permute.xlu0 %2594 }
 0x79c   :  { %v2616_v32 = vadd.f32 %v2600_v21, %v2580_v26  ;;  %v2617_v59 = vadd.f32 %v2600_v21, %v2581_v5  ;;  %v2618_v37 = vadd.f32 %v2600_v21, %v2582_v0  ;;  %v2619_v9 = vadd.f32 %v2600_v21, %v2583_v58 }
 0x79d   :  { %v2612_v56 = vadd.f32 %v2595_v62, %v2576_v57  ;;  %v2613_v61 = vadd.f32 %v2595_v62, %v2577_v63  ;;  %v2614_v28 = vadd.f32 %v2595_v62, %v2578_v7  ;;  %v2615_v17 = vadd.f32 %v2595_v62, %v2579_v44 }
 0x79e   :  { %v2632_v33 = vmax.f32 %v2616_v32, 0.0  ;;  %v2633_v3 = vmax.f32 %v2617_v59, 0.0  ;;  %v2634_v23 = vmax.f32 %v2618_v37, 0.0  ;;  %v2635_v38 = vmax.f32 %v2619_v9, 0.0 }
 0x79f   :  { %v2628_v20 = vmax.f32 %v2612_v56, 0.0  ;;  %v2629_v52 = vmax.f32 %v2613_v61, 0.0  ;;  %v2630_v53 = vmax.f32 %v2614_v28, 0.0  ;;  %v2631_v49 = vmax.f32 %v2615_v17, 0.0  ;;  %v2569_v36 = vpop.permute.xlu1 %2568 }
 0x7a0   :  { %2646 = vst [vmem:[%s5667_s14 + $0x10] sm:$0xff] %v2632_v33  ;;  %2647 = vst [vmem:[%s5667_s14 + $0x18] sm:$0xff] %v2633_v3  ;;  %v2584_v13 = vmul.f32 %v5518_v60, %v2569_v36  ;;  %v2585_v42 = vmul.f32 %v5523_v46, %v2569_v36  ;;  %v2586_v1 = vmul.f32 %v5541_v4, %v2569_v36  ;;  %v2605_v60 = vpop.permute.xlu0 %2604 }
 0x7a1   :  { %2912 = vst [vmem:[%s5667_s14 + $0x50] sm:$0xff] %v2634_v23  ;;  %2913 = vst [vmem:[%s5667_s14 + $0x58] sm:$0xff] %v2635_v38  ;;  %v2587_v12 = vmul.f32 %v5547_v35, %v2569_v36 }
 0x7a2   :  { %2644 = vst [vmem:[%s5667_s14] sm:$0xff] %v2628_v20  ;;  %2645 = vst [vmem:[%s5667_s14 + $0x8] sm:$0xff] %v2629_v52  ;;  %v2620_v46 = vadd.f32 %v2605_v60, %v2584_v13  ;;  %v2621_v4 = vadd.f32 %v2605_v60, %v2585_v42  ;;  %v2622_v35 = vadd.f32 %v2605_v60, %v2586_v1 }
 0x7a3   :  { %2910 = vst [vmem:[%s5667_s14 + $0x40] sm:$0xff] %v2630_v53  ;;  %2911 = vst [vmem:[%s5667_s14 + $0x48] sm:$0xff] %v2631_v49  ;;  %v2623_v16 = vadd.f32 %v2605_v60, %v2587_v12  ;;  %v2574_v55 = vpop.permute.xlu1 %2573 }
 0x7a4   :  { %v2636_v50 = vmax.f32 %v2620_v46, 0.0  ;;  %v2637_v11 = vmax.f32 %v2621_v4, 0.0  ;;  %v2638_v10 = vmax.f32 %v2622_v35, 0.0  ;;  %v2588_v14 = vmul.f32 %v5530_v24, %v2574_v55 }
 0x7a5   :  { %v2639_v39 = vmax.f32 %v2623_v16, 0.0  ;;  %v2589_v43 = vmul.f32 %v5536_v8, %v2574_v55  ;;  %v2590_v48 = vmul.f32 %v5552_v27, %v2574_v55  ;;  %v2591_v41 = vmul.f32 %v5560_v34, %v2574_v55 }
 0x7a6   :  { %2648 = vst [vmem:[%s5667_s14 + $0x20] sm:$0xff] %v2636_v50  ;;  %2649 = vst [vmem:[%s5667_s14 + $0x28] sm:$0xff] %v2637_v11 }
 0x7a7   :  { %2914 = vst [vmem:[%s5667_s14 + $0x60] sm:$0xff] %v2638_v10  ;;  %2915 = vst [vmem:[%s5667_s14 + $0x68] sm:$0xff] %v2639_v39  ;;  %v2610_v6 = vpop.permute.xlu1 %2609 }
 0x7a8   :  { %v2624_v40 = vadd.f32 %v2610_v6, %v2588_v14  ;;  %v2625_v15 = vadd.f32 %v2610_v6, %v2589_v43  ;;  %v2626_v45 = vadd.f32 %v2610_v6, %v2590_v48  ;;  %v2627_v29 = vadd.f32 %v2610_v6, %v2591_v41 }
 0x7aa   :  { %v2640_v31 = vmax.f32 %v2624_v40, 0.0  ;;  %v2641_v19 = vmax.f32 %v2625_v15, 0.0  ;;  %v2642_v54 = vmax.f32 %v2626_v45, 0.0  ;;  %v2643_v51 = vmax.f32 %v2627_v29, 0.0 }
 0x7ac   :  { %2650 = vst [vmem:[%s5667_s14 + $0x30] sm:$0xff] %v2640_v31  ;;  %2651 = vst [vmem:[%s5667_s14 + $0x38] sm:$0xff] %v2641_v19 }
 0x7ad   :  { %2916 = vst [vmem:[%s5667_s14 + $0x70] sm:$0xff] %v2642_v54  ;;  %2917 = vst [vmem:[%s5667_s14 + $0x78] sm:$0xff] %v2643_v51 }

</bundles_post_ra>
